<compile_context>
chip_gen: v5e
topology: v5e:2x2
jax: 0.10.0
libtpu: 0.0.40
codegen_flags: <defaults>
</compile_context>

<pallas_src>
import functools

import jax
import jax.numpy as jnp
from jax import lax
from jax.experimental import pallas as pl
from jax.experimental.pallas import tpu as pltpu


# ---------------------------------------------------------------------------
# Shared in-kernel helpers (traced jnp code).
# ---------------------------------------------------------------------------
def _rms_normalize(x):
    """F.normalize over the channel (sublane) axis of a (C, N) tile.

    Clamping the sum of squares at eps^2 == clamping the norm at eps=1e-12,
    matching torch.nn.functional.normalize.
    """
    inv = lax.rsqrt(jnp.maximum(jnp.sum(x * x, axis=0, keepdims=True), 1e-24))
    return x * inv


def _q_softmax_unnormalized(q, heads, dim_head, n):
    """exp(q - max) over dim_head per head; denominator returned separately."""
    q3 = q.reshape(heads, dim_head, n)
    qm = jnp.max(q3, axis=1, keepdims=True)
    qe = jnp.exp(q3 - qm)                                # (heads, dim_head, N)
    qs = jnp.sum(qe, axis=1, keepdims=True)              # (heads, 1, N)
    return qe.reshape(heads * dim_head, n), qs


def _attn_out(ctx_bf16, qe_bf16, qs, heads, dim_head, n):
    """out[e, n] = sum_d ctx[d, e] * qe[d, n], then per-head 1/qs scaling."""
    out = lax.dot_general(ctx_bf16, qe_bf16,
                          dimension_numbers=(((0,), (0,)), ((), ())),
                          preferred_element_type=jnp.float32)   # (hidden, N)
    out = out.reshape(heads, dim_head, n) * pl.reciprocal(qs, approx=True)
    return out.reshape(heads * dim_head, n)


def _to_out(out, wout_bf16, bout, g2):
    """to_out 1x1x1 conv (+bias) followed by RMSNorm #2 (gains pre-folded)."""
    y = jnp.dot(wout_bf16, out.astype(jnp.bfloat16),
                preferred_element_type=jnp.float32) + bout
    return _rms_normalize(y) * g2


# ---------------------------------------------------------------------------
# Fused path: one grid step == one batch element, whole volume in VMEM.
# ---------------------------------------------------------------------------
def _fused_kernel(x_ref, wqkv_ref, mask_ref, wout_ref, bout_ref, g2_ref, o_ref,
                  *, heads, dim_head):
    hidden = heads * dim_head
    x = x_ref[0].astype(jnp.float32)                      # (C, N)
    n = x.shape[-1]

    # RMSNorm #1 (g1*sqrt(C) folded into wqkv) + to_qkv conv.
    xn = _rms_normalize(x).astype(jnp.bfloat16)
    qkv = lax.dot_general(wqkv_ref[...], xn,              # (C,3H)^T @ (C,N)
                          dimension_numbers=(((0,), (0,)), ((), ())),
                          preferred_element_type=jnp.float32)   # (3H, N)
    q = qkv[:hidden]
    k = qkv[hidden:2 * hidden]
    v = qkv[2 * hidden:]

    # k softmax over N with the normalization deferred to the tiny context.
    km = jnp.max(k, axis=1, keepdims=True)
    ke = jnp.exp(k - km)                                  # (hidden, N) f32
    ks = jnp.sum(ke, axis=1, keepdims=True)               # (hidden, 1)
    # ctx[d, e] = sum_n ke[d, n] * v[e, n]  (all heads fused; mask kills
    # cross-head terms); 1/ks is a (hidden,1) row scale of a 128x128 matrix.
    ctx = lax.dot_general(ke.astype(jnp.bfloat16), v.astype(jnp.bfloat16),
                          dimension_numbers=(((1,), (1,)), ((), ())),
                          preferred_element_type=jnp.float32)   # (hidden, hidden)
    ctx = (ctx * pl.reciprocal(ks, approx=True) * mask_ref[...]).astype(jnp.bfloat16)

    # q softmax over dim_head with the normalization deferred past the matmul.
    qe, qs = _q_softmax_unnormalized(q, heads, dim_head, n)
    out = _attn_out(ctx, qe.astype(jnp.bfloat16), qs, heads, dim_head, n)

    o_ref[0] = _to_out(out, wout_ref[...], bout_ref[...], g2_ref[...]).astype(o_ref.dtype)


# ---------------------------------------------------------------------------
# Tiled path, pass 1: online k-softmax stats + context accumulation over N.
# ---------------------------------------------------------------------------
def _ctx_kernel(x_ref, wkv_ref, mask_ref, ct_ref, m_sc, s_sc, acc_sc,
                *, heads, dim_head):
    hidden = heads * dim_head
    nt = pl.program_id(1)

    @pl.when(nt == 0)
    def _():
        m_sc[...] = jnp.full_like(m_sc, -jnp.inf)
        s_sc[...] = jnp.zeros_like(s_sc)
        acc_sc[...] = jnp.zeros_like(acc_sc)

    x = x_ref[0].astype(jnp.float32)                      # (C, TN)
    xn = _rms_normalize(x).astype(jnp.bfloat16)
    kv = lax.dot_general(wkv_ref[...], xn,
                         dimension_numbers=(((0,), (0,)), ((), ())),
                         preferred_element_type=jnp.float32)    # (2H, TN)
    k = kv[:hidden]
    v = kv[hidden:]

    # Online softmax over the spatial axis (running max / sum with rescale).
    m_prev = m_sc[...]
    m_new = jnp.maximum(m_prev, jnp.max(k, axis=1, keepdims=True))
    alpha = jnp.exp(m_prev - m_new)                       # (hidden, 1)
    ke = jnp.exp(k - m_new)                               # (hidden, TN)
    s_sc[...] = alpha * s_sc[...] + jnp.sum(ke, axis=1, keepdims=True)
    acc_sc[...] = alpha * acc_sc[...] + lax.dot_general(
        ke.astype(jnp.bfloat16), v.astype(jnp.bfloat16),
        dimension_numbers=(((1,), (1,)), ((), ())),
        preferred_element_type=jnp.float32)               # (hidden, hidden)
    m_sc[...] = m_new

    @pl.when(nt == pl.num_programs(1) - 1)
    def _():
        ct_ref[0] = (acc_sc[...] * pl.reciprocal(s_sc[...], approx=True)
                     * mask_ref[...]).astype(ct_ref.dtype)


# ---------------------------------------------------------------------------
# Tiled path, pass 2: per-tile q softmax, attention output, to_out, RMSNorm#2.
# ---------------------------------------------------------------------------
def _out_kernel(x_ref, wq_ref, ct_ref, wout_ref, bout_ref, g2_ref, o_ref,
                *, heads, dim_head):
    x = x_ref[0].astype(jnp.float32)                      # (C, TN)
    n = x.shape[-1]
    xn = _rms_normalize(x).astype(jnp.bfloat16)
    q = lax.dot_general(wq_ref[...], xn,
                        dimension_numbers=(((0,), (0,)), ((), ())),
                        preferred_element_type=jnp.float32)     # (hidden, TN)
    qe, qs = _q_softmax_unnormalized(q, heads, dim_head, n)
    out = _attn_out(ct_ref[0], qe.astype(jnp.bfloat16), qs, heads, dim_head, n)
    o_ref[0] = _to_out(out, wout_ref[...], bout_ref[...], g2_ref[...]).astype(o_ref.dtype)


# ---------------------------------------------------------------------------
# Host-side wrapper.
# ---------------------------------------------------------------------------
def _vmem_limit_bytes():
    """Scoped-VMEM budget: ~3/4 of physical VMEM, never more than ~96 MiB.

    v5e/v6e have 128 MiB -> 96 MiB; v7x has 64 MiB -> 48 MiB; on failure fall
    back to 48 MiB which is safe on every generation.
    """
    try:
        cap = int(pltpu.get_tpu_info().vmem_capacity_bytes)
    except Exception:
        cap = 64 * 1024 * 1024
    return min(int(cap * 3 // 4), 96 * 1024 * 1024)


def _pick_tile_n(n, cap=4096):
    """Largest multiple of 128 <= cap that divides N."""
    best = 0
    t = 128
    while t <= min(cap, n):
        if n % t == 0:
            best = t
        t += 128
    if best == 0:
        # TODO(synk): pad/mask ragged volumes whose N has no 128-multiple divisor.
        raise ValueError(f"cannot tile N={n}: no divisor that is a multiple of 128")
    return best


def _fold_params(params, C, hidden, dim_head):
    """Fold RMSNorm gains, sqrt(C) and the q-scale into bf16 weights (host)."""
    scale = dim_head ** -0.5
    g1 = params['g1'].reshape(1, C).astype(jnp.float32)
    wqkv = params['wqkv'].reshape(3 * hidden, C).astype(jnp.float32)
    wqkv = wqkv * (g1 * C ** 0.5)                         # fold RMSNorm #1 gain
    wqkv_t = jnp.transpose(wqkv).astype(jnp.bfloat16)     # (C, 3*hidden), lane-dense
    wout = (params['wout'].reshape(C, hidden).astype(jnp.float32)
            * scale).astype(jnp.bfloat16)                 # fold q scale
    bout = params['bout'].reshape(C, 1).astype(jnp.float32)
    g2 = (params['g2'].reshape(C, 1).astype(jnp.float32)) * C ** 0.5
    head_id = jnp.arange(hidden, dtype=jnp.int32) // dim_head
    mask = (head_id[:, None] == head_id[None, :]).astype(jnp.float32)
    return wqkv_t, mask, wout, bout, g2


def linear_attention_3d(x, params, *, heads=4, dim_head=32, tile_n=None):
    """x: (B, C, X, Y, Z) float32 (PyTorch layout). Returns the same shape."""
    B, C, X, Y, Z = x.shape
    N = X * Y * Z
    hidden = heads * dim_head

    x_bcn = x.reshape(B, C, N)                            # free reshape, no transpose
    wqkv_t, mask, wout, bout, g2 = _fold_params(params, C, hidden, dim_head)
    vmem_limit = _vmem_limit_bytes()

    if tile_n is None:
        # Live f32 temps in the fused kernel are ~6*hidden*4 bytes / position;
        # switch to the two-pass tiled path before they crowd the VMEM budget.
        live_bytes = N * 6 * hidden * 4
        tile_n = N if live_bytes <= vmem_limit // 2 else _pick_tile_n(N)

    cparams_1d = pltpu.CompilerParams(
        dimension_semantics=("parallel",), vmem_limit_bytes=vmem_limit)

    if tile_n >= N:
        # ---- fused: one block per batch element -------------------------------
        kernel = functools.partial(_fused_kernel, heads=heads, dim_head=dim_head)
        out_bcn = pl.pallas_call(
            kernel,
            out_shape=jax.ShapeDtypeStruct((B, C, N), x.dtype),
            grid_spec=pltpu.PrefetchScalarGridSpec(
                num_scalar_prefetch=0,
                grid=(B,),
                in_specs=[
                    pl.BlockSpec((1, C, N), lambda b: (b, 0, 0)),        # x
                    pl.BlockSpec((C, 3 * hidden), lambda b: (0, 0)),     # W_qkv^T bf16
                    pl.BlockSpec((hidden, hidden), lambda b: (0, 0)),    # head mask
                    pl.BlockSpec((C, hidden), lambda b: (0, 0)),         # W_out bf16
                    pl.BlockSpec((C, 1), lambda b: (0, 0)),              # b_out
                    pl.BlockSpec((C, 1), lambda b: (0, 0)),              # g2 (folded)
                ],
                out_specs=pl.BlockSpec((1, C, N), lambda b: (b, 0, 0)),
            ),
            compiler_params=cparams_1d,
        )(x_bcn, wqkv_t, mask, wout, bout, g2)
        return out_bcn.reshape(B, C, X, Y, Z)

    # ---- tiled: two passes over N-tiles ---------------------------------------
    assert N % tile_n == 0 and tile_n % 128 == 0, (N, tile_n)
    NT = N // tile_n
    wq_t = wqkv_t[:, :hidden]                             # (C, hidden)   bf16
    wkv_t = wqkv_t[:, hidden:]                            # (C, 2*hidden) bf16

    # Pass 1: per-batch (hidden, hidden) context with online k-softmax stats.
    ctx_kernel = functools.partial(_ctx_kernel, heads=heads, dim_head=dim_head)
    ct = pl.pallas_call(
        ctx_kernel,
        out_shape=jax.ShapeDtypeStruct((B, hidden, hidden), jnp.bfloat16),
        grid_spec=pltpu.PrefetchScalarGridSpec(
            num_scalar_prefetch=0,
            grid=(B, NT),
            in_specs=[
                pl.BlockSpec((1, C, tile_n), lambda b, t: (b, 0, t),
                             pipeline_mode=pl.Buffered(3)),              # x tile
                pl.BlockSpec((C, 2 * hidden), lambda b, t: (0, 0)),      # W_kv^T bf16
                pl.BlockSpec((hidden, hidden), lambda b, t: (0, 0)),     # head mask
            ],
            out_specs=pl.BlockSpec((1, hidden, hidden), lambda b, t: (b, 0, 0)),
            scratch_shapes=[
                pltpu.VMEM((hidden, 1), jnp.float32),     # running max
                pltpu.VMEM((hidden, 1), jnp.float32),     # running sum
                pltpu.VMEM((hidden, hidden), jnp.float32) # context accumulator
            ],
        ),
        compiler_params=pltpu.CompilerParams(
            dimension_semantics=("parallel", "arbitrary"),
            vmem_limit_bytes=vmem_limit,
        ),
    )(x_bcn, wkv_t, mask)

    # Pass 2: recompute q per tile (cheap at small C) and produce the output.
    out_kernel = functools.partial(_out_kernel, heads=heads, dim_head=dim_head)
    out_bcn = pl.pallas_call(
        out_kernel,
        out_shape=jax.ShapeDtypeStruct((B, C, N), x.dtype),
        grid_spec=pltpu.PrefetchScalarGridSpec(
            num_scalar_prefetch=0,
            grid=(B, NT),
            in_specs=[
                pl.BlockSpec((1, C, tile_n), lambda b, t: (b, 0, t),
                             pipeline_mode=pl.Buffered(3)),              # x tile
                pl.BlockSpec((C, hidden), lambda b, t: (0, 0)),          # W_q^T bf16
                pl.BlockSpec((1, hidden, hidden), lambda b, t: (b, 0, 0)),  # context
                pl.BlockSpec((C, hidden), lambda b, t: (0, 0)),          # W_out bf16
                pl.BlockSpec((C, 1), lambda b, t: (0, 0)),               # b_out
                pl.BlockSpec((C, 1), lambda b, t: (0, 0)),               # g2
            ],
            out_specs=pl.BlockSpec((1, C, tile_n), lambda b, t: (b, 0, t)),
        ),
        compiler_params=pltpu.CompilerParams(
            dimension_semantics=("parallel", "parallel"),
            vmem_limit_bytes=vmem_limit,
        ),
    )(x_bcn, wq_t, ct, wout, bout, g2)
    return out_bcn.reshape(B, C, X, Y, Z)


# ---------------------------------------------------------------------------
# Pure-JAX reference mirroring the PyTorch forward exactly (for sanity).
# ---------------------------------------------------------------------------
def ref_linear_attention_3d(x, params, *, heads=4, dim_head=32):
    b, c, X, Y, Z = x.shape
    hidden = heads * dim_head
    scale = dim_head ** -0.5
    g1 = params['g1']
    norm = jnp.sqrt(jnp.sum(x * x, axis=1, keepdims=True))
    xn = x / jnp.maximum(norm, 1e-12) * g1[None, :, None, None, None] * c ** 0.5
    wqkv = params['wqkv'].reshape(3 * hidden, c)
    qkv = jnp.einsum('oc,bcxyz->boxyz', wqkv, xn)
    q, k, v = jnp.split(qkv, 3, axis=1)
    resh = lambda t: t.reshape(b, heads, dim_head, X * Y * Z)
    q, k, v = map(resh, (q, k, v))
    q = jax.nn.softmax(q, axis=-2) * scale
    k = jax.nn.softmax(k, axis=-1)
    context = jnp.einsum('bhdn,bhen->bhde', k, v)
    out = jnp.einsum('bhde,bhdn->bhen', context, q)
    out = out.reshape(b, hidden, X, Y, Z)
    wout = params['wout'].reshape(c, hidden)
    y = jnp.einsum('oc,bcxyz->boxyz', wout, out) + params['bout'][None, :, None, None, None]
    n2 = jnp.sqrt(jnp.sum(y * y, axis=1, keepdims=True))
    return y / jnp.maximum(n2, 1e-12) * params['g2'][None, :, None, None, None] * c ** 0.5


if __name__ == "__main__":
    # Small shapes consistent with the module: dim=8, heads=4, dim_head=32, 8^3 volume.
    B, DIM, X, Y, Z = 2, 8, 8, 8, 8
    HEADS, DIM_HEAD = 4, 32
    HIDDEN = HEADS * DIM_HEAD

    key = jax.random.PRNGKey(0)
    kx, kqkv, kw, kb = jax.random.split(key, 4)

    x = jax.random.normal(kx, (B, DIM, X, Y, Z), dtype=jnp.float32)
    params = {
        'g1': jnp.ones((DIM,), jnp.float32),                                   # RMSNorm3D g
        'wqkv': 0.1 * jax.random.normal(kqkv, (3 * HIDDEN, DIM), jnp.float32), # Conv3d(dim, 3*hidden, 1, bias=False)
        'wout': 0.1 * jax.random.normal(kw, (DIM, HIDDEN), jnp.float32),       # Conv3d(hidden, dim, 1)
        'bout': 0.01 * jax.random.normal(kb, (DIM,), jnp.float32),
        'g2': jnp.ones((DIM,), jnp.float32),                                   # output RMSNorm3D g
    }

    ref = ref_linear_attention_3d(x, params, heads=HEADS, dim_head=DIM_HEAD)

    # Fused path (auto-selected: N=512 fits VMEM with huge margin).
    out = jax.block_until_ready(
        linear_attention_3d(x, params, heads=HEADS, dim_head=DIM_HEAD))
    assert out.shape == (B, DIM, X, Y, Z)
    err_fused = float(jnp.max(jnp.abs(out - ref)))
    # bf16 MXU operands (f32 accumulation) + approx EUP reciprocal -> slightly
    # looser tolerance than pure-f32; still catches layout/semantic bugs.
    assert jnp.allclose(out, ref, rtol=2e-2, atol=2e-2), err_fused

    # Tiled two-pass path, forced (tile_n=256 -> 2 N-tiles) to exercise the
    # online k-softmax / context accumulation used for large volumes.
    out_t = jax.block_until_ready(
        linear_attention_3d(x, params, heads=HEADS, dim_head=DIM_HEAD, tile_n=256))
    err_tiled = float(jnp.max(jnp.abs(out_t - ref)))
    assert jnp.allclose(out_t, ref, rtol=2e-2, atol=2e-2), err_tiled

    print("KERNEL_OK")
</pallas_src>

<mosaic_0001>
module attributes {stable_mosaic.version = 11 : i64} {
  func.func @_fused_kernel(%arg0: i32, %arg1: memref<1x8x512xf32, #tpu.memory_space<vmem>>, %arg2: memref<8x384xbf16, #tpu.memory_space<vmem>>, %arg3: memref<128x128xf32, #tpu.memory_space<vmem>>, %arg4: memref<8x128xbf16, #tpu.memory_space<vmem>>, %arg5: memref<8x1xf32, #tpu.memory_space<vmem>>, %arg6: memref<8x1xf32, #tpu.memory_space<vmem>>, %arg7: memref<1x8x512xf32, #tpu.memory_space<vmem>>) attributes {dimension_semantics = [#tpu.dimension_semantics<parallel>], iteration_bounds = array<i64: 2>, scalar_prefetch = 0 : i64, scratch_operands = 0 : i64, tpu.core_type = #tpu.core_type<tc>, window_params = [{transform_indices = @transform_0, window_bounds = array<i64: 1, 8, 512>}, {pipeline_mode = #tpu.pipeline_mode<synchronous>, transform_indices = @transform_1, window_bounds = array<i64: 8, 384>}, {pipeline_mode = #tpu.pipeline_mode<synchronous>, transform_indices = @transform_2, window_bounds = array<i64: 128, 128>}, {pipeline_mode = #tpu.pipeline_mode<synchronous>, transform_indices = @transform_3, window_bounds = array<i64: 8, 128>}, {pipeline_mode = #tpu.pipeline_mode<synchronous>, transform_indices = @transform_4, window_bounds = array<i64: 8, 1>}, {pipeline_mode = #tpu.pipeline_mode<synchronous>, transform_indices = @transform_5, window_bounds = array<i64: 8, 1>}, {transform_indices = @transform_6, window_bounds = array<i64: 1, 8, 512>}]} {
    %c0 = arith.constant 0 : index
    %c0_0 = arith.constant 0 : index
    %c0_1 = arith.constant 0 : index
    %0 = vector.load %arg1[%c0, %c0_0, %c0_1] : memref<1x8x512xf32, #tpu.memory_space<vmem>>, vector<1x8x512xf32>
    %1 = vector.shape_cast %0 : vector<1x8x512xf32> to vector<8x512xf32>
    %2 = arith.mulf %1, %1 : vector<8x512xf32>
    %cst = arith.constant dense<0.000000e+00> : vector<512xf32>
    %3 = vector.multi_reduction <add>, %2, %cst [0] : vector<8x512xf32> to vector<512xf32>
    %4 = vector.shape_cast %3 : vector<512xf32> to vector<1x512xf32>
    %cst_2 = arith.constant 1.000000e-24 : f32
    %5 = vector.broadcast %cst_2 : f32 to vector<1x512xf32>
    %6 = arith.maximumf %4, %5 : vector<1x512xf32>
    %7 = math.rsqrt %6 : vector<1x512xf32>
    %8 = vector.broadcast %7 : vector<1x512xf32> to vector<8x512xf32>
    %9 = arith.mulf %1, %8 : vector<8x512xf32>
    %10 = arith.truncf %9 : vector<8x512xf32> to vector<8x512xbf16>
    %c0_3 = arith.constant 0 : index
    %c0_4 = arith.constant 0 : index
    %11 = vector.load %arg2[%c0_3, %c0_4] : memref<8x384xbf16, #tpu.memory_space<vmem>>, vector<8x384xbf16>
    %cst_5 = arith.constant dense<0.000000e+00> : vector<384x512xf32>
    %12 = tpu.matmul %11, %10, %cst_5 {dimension_numbers = #tpu.dot_dimension_numbers<[0], [0], [1], [1], [0, 1, 1, 1], [], []>} : vector<8x384xbf16>, vector<8x512xbf16>, vector<384x512xf32> -> vector<384x512xf32>
    %13 = vector.extract_strided_slice %12 {offsets = [0, 0], sizes = [128, 512], strides = [1, 1]} : vector<384x512xf32> to vector<128x512xf32>
    %14 = vector.extract_strided_slice %12 {offsets = [128, 0], sizes = [128, 512], strides = [1, 1]} : vector<384x512xf32> to vector<128x512xf32>
    %15 = vector.extract_strided_slice %12 {offsets = [256, 0], sizes = [128, 512], strides = [1, 1]} : vector<384x512xf32> to vector<128x512xf32>
    %cst_6 = arith.constant dense<0xFF800000> : vector<128xf32>
    %16 = vector.multi_reduction <maximumf>, %14, %cst_6 [1] : vector<128x512xf32> to vector<128xf32>
    %17 = vector.shape_cast %16 : vector<128xf32> to vector<128x1xf32>
    %18 = vector.broadcast %17 : vector<128x1xf32> to vector<128x512xf32>
    %19 = arith.subf %14, %18 : vector<128x512xf32>
    %20 = math.exp %19 : vector<128x512xf32>
    %cst_7 = arith.constant dense<0.000000e+00> : vector<128xf32>
    %21 = vector.multi_reduction <add>, %20, %cst_7 [1] : vector<128x512xf32> to vector<128xf32>
    %22 = vector.shape_cast %21 : vector<128xf32> to vector<128x1xf32>
    %23 = arith.truncf %20 : vector<128x512xf32> to vector<128x512xbf16>
    %24 = arith.truncf %15 : vector<128x512xf32> to vector<128x512xbf16>
    %cst_8 = arith.constant dense<0.000000e+00> : vector<128x128xf32>
    %25 = tpu.matmul %23, %24, %cst_8 {dimension_numbers = #tpu.dot_dimension_numbers<[1], [1], [0], [0], [0, 0, 1, 0], [], []>} : vector<128x512xbf16>, vector<128x512xbf16>, vector<128x128xf32> -> vector<128x128xf32>
    %26 = tpu.reciprocal %22 {approx = true} : vector<128x1xf32> -> vector<128x1xf32>
    %27 = vector.broadcast %26 : vector<128x1xf32> to vector<128x128xf32>
    %28 = arith.mulf %25, %27 : vector<128x128xf32>
    %c0_9 = arith.constant 0 : index
    %c0_10 = arith.constant 0 : index
    %29 = vector.load %arg3[%c0_9, %c0_10] : memref<128x128xf32, #tpu.memory_space<vmem>>, vector<128x128xf32>
    %30 = arith.mulf %28, %29 : vector<128x128xf32>
    %31 = arith.truncf %30 : vector<128x128xf32> to vector<128x128xbf16>
    %32 = vector.shape_cast %13 : vector<128x512xf32> to vector<4x32x512xf32>
    %cst_11 = arith.constant dense<0xFF800000> : vector<4x512xf32>
    %33 = vector.multi_reduction <maximumf>, %32, %cst_11 [1] : vector<4x32x512xf32> to vector<4x512xf32>
    %34 = vector.shape_cast %33 : vector<4x512xf32> to vector<4x1x512xf32>
    %35 = vector.broadcast %34 : vector<4x1x512xf32> to vector<4x32x512xf32>
    %36 = arith.subf %32, %35 : vector<4x32x512xf32>
    %37 = math.exp %36 : vector<4x32x512xf32>
    %cst_12 = arith.constant dense<0.000000e+00> : vector<4x512xf32>
    %38 = vector.multi_reduction <add>, %37, %cst_12 [1] : vector<4x32x512xf32> to vector<4x512xf32>
    %39 = vector.shape_cast %38 : vector<4x512xf32> to vector<4x1x512xf32>
    %40 = vector.shape_cast %37 : vector<4x32x512xf32> to vector<128x512xf32>
    %41 = arith.truncf %40 : vector<128x512xf32> to vector<128x512xbf16>
    %cst_13 = arith.constant dense<0.000000e+00> : vector<128x512xf32>
    %42 = tpu.matmul %31, %41, %cst_13 {dimension_numbers = #tpu.dot_dimension_numbers<[0], [0], [1], [1], [0, 1, 1, 1], [], []>} : vector<128x128xbf16>, vector<128x512xbf16>, vector<128x512xf32> -> vector<128x512xf32>
    %43 = vector.shape_cast %42 : vector<128x512xf32> to vector<4x32x512xf32>
    %44 = tpu.reciprocal %39 {approx = true} : vector<4x1x512xf32> -> vector<4x1x512xf32>
    %45 = vector.broadcast %44 : vector<4x1x512xf32> to vector<4x32x512xf32>
    %46 = arith.mulf %43, %45 : vector<4x32x512xf32>
    %47 = vector.shape_cast %46 : vector<4x32x512xf32> to vector<128x512xf32>
    %c0_14 = arith.constant 0 : index
    %c0_15 = arith.constant 0 : index
    %48 = vector.load %arg4[%c0_14, %c0_15] : memref<8x128xbf16, #tpu.memory_space<vmem>>, vector<8x128xbf16>
    %c0_16 = arith.constant 0 : index
    %c0_17 = arith.constant 0 : index
    %49 = vector.load %arg5[%c0_16, %c0_17] : memref<8x1xf32, #tpu.memory_space<vmem>>, vector<8x1xf32>
    %c0_18 = arith.constant 0 : index
    %c0_19 = arith.constant 0 : index
    %50 = vector.load %arg6[%c0_18, %c0_19] : memref<8x1xf32, #tpu.memory_space<vmem>>, vector<8x1xf32>
    %51 = arith.truncf %47 : vector<128x512xf32> to vector<128x512xbf16>
    %cst_20 = arith.constant dense<0.000000e+00> : vector<8x512xf32>
    %52 = tpu.matmul %48, %51, %cst_20 {dimension_numbers = #tpu.dot_dimension_numbers<[1], [0], [0], [1], [0, 0, 1, 1], [], []>} : vector<8x128xbf16>, vector<128x512xbf16>, vector<8x512xf32> -> vector<8x512xf32>
    %53 = vector.broadcast %49 : vector<8x1xf32> to vector<8x512xf32>
    %54 = arith.addf %52, %53 : vector<8x512xf32>
    %55 = arith.mulf %54, %54 : vector<8x512xf32>
    %cst_21 = arith.constant dense<0.000000e+00> : vector<512xf32>
    %56 = vector.multi_reduction <add>, %55, %cst_21 [0] : vector<8x512xf32> to vector<512xf32>
    %57 = vector.shape_cast %56 : vector<512xf32> to vector<1x512xf32>
    %cst_22 = arith.constant 1.000000e-24 : f32
    %58 = vector.broadcast %cst_22 : f32 to vector<1x512xf32>
    %59 = arith.maximumf %57, %58 : vector<1x512xf32>
    %60 = math.rsqrt %59 : vector<1x512xf32>
    %61 = vector.broadcast %60 : vector<1x512xf32> to vector<8x512xf32>
    %62 = arith.mulf %54, %61 : vector<8x512xf32>
    %63 = vector.broadcast %50 : vector<8x1xf32> to vector<8x512xf32>
    %64 = arith.mulf %62, %63 : vector<8x512xf32>
    %c0_23 = arith.constant 0 : index
    %c0_24 = arith.constant 0 : index
    %c0_25 = arith.constant 0 : index
    %65 = vector.load %arg7[%c0_23, %c0_24, %c0_25] : memref<1x8x512xf32, #tpu.memory_space<vmem>>, vector<1x8x512xf32>
    %66 = vector.shape_cast %65 : vector<1x8x512xf32> to vector<8x512xf32>
    %67 = vector.shape_cast %64 : vector<8x512xf32> to vector<1x8x512xf32>
    tpu.vector_store %arg7[%c0_23, %c0_24, %c0_25], %67 {strides = array<i32>} : memref<1x8x512xf32, #tpu.memory_space<vmem>>, vector<1x8x512xf32>,
    return
  }
  func.func @transform_0(%arg0: i32) -> (i32, i32, i32) {
    %c0_i32 = arith.constant 0 : i32
    %c0_i32_0 = arith.constant 0 : i32
    %c0_i32_1 = arith.constant 0 : i32
    return %arg0, %c0_i32, %c0_i32_0 : i32, i32, i32
  }
  func.func @transform_1(%arg0: i32) -> (i32, i32) {
    %c0_i32 = arith.constant 0 : i32
    %c0_i32_0 = arith.constant 0 : i32
    %c0_i32_1 = arith.constant 0 : i32
    return %c0_i32, %c0_i32_0 : i32, i32
  }
  func.func @transform_2(%arg0: i32) -> (i32, i32) {
    %c0_i32 = arith.constant 0 : i32
    %c0_i32_0 = arith.constant 0 : i32
    %c0_i32_1 = arith.constant 0 : i32
    return %c0_i32, %c0_i32_0 : i32, i32
  }
  func.func @transform_3(%arg0: i32) -> (i32, i32) {
    %c0_i32 = arith.constant 0 : i32
    %c0_i32_0 = arith.constant 0 : i32
    %c0_i32_1 = arith.constant 0 : i32
    return %c0_i32, %c0_i32_0 : i32, i32
  }
  func.func @transform_4(%arg0: i32) -> (i32, i32) {
    %c0_i32 = arith.constant 0 : i32
    %c0_i32_0 = arith.constant 0 : i32
    %c0_i32_1 = arith.constant 0 : i32
    return %c0_i32, %c0_i32_0 : i32, i32
  }
  func.func @transform_5(%arg0: i32) -> (i32, i32) {
    %c0_i32 = arith.constant 0 : i32
    %c0_i32_0 = arith.constant 0 : i32
    %c0_i32_1 = arith.constant 0 : i32
    return %c0_i32, %c0_i32_0 : i32, i32
  }
  func.func @transform_6(%arg0: i32) -> (i32, i32, i32) {
    %c0_i32 = arith.constant 0 : i32
    %c0_i32_0 = arith.constant 0 : i32
    %c0_i32_1 = arith.constant 0 : i32
    return %arg0, %c0_i32, %c0_i32_0 : i32, i32, i32
  }
}

</mosaic_0001>

<bundles_post_ra>
// kernel: tpu_custom_call.1
= control target key start
LH: loop header
LB: loop body
LE: loop exit
PB: predicated region body
PF: predicated region fallthrough
CT: control target
= control target key end

     0   :  { %11 = vsyncpa [#allocation3], 0  ;;  %s5696_s0 = inlined_call_operand.hbm [shape: f32[2,8,512], index: 0, kind: input, shape index: {}]   ;;  %s5697_s1 = inlined_call_operand.vmem [shape: bf16[8,384], index: 1, kind: input, shape index: {}]   ;;  %s5698_s2 = inlined_call_operand.hbm [shape: f32[128,128], index: 2, kind: input, shape index: {}]   ;;  %s5699_s3 = inlined_call_operand.vmem [shape: bf16[8,128], index: 3, kind: input, shape index: {}]   ;;  %s5700_s4 = inlined_call_operand.vmem [shape: f32[8,1], index: 4, kind: input, shape index: {}]   ;;  %s5701_s5 = inlined_call_operand.vmem [shape: f32[8,1], index: 5, kind: input, shape index: {}]   ;;  %s5702_s6 = inlined_call_operand.hbm [shape: f32[2,8,512], index: 6, kind: output, shape index: {}]  }
   0x1   :  { %13 = vsyncpa [#allocation3 + $0x1], 0 }
   0x2   :  { %14 = vsyncpa [#allocation6], 0 }
   0x3   :  { %15 = vsyncpa [#allocation4], 0 }
   0x4   :  { %17 = vsyncpa [#allocation4 + $0x1], 0  ;;  %s3593_s21 = smov 0   ;;  %s3595_s22 = smov 0  }
   0x5   :  { %s3597_s23 = smov 0   ;;  %s3599_s24 = smov 0  }
   0x6 LB: > { %s199_s27 = sshll.u32 %s5698_s2, 4  ;;  %s3617_s28 = sadd.s32 4294967295, %s3548_s24   ;;  %s3548_s24 = sphi %s3599_s24, %s6347_s24   ;;  %s3544_s23 = sphi %s3597_s23, %s6346_s23   ;;  %s3540_s22 = sphi %s3595_s22, %s6345_s22   ;;  %s3536_s21 = sphi %s3593_s21, %s6344_s21   ;;  %s200_s27 = int_to_ptr.hbm [resolvable:$true] %s199_s27 }
   0x7   : > { %p2794_p0 = scmp.ge.s32.totalorder %s3548_s24, 1  ;;  %p44_p1 = scmp.eq.s32.totalorder %s3617_s28, 0 }
   0x8   : > { %p185_p2 = scmp.lt.s32.totalorder %s3548_s24, 3  ;;  %s3550_s30 = smov [#allocation5]  }
   0x9   : > { %s201_s7 = sshll.u32 %s3550_s30, 4  ;;  %s3551_s8 = smov 128   ;;  %s202_s7 = int_to_ptr.vmem [resolvable:$true] %s201_s7 }
   0xa   : > { %p3622_p3 = pnand %p2794_p0, %p185_p2  ;;  %s3552_s9 = smov 8  }
   0xb   : > { %s2793_s10 = sadd.s32 4294967294, %s3548_s24   ;;  %s3633_s11 = sadd.s32 1, %s3548_s24  }
   0xc   : > { %p3027_p4 = pneg %p3622_p3  ;;  %s30_s12 = sadd.s32 1, %s3544_s23 }
   0xd   : > { %s27_s13 = ssub.s32 %s3548_s24, %s3633_s11  ;;  %p37_p7 = scmp.ne.s32.totalorder %s3544_s23, %s3540_s22 }
   0xe   : > { %p3028_p6 = pnand %p3027_p4, %p44_p1  ;;  %p28_p8 = scmp.eq.s32.totalorder %s27_s13, 0 }
   0xf   : > { %p38_p9 = scmp.eq.s32.totalorder %s3548_s24, 0  ;;  %p43_p10 = scmp.ne.s32.totalorder %s3540_s22, %s3536_s21 }
  0x10   : > { %3030 = dma.hbm_to_vmem [thread:$0]  (!%p3028_p6), %s200_s27, 2048, %s202_s7, [#allocation6], %s3551_s8, %s3551_s8, %s3552_s9  }
  0x11   : > { %p172_p11 = scmp.eq.s32.totalorder %s3617_s28, 1  ;;  %p3649_p12 = por %p44_p1, %p43_p10 }
  0x12   : > { %s3645_s14 = scalar_select %p28_p8, %s3544_s23, %s30_s12  }
  0x13   : > { %p3653_p13 = por %p172_p11, %p37_p7  ;;  %p178_p0 = scmp.eq.s32.totalorder %s2793_s10, 1 }
  0x14   : > { %p39_p2 = por %p38_p9, %p37_p7  ;;  %s224_s17 = sand.u32 1, %s3544_s23  }
  0x15   : > { %p3658_p4 = por %p178_p0, %p43_p10  ;;  %p3040_p6 = scmp.lt.s32.totalorder %s3548_s24, 2 }
  0x16   : > { %s2797_s19 = sshll.u32 %s224_s17, 5  ;;  %s2905_s20 = sshll.u32 %s3548_s24, 5 }
  0x17   : > { %s233_s27 = scalar_lea.hbm %s5696_s0, %s2905_s20  ;;  %s228_s7 = scalar_lea.vmem [#allocation2], %s2797_s19 }
  0x18   : > { %s235_s30 = sshll.u32 %s233_s27, 4  ;;  %s237_s8 = sshll.u32 %s228_s7, 4  ;;  %s236_s30 = int_to_ptr.hbm [resolvable:$true] %s235_s30  ;;  %s238_s8 = int_to_ptr.vmem [resolvable:$true] %s237_s8 }
  0x19   : > { %p3667_p8 = pnand %p3040_p6, %p39_p2  ;;  %s225_s10 = scalar_lea.sflag [#allocation3], %s224_s17 }
  0x1a   : > { %s3448_s12 = sshra.s32 %s236_s30, 4  ;;  %s3455_s19 = scalar_lea.hbm %s5696_s0, 64  ;;  %s3449_s12 = int_to_ptr.hbm [resolvable:$true] %s3448_s12 }
  0x1b   : > { %s3450_s13 = scalar_lea.hbm %s3449_s12, 32  ;;  %p3452_p9 = pneg %p3667_p8 }
  0x1c   : > { %p3451_p7 = scmp.ne.s32.totalorder %s3449_s12, %s3450_s13  ;;  %p3456_p0 = scmp.lt.s32.totalorder %s3449_s12, %s5696_s0 }
  0x1d   : > { %p3457_p2 = scmp.lt.s32.totalorder %s3455_s19, %s3450_s13 }
  0x1e   : > { %p3453_p10 = pnand %p3452_p9, %p3451_p7 }
  0x1f   : > { %p3458_p6 = por %p3457_p2, %p3456_p0 }
  0x20   : > { %p3454_p11 = pneg %p3453_p10 }
  0x22   : > { %p3459_p5 = pnand %p3458_p6, %p3454_p11 }
  0x24   : > { %3462 = shalt.err (!%p3459_p5)
}
  0x25   : > { %3034 = dma.hbm_to_vmem [thread:$0]  (!%p3667_p8), %s236_s30, 512, %s238_s8, %s225_s10  }
  0x26   : > { %246 = sbr.rel (%p3622_p3) target bundleno = 1590 (0x636), region = 44 }
  0x2b   : > { %s3684_s17 = sand.u32 1, %s3540_s22  }
  0x2c   : > { %s2801_s7 = sshll.u32 %s3684_s17, 5  ;;  %s249_s20 = scalar_lea.sflag [#allocation3], %s3684_s17 }
  0x2d   : > { %s3690_s12 = scalar_lea.vmem [#allocation2], %s2801_s7 }
  0x2e   : > { %3523 = dma.done.wait (%p3649_p12), %s249_s20, 512  }
  0x2f   : > { %3525 = vsyncadd (%p3649_p12), %s249_s20, 4294966784 }
  0x30   : > { %3527 = dma.done.wait (%p44_p1), [#allocation6], 2048  }
  0x31   : > { %3529 = vsyncadd (%p44_p1), [#allocation6], 4294965248  ;;  %v372_v0 = vld [vmem:[%s5697_s1] sm:$0xff]  ;;  %v3705_v10 = vld [vmem:[%s3690_s12 + $0x8] sm:$0xff]  ;;  %vm498_vm3 = vcmask 1043456   ;;  %vm425_vm13 = vcmask 64512  }
  0x32   : > { %v288_v1 = vld [vmem:[%s3690_s12] sm:$0xff]  ;;  %v376_v2 = vunpack.c.l.b16 %v372_v0  ;;  %v377_v3 = vunpack.c.h.b16 %v372_v0  ;;  %v293_v12 = vmul.f32 %v3705_v10, %v3705_v10  ;;  %v3710_v19 = vld [vmem:[%s3690_s12 + $0x10] sm:$0xff]  ;;  %v3715_v30 = vld [vmem:[%s3690_s12 + $0x18] sm:$0xff]  ;;  %s5653_s27 = scalar_lea.vmem [#allocation7], %s2801_s7  ;;  %s2906_s7 = sshll.u32 %s3617_s28, 5 }
  0x33   : > { %v292_v4 = vmul.f32 %v288_v1, %v288_v1  ;;  %v294_v21 = vmul.f32 %v3710_v19, %v3710_v19  ;;  %v295_v32 = vmul.f32 %v3715_v30, %v3715_v30  ;;  %s2708_s29 = scalar_lea.hbm %s5702_s6, %s2906_s7  ;;  %s2710_s30 = sshll.u32 %s5653_s27, 4  ;;  %s2711_s30 = int_to_ptr.vmem [resolvable:$true] %s2710_s30 }
  0x34   : > { %v379_v5 = vpack.c.b16 %v376_v2, %v376_v2  ;;  %v380_v6 = vpack.c.b16 %v377_v3, %v377_v3  ;;  %v302_v14 = vrot.slane %v293_v12, 4  ;;  %s2712_s28 = sshll.u32 %s2708_s29, 4  ;;  %s2697_s15 = scalar_lea.sflag [#allocation4], %s3684_s17  ;;  %s2713_s28 = int_to_ptr.hbm [resolvable:$true] %s2712_s28 }
  0x35   : > { %v296_v7 = vrot.slane %v292_v4, 4  ;;  %v308_v23 = vrot.slane %v294_v21, 4  ;;  %v314_v35 = vrot.slane %v295_v32, 4  ;;  %s3492_s8 = sshra.s32 %s2713_s28, 4  ;;  %s3498_s25 = scalar_lea.hbm %s5702_s6, 64  ;;  %s3493_s8 = int_to_ptr.hbm [resolvable:$true] %s3492_s8 }
  0x36   : > { %385 = vxpose.binary.xlu0.c.b16.start.end [1/2] (short) %v380_v6, %v379_v5, 128  ;;  %v303_v16 = vadd.f32 %v302_v14, %v293_v12  ;;  %s3494_s9 = scalar_lea.hbm %s3493_s8, 32  ;;  %p3499_p12 = scmp.lt.s32.totalorder %s3493_s8, %s5702_s6 }
  0x37   : > { %v297_v8 = vadd.f32 %v296_v7, %v292_v4  ;;  %v309_v25 = vadd.f32 %v308_v23, %v294_v21  ;;  %v315_v38 = vadd.f32 %v314_v35, %v295_v32  ;;  %p3495_p1 = scmp.ne.s32.totalorder %s3493_s8, %s3494_s9  ;;  %p3500_p8 = scmp.lt.s32.totalorder %s3498_s25, %s3494_s9 }
  0x38   : > { %v304_v18 = vrot.slane %v303_v16, 2 }
  0x39   : > { %v298_v9 = vrot.slane %v297_v8, 2  ;;  %v310_v28 = vrot.slane %v309_v25, 2  ;;  %v316_v42 = vrot.slane %v315_v38, 2  ;;  %p3496_p3 = pnand %p3495_p1, %p3653_p13  ;;  %p3501_p7 = por %p3500_p8, %p3499_p12 }
  0x3a   : > { %v305_v20 = vadd.f32 %v304_v18, %v303_v16 }
  0x3b   : > { %v299_v11 = vadd.f32 %v298_v9, %v297_v8  ;;  %v311_v31 = vadd.f32 %v310_v28, %v309_v25  ;;  %v317_v45 = vadd.f32 %v316_v42, %v315_v38  ;;  %p3497_p5 = pneg %p3496_p3 }
  0x3c   : > { %v306_v22 = vrot.slane %v305_v20, 1 }
  0x3d   : > { %v300_v13 = vrot.slane %v299_v11, 1  ;;  %v312_v34 = vrot.slane %v311_v31, 1  ;;  %v318_v49 = vrot.slane %v317_v45, 1  ;;  %p3502_p9 = pnand %p3501_p7, %p3497_p5 }
  0x3e   : > { %v307_v24 = vadd.f32 %v306_v22, %v305_v20 }
  0x3f   : > { %v301_v15 = vadd.f32 %v300_v13, %v299_v11  ;;  %v313_v37 = vadd.f32 %v312_v34, %v311_v31  ;;  %v319_v52 = vadd.f32 %v318_v49, %v317_v45 }
  0x40   : > { %v321_v27 = vmax.f32 %v307_v24, 1e-24  ;;  %v373_v24 = vld [vmem:[%s5697_s1 + $0x8] sm:$0xf] }
  0x41   : > { %v320_v17 = vmax.f32 %v301_v15, 1e-24  ;;  %v322_v41 = vmax.f32 %v313_v37, 1e-24  ;;  %v323_v56 = vmax.f32 %v319_v52, 1e-24  ;;  %v378_v25 = vunpack.c.l.b16 %v373_v24 }
  0x42   : > { %vm340_vm4 = vweird.f32 %v321_v27 }
  0x43   : > { %3082 = vrsqrt.f32 %v320_v17  ;;  %vm330_vm0 = vweird.f32 %v320_v17  ;;  %vm350_vm7 = vweird.f32 %v322_v41  ;;  %vm360_vm10 = vweird.f32 %v323_v56 }
  0x44   : > { %3084 = vrsqrt.f32 %v321_v27 }
  0x45   : > { %3086 = vrsqrt.f32 %v322_v41 }
  0x46   : > { %3088 = vrsqrt.f32 %v323_v56 }
  0x49   : > { %v3083_v26 = vpop.eup %3082 }
  0x4a   : > { %v325_v29 = vmul.f32 %v3083_v26, %v320_v17  ;;  %vm331_vm1 = vweird.f32 %v3083_v26  ;;  %v3085_v40 = vpop.eup %3084 }
  0x4b   : > { %vm332_vm2 = vmor %vm330_vm0, %vm331_vm1  ;;  %v335_v44 = vmul.f32 %v3085_v40, %v321_v27  ;;  %vm341_vm5 = vweird.f32 %v3085_v40  ;;  %v3087_v54 = vpop.eup %3086 }
  0x4c   : > { %v326_v33 = vmul.f32 %v3083_v26, %v325_v29  ;;  %vm342_vm6 = vmor %vm340_vm4, %vm341_vm5  ;;  %v345_v58 = vmul.f32 %v3087_v54, %v322_v41  ;;  %vm351_vm8 = vweird.f32 %v3087_v54 }
  0x4d   : > { %v336_v47 = vmul.f32 %v3085_v40, %v335_v44  ;;  %vm352_vm9 = vmor %vm350_vm7, %vm351_vm8 }
  0x4e   : > { %v327_v36 = vmul.f32 0.5, %v326_v33  ;;  %v346_v60 = vmul.f32 %v3087_v54, %v345_v58 }
  0x4f   : > { %v337_v50 = vmul.f32 0.5, %v336_v47 }
  0x50   : > { %v328_v39 = vsub.f32 1.5, %v327_v36  ;;  %v347_v62 = vmul.f32 0.5, %v346_v60 }
  0x51   : > { %v338_v53 = vsub.f32 1.5, %v337_v50 }
  0x52   : > { %v329_v43 = vmul.f32 %v3083_v26, %v328_v39  ;;  %v348_v0 = vsub.f32 1.5, %v347_v62 }
  0x53   : > { %v339_v57 = vmul.f32 %v3085_v40, %v338_v53 }
  0x54   : > { %v333_v46 = vsel %vm332_vm2, %v3083_v26, %v329_v43  ;;  %v349_v3 = vmul.f32 %v3087_v54, %v348_v0  ;;  %v381_v26 = vpack.c.b16 %v378_v25, %v378_v25 }
  0x55   : > { %v364_v48 = vmul.f32 %v333_v46, %v288_v1  ;;  %v343_v59 = vsel %vm342_vm6, %v3085_v40, %v339_v57  ;;  %v3089_v1 = vpop.eup %3088 }
  0x56   : > { %v365_v61 = vmul.f32 %v343_v59, %v3705_v10  ;;  %v355_v4 = vmul.f32 %v3089_v1, %v323_v56  ;;  %v353_v5 = vsel %vm352_vm9, %v3087_v54, %v349_v3  ;;  %vm361_vm11 = vweird.f32 %v3089_v1 }
  0x57   : > { %v368_v51 = vpack.c.bf16 %v364_v48, %v364_v48  ;;  %v366_v7 = vmul.f32 %v353_v5, %v3710_v19  ;;  %vm362_vm12 = vmor %vm360_vm10, %vm361_vm11 }
  0x58   : > { %v369_v63 = vpack.c.bf16 %v365_v61, %v365_v61  ;;  %v356_v6 = vmul.f32 %v3089_v1, %v355_v4 }
  0x59   : > { %v500_v55 = vsel %vm498_vm3, %v368_v51, 0  ;;  %v370_v9 = vpack.c.bf16 %v366_v7, %v366_v7 }
  0x5a   : > { %518 = vmatpush.bf16.msra.mxu0 %v500_v55  ;;  %v503_v2 = vsel %vm498_vm3, %v369_v63, 0  ;;  %v357_v8 = vmul.f32 0.5, %v356_v6 }
  0x5b   : > { %647 = vmatpush.bf16.msra.mxu1 %v503_v2  ;;  %v506_v11 = vsel %vm498_vm3, %v370_v9, 0 }
  0x5c   : > { %v358_v10 = vsub.f32 1.5, %v357_v8  ;;  %776 = vmatpush.bf16.msra.mxu2 %v506_v11 }
  0x5e   : > { %v359_v12 = vmul.f32 %v3089_v1, %v358_v10 }
  0x60   : > { %v363_v13 = vsel %vm362_vm12, %v3089_v1, %v359_v12 }
  0x61   : > { %v367_v14 = vmul.f32 %v363_v13, %v3715_v30 }
  0x63   : > { %v371_v15 = vpack.c.bf16 %v367_v14, %v367_v14 }
  0x65   : > { %v509_v16 = vsel %vm498_vm3, %v371_v15, 0 }
  0x66   : > { %905 = vmatpush.bf16.msra.mxu3 %v509_v16 }
  0xb6   : > { %409 = vxpose.xlu0.c.b16.start.end [1/1] (short) %v381_v26, 128 }
  0xe2   : > { %v393_v17 = vpop.trf.xlu0 }
  0xe3   : > { %2804 = vmatmul.msk.bf16.vlgmr.msra.gmra.mxu0 %vm425_vm13, %v393_v17  ;;  %2828 = vmatmul.msk.bf16.vlgmr.msra.gmra.mxu1 %vm425_vm13, %v393_v17 }
  0xe4   : > { %2852 = vmatmul.msk.bf16.vlgmr.msra.gmra.mxu2 %vm425_vm13, %v393_v17  ;;  %2876 = vmatmul.msk.bf16.vlgmr.msra.gmra.mxu3 %vm425_vm13, %v393_v17 }
  0xea   : > { %v394_v18 = vpop.trf.xlu0 }
  0xf2   : > { %v395_v19 = vpop.trf.xlu0 }
  0xf3   : > { %2805 = vmatmul.msk.bf16.gmra.mxu0 %vm425_vm13, %v395_v19  ;;  %2829 = vmatmul.msk.bf16.gmra.mxu1 %vm425_vm13, %v395_v19 }
  0xf4   : > { %2853 = vmatmul.msk.bf16.gmra.mxu2 %vm425_vm13, %v395_v19  ;;  %2877 = vmatmul.msk.bf16.gmra.mxu3 %vm425_vm13, %v395_v19 }
  0xfa   : > { %v396_v20 = vpop.trf.xlu0 }
 0x102   : > { %v397_v21 = vpop.trf.xlu0 }
 0x103   : > { %2806 = vmatmul.msk.bf16.gmra.mxu0 %vm425_vm13, %v397_v21  ;;  %2830 = vmatmul.msk.bf16.gmra.mxu1 %vm425_vm13, %v397_v21 }
 0x104   : > { %2854 = vmatmul.msk.bf16.gmra.mxu2 %vm425_vm13, %v397_v21  ;;  %2878 = vmatmul.msk.bf16.gmra.mxu3 %vm425_vm13, %v397_v21 }
 0x10a   : > { %v3738_v22 = vpop.trf.xlu0 }
 0x112   : > { %v399_v23 = vpop.trf.xlu0 }
 0x113   : > { %2807 = vmatmul.msk.bf16.gmra.mxu0 %vm425_vm13, %v399_v23  ;;  %2831 = vmatmul.msk.bf16.gmra.mxu1 %vm425_vm13, %v399_v23 }
 0x114   : > { %2855 = vmatmul.msk.bf16.gmra.mxu2 %vm425_vm13, %v399_v23  ;;  %2879 = vmatmul.msk.bf16.gmra.mxu3 %vm425_vm13, %v399_v23 }
 0x11a   : > { %v3747_v27 = vpop.trf.xlu0 }
 0x122   : > { %v401_v28 = vpop.trf.xlu0 }
 0x123   : > { %2808 = vmatmul.msk.bf16.gmra.mxu0 %vm425_vm13, %v401_v28  ;;  %2832 = vmatmul.msk.bf16.gmra.mxu1 %vm425_vm13, %v401_v28 }
 0x124   : > { %2856 = vmatmul.msk.bf16.gmra.mxu2 %vm425_vm13, %v401_v28  ;;  %2880 = vmatmul.msk.bf16.gmra.mxu3 %vm425_vm13, %v401_v28 }
 0x12a   : > { %v3753_v29 = vpop.trf.xlu0 }
 0x132   : > { %v403_v30 = vpop.trf.xlu0 }
 0x133   : > { %2809 = vmatmul.msk.bf16.gmra.mxu0 %vm425_vm13, %v403_v30  ;;  %2833 = vmatmul.msk.bf16.gmra.mxu1 %vm425_vm13, %v403_v30 }
 0x134   : > { %2857 = vmatmul.msk.bf16.gmra.mxu2 %vm425_vm13, %v403_v30  ;;  %2881 = vmatmul.msk.bf16.gmra.mxu3 %vm425_vm13, %v403_v30 }
 0x13a   : > { %v3759_v31 = vpop.trf.xlu0 }
 0x142   : > { %v405_v32 = vpop.trf.xlu0 }
 0x143   : > { %2810 = vmatmul.msk.bf16.gmra.mxu0 %vm425_vm13, %v405_v32  ;;  %2834 = vmatmul.msk.bf16.gmra.mxu1 %vm425_vm13, %v405_v32 }
 0x144   : > { %2858 = vmatmul.msk.bf16.gmra.mxu2 %vm425_vm13, %v405_v32  ;;  %2882 = vmatmul.msk.bf16.gmra.mxu3 %vm425_vm13, %v405_v32 }
 0x14a   : > { %v3765_v33 = vpop.trf.xlu0 }
 0x152   : > { %v407_v34 = vpop.trf.xlu0 }
 0x153   : > { %2811 = vmatmul.msk.bf16.gmra.mxu0 %vm425_vm13, %v407_v34  ;;  %2835 = vmatmul.msk.bf16.gmra.mxu1 %vm425_vm13, %v407_v34 }
 0x154   : > { %2859 = vmatmul.msk.bf16.gmra.mxu2 %vm425_vm13, %v407_v34  ;;  %2883 = vmatmul.msk.bf16.gmra.mxu3 %vm425_vm13, %v407_v34 }
 0x160   : > { %v3771_v35 = vpop.f32.mrf.mxu0  ;;  %v3773_v36 = vpop.f32.mrf.mxu1 }
 0x163   : > { %2812 = vmatmul.msk.bf16.gmra.mxu0 %vm425_vm13, %v394_v18  ;;  %2836 = vmatmul.msk.bf16.gmra.mxu1 %vm425_vm13, %v394_v18 }
 0x164   : > { %2860 = vmatmul.msk.bf16.gmra.mxu2 %vm425_vm13, %v394_v18  ;;  %2884 = vmatmul.msk.bf16.gmra.mxu3 %vm425_vm13, %v394_v18 }
 0x167   : > { %v3779_v37 = vpop.f32.mrf.mxu2  ;;  %v3781_v38 = vpop.f32.mrf.mxu3 }
 0x168   : > { %v3783_v39 = vpop.f32.mrf.mxu0  ;;  %v3785_v40 = vpop.f32.mrf.mxu1 }
 0x169   : > { %v1711_v45 = vmax.f32 %v3771_v35, %v3783_v39  ;;  %v1720_v46 = vmax.f32 %v3773_v36, %v3785_v40 }
 0x16f   : > { %v3787_v41 = vpop.f32.mrf.mxu2  ;;  %v3789_v42 = vpop.f32.mrf.mxu3 }
 0x170   : > { %v3791_v43 = vpop.f32.mrf.mxu0  ;;  %v3793_v44 = vpop.f32.mrf.mxu1 }
 0x171   : > { %5874 = vst [vmem:[#allocation11_spill] sm:$0xff] %v3791_v43  ;;  %v1712_v47 = vmax.f32 %v1711_v45, %v3791_v43  ;;  %v1721_v48 = vmax.f32 %v1720_v46, %v3793_v44 }
 0x172   : > { %5875 = vst [vmem:[#allocation12_spill] sm:$0xff] %v3793_v44 }
 0x173   : > { %2813 = vmatmul.msk.bf16.gmra.mxu0 %vm425_vm13, %v396_v20  ;;  %2837 = vmatmul.msk.bf16.gmra.mxu1 %vm425_vm13, %v396_v20 }
 0x174   : > { %2861 = vmatmul.msk.bf16.gmra.mxu2 %vm425_vm13, %v396_v20  ;;  %2885 = vmatmul.msk.bf16.gmra.mxu3 %vm425_vm13, %v396_v20 }
 0x177   : > { %v3805_v49 = vpop.f32.mrf.mxu2  ;;  %v3807_v50 = vpop.f32.mrf.mxu3 }
 0x178   : > { %v3809_v51 = vpop.f32.mrf.mxu0  ;;  %v3811_v52 = vpop.f32.mrf.mxu1 }
 0x179   : > { %5876 = vst [vmem:[#allocation13_spill] sm:$0xff] %v3809_v51  ;;  %v1713_v53 = vmax.f32 %v1712_v47, %v3809_v51  ;;  %v1722_v54 = vmax.f32 %v1721_v48, %v3811_v52 }
 0x17a   : > { %5877 = vst [vmem:[#allocation14_spill] sm:$0xff] %v3811_v52 }
 0x17b   : > { %v1714_v55 = vrot.slane %v1713_v53, 4  ;;  %v1723_v56 = vrot.slane %v1722_v54, 4 }
 0x17d   : > { %v1715_v57 = vmax.f32 %v1713_v53, %v1714_v55  ;;  %v1724_v58 = vmax.f32 %v1722_v54, %v1723_v56 }
 0x17f   : > { %v1716_v59 = vrot.slane %v1715_v57, 2  ;;  %v1725_v60 = vrot.slane %v1724_v58, 2  ;;  %v3815_v61 = vpop.f32.mrf.mxu2  ;;  %v3817_v62 = vpop.f32.mrf.mxu3 }
 0x180   : > { %v3819_v63 = vpop.f32.mrf.mxu0  ;;  %v3821_v0 = vpop.f32.mrf.mxu1 }
 0x181   : > { %v1717_v1 = vmax.f32 %v1715_v57, %v1716_v59  ;;  %v1726_v2 = vmax.f32 %v1724_v58, %v1725_v60 }
 0x183   : > { %v1718_v3 = vrot.slane %v1717_v1, 1  ;;  %v1727_v4 = vrot.slane %v1726_v2, 1  ;;  %2814 = vmatmul.msk.bf16.gmra.mxu0 %vm425_vm13, %v3738_v22  ;;  %2838 = vmatmul.msk.bf16.gmra.mxu1 %vm425_vm13, %v3738_v22 }
 0x184   : > { %2862 = vmatmul.msk.bf16.gmra.mxu2 %vm425_vm13, %v3738_v22  ;;  %2886 = vmatmul.msk.bf16.gmra.mxu3 %vm425_vm13, %v3738_v22 }
 0x185   : > { %v3831_v5 = vmax.f32 %v1717_v1, %v1718_v3  ;;  %v3833_v6 = vmax.f32 %v1726_v2, %v1727_v4 }
 0x187   : > { %5878 = vst [vmem:[#allocation15_spill] sm:$0xff] %v3831_v5  ;;  %v3839_v9 = vpop.f32.mrf.mxu2  ;;  %v3841_v10 = vpop.f32.mrf.mxu3 }
 0x188   : > { %5879 = vst [vmem:[#allocation16_spill] sm:$0xff] %v3833_v6  ;;  %v3847_v13 = vpop.f32.mrf.mxu0  ;;  %v3849_v14 = vpop.f32.mrf.mxu1 }
 0x189   : > { %v1747_v15 = vmax.f32 %v3819_v63, %v3847_v13  ;;  %v1756_v16 = vmax.f32 %v3821_v0, %v3849_v14 }
 0x18f   : > { %v3855_v17 = vpop.f32.mrf.mxu2  ;;  %v3857_v18 = vpop.f32.mrf.mxu3 }
 0x190   : > { %v1765_v19 = vmax.f32 %v3839_v9, %v3855_v17  ;;  %v1774_v20 = vmax.f32 %v3841_v10, %v3857_v18  ;;  %v3863_v21 = vpop.f32.mrf.mxu0  ;;  %v664_v22 = vpop.f32.mrf.mxu1 }
 0x191   : > { %v1748_v23 = vmax.f32 %v1747_v15, %v3863_v21  ;;  %v1757_v24 = vmax.f32 %v1756_v16, %v664_v22 }
 0x193   : > { %2815 = vmatmul.msk.bf16.gmra.mxu0 %vm425_vm13, %v3747_v27  ;;  %2839 = vmatmul.msk.bf16.gmra.mxu1 %vm425_vm13, %v3747_v27 }
 0x194   : > { %2863 = vmatmul.msk.bf16.gmra.mxu2 %vm425_vm13, %v3747_v27  ;;  %2887 = vmatmul.msk.bf16.gmra.mxu3 %vm425_vm13, %v3747_v27 }
 0x197   : > { %v3874_v25 = vpop.f32.mrf.mxu2  ;;  %v3876_v26 = vpop.f32.mrf.mxu3 }
 0x198   : > { %v1766_v28 = vmax.f32 %v1765_v19, %v3874_v25  ;;  %v1775_v30 = vmax.f32 %v1774_v20, %v3876_v26  ;;  %v537_v32 = vpop.f32.mrf.mxu0  ;;  %v666_v34 = vpop.f32.mrf.mxu1 }
 0x199   : > { %v1749_v45 = vmax.f32 %v1748_v23, %v537_v32  ;;  %v1758_v46 = vmax.f32 %v1757_v24, %v666_v34 }
 0x19b   : > { %v1750_v47 = vrot.slane %v1749_v45, 4  ;;  %v1759_v48 = vrot.slane %v1758_v46, 4 }
 0x19d   : > { %v1751_v53 = vmax.f32 %v1749_v45, %v1750_v47  ;;  %v1760_v54 = vmax.f32 %v1758_v46, %v1759_v48 }
 0x19f   : > { %v1752_v55 = vrot.slane %v1751_v53, 2  ;;  %v1761_v56 = vrot.slane %v1760_v54, 2  ;;  %v795_v57 = vpop.f32.mrf.mxu2  ;;  %v3880_v27 = vpop.f32.mrf.mxu3 }
 0x1a0   : > { %5880 = vst [vmem:[#allocation17_spill] sm:$0xff] %v3880_v27  ;;  %v1767_v58 = vmax.f32 %v1766_v28, %v795_v57  ;;  %v1776_v59 = vmax.f32 %v1775_v30, %v3880_v27  ;;  %v3883_v60 = vpop.f32.mrf.mxu0  ;;  %v3885_v1 = vpop.f32.mrf.mxu1 }
 0x1a1   : > { %v1753_v2 = vmax.f32 %v1751_v53, %v1752_v55  ;;  %v1762_v3 = vmax.f32 %v1760_v54, %v1761_v56 }
 0x1a2   : > { %v1768_v4 = vrot.slane %v1767_v58, 4  ;;  %v1777_v15 = vrot.slane %v1776_v59, 4 }
 0x1a3   : > { %v1754_v16 = vrot.slane %v1753_v2, 1  ;;  %v1763_v19 = vrot.slane %v1762_v3, 1  ;;  %2816 = vmatmul.msk.bf16.gmra.mxu0 %vm425_vm13, %v3753_v29  ;;  %2840 = vmatmul.msk.bf16.gmra.mxu1 %vm425_vm13, %v3753_v29 }
 0x1a4   : > { %v1769_v20 = vmax.f32 %v1767_v58, %v1768_v4  ;;  %v1778_v23 = vmax.f32 %v1776_v59, %v1777_v15  ;;  %2864 = vmatmul.msk.bf16.gmra.mxu2 %vm425_vm13, %v3753_v29  ;;  %2888 = vmatmul.msk.bf16.gmra.mxu3 %vm425_vm13, %v3753_v29 }
 0x1a5   : > { %v1755_v24 = vmax.f32 %v1753_v2, %v1754_v16  ;;  %v1764_v28 = vmax.f32 %v1762_v3, %v1763_v19 }
 0x1a6   : > { %v1770_v30 = vrot.slane %v1769_v20, 2  ;;  %v1779_v45 = vrot.slane %v1778_v23, 2 }
 0x1a7   : > { %v1883_v46 = vsub.f32 %v537_v32, %v1755_v24  ;;  %v1884_v47 = vsub.f32 %v666_v34, %v1764_v28  ;;  %v3895_v48 = vpop.f32.mrf.mxu2  ;;  %v3897_v53 = vpop.f32.mrf.mxu3  ;;  %v1880_v54 = vsub.f32 %v664_v22, %v1764_v28  ;;  %v1879_v55 = vsub.f32 %v3863_v21, %v1755_v24 }
 0x1a8   : > { %v1771_v56 = vmax.f32 %v1769_v20, %v1770_v30  ;;  %v1780_v58 = vmax.f32 %v1778_v23, %v1779_v45  ;;  %v3900_v59 = vpop.f32.mrf.mxu0  ;;  %v3902_v4 = vpop.f32.mrf.mxu1  ;;  %v1871_v29 = vsub.f32 %v3819_v63, %v1755_v24  ;;  %v1875_v2 = vsub.f32 %v3847_v13, %v1755_v24 }
 0x1a9   : > { %v1975_v3 = vmul.f32 1.442695, %v1883_v46  ;;  %v1977_v32 = vmul.f32 1.442695, %v1884_v47  ;;  %v1783_v34 = vmax.f32 %v3883_v60, %v3900_v59  ;;  %v1792_v22 = vmax.f32 %v3885_v1, %v3902_v4 }
 0x1aa   : > { %v1772_v15 = vrot.slane %v1771_v56, 1  ;;  %v1781_v21 = vrot.slane %v1780_v58, 1  ;;  %v1969_v16 = vmul.f32 1.442695, %v1880_v54  ;;  %v1967_v19 = vmul.f32 1.442695, %v1879_v55 }
 0x1ab   : > { %3090 = vpow2.f32 %v1975_v3  ;;  %v1951_v20 = vmul.f32 1.442695, %v1871_v29  ;;  %v1872_v23 = vsub.f32 %v3821_v0, %v1764_v28  ;;  %v1876_v13 = vsub.f32 %v3849_v14, %v1764_v28 }
 0x1ac   : > { %3092 = vpow2.f32 %v1977_v32  ;;  %v1773_v63 = vmax.f32 %v1771_v56, %v1772_v15  ;;  %v3911_v30 = vmax.f32 %v1780_v58, %v1781_v21  ;;  %v1959_v24 = vmul.f32 1.442695, %v1875_v2 }
 0x1ad   : > { %3094 = vpow2.f32 %v1969_v16  ;;  %v1953_v2 = vmul.f32 1.442695, %v1872_v23 }
 0x1ae   : > { %5881 = vst [vmem:[#allocation18_spill] sm:$0xff] %v3911_v30  ;;  %v1885_v45 = vsub.f32 %v795_v57, %v1773_v63  ;;  %3096 = vpow2.f32 %v1967_v19  ;;  %v1881_v0 = vsub.f32 %v3874_v25, %v1773_v63  ;;  %v1873_v56 = vsub.f32 %v3839_v9, %v1773_v63 }
 0x1af   : > { %v3916_v47 = vpop.f32.mrf.mxu2  ;;  %v3918_v54 = vpop.f32.mrf.mxu3  ;;  %3098 = vpow2.f32 %v1951_v20  ;;  %v1961_v9 = vmul.f32 1.442695, %v1876_v13  ;;  %v1877_v16 = vsub.f32 %v3855_v17, %v1773_v63 }
 0x1b0   : > { %v1979_v14 = vmul.f32 1.442695, %v1885_v45  ;;  %v1801_v57 = vmax.f32 %v3895_v48, %v3916_v47  ;;  %v1810_v28 = vmax.f32 %v3897_v53, %v3918_v54  ;;  %v3928_v58 = vpop.f32.mrf.mxu0  ;;  %v3930_v29 = vpop.f32.mrf.mxu1  ;;  %3100 = vpow2.f32 %v1959_v24 }
 0x1b1   : > { %v3932_v3 = vpop.eup %3090  ;;  %v1784_v25 = vmax.f32 %v1783_v34, %v3928_v58  ;;  %v1793_v32 = vmax.f32 %v1792_v22, %v3930_v29  ;;  %v1971_v21 = vmul.f32 1.442695, %v1881_v0  ;;  %v1955_v23 = vmul.f32 1.442695, %v1873_v56 }
 0x1b2   : > { %5882 = vst [vmem:[#allocation19_spill] sm:$0xff] %v3932_v3  ;;  %v3936_v15 = vpop.eup %3092  ;;  %3102 = vpow2.f32 %v1979_v14  ;;  %v1963_v63 = vmul.f32 1.442695, %v1877_v16 }
 0x1b3   : > { %5883 = vst [vmem:[#allocation20_spill] sm:$0xff] %v3936_v15  ;;  %v3939_v19 = vpop.eup %3094  ;;  %2817 = vmatmul.msk.bf16.gmra.mxu0 %vm425_vm13, %v3759_v31  ;;  %2841 = vmatmul.msk.bf16.gmra.mxu1 %vm425_vm13, %v3759_v31  ;;  %3104 = vpow2.f32 %v1953_v2 }
 0x1b4   : > { %5884 = vst [vmem:[#allocation21_spill] sm:$0xff] %v3939_v19  ;;  %v3945_v20 = vpop.eup %3096  ;;  %2865 = vmatmul.msk.bf16.gmra.mxu2 %vm425_vm13, %v3759_v31  ;;  %2889 = vmatmul.msk.bf16.gmra.mxu3 %vm425_vm13, %v3759_v31  ;;  %3106 = vpow2.f32 %v1961_v9 }
 0x1b5   : > { %5885 = vst [vmem:[#allocation22_spill] sm:$0xff] %v3945_v20  ;;  %v3953_v34 = vpop.eup %3098  ;;  %3108 = vpow2.f32 %v1971_v21 }
 0x1b6   : > { %5886 = vst [vmem:[#allocation23_spill] sm:$0xff] %v3953_v34  ;;  %v3957_v13 = vpop.eup %3100  ;;  %3110 = vpow2.f32 %v1955_v23  ;;  %v1855_v23 = vsub.f32 %v3771_v35, %v3831_v5 }
 0x1b7   : > { %5887 = vst [vmem:[#allocation24_spill] sm:$0xff] %v3957_v13  ;;  %v3959_v24 = vpop.f32.mrf.mxu2  ;;  %v3961_v45 = vpop.f32.mrf.mxu3  ;;  %v2083_v9 = vadd.f32 %v3957_v13, %v3953_v34  ;;  %3112 = vpow2.f32 %v1963_v63 }
 0x1b8   : > { %v1802_v31 = vmax.f32 %v1801_v57, %v3959_v24  ;;  %v1811_v0 = vmax.f32 %v1810_v28, %v3961_v45  ;;  %v3965_v14 = vpop.f32.mrf.mxu0  ;;  %v3967_v2 = vpop.f32.mrf.mxu1 }
 0x1b9   : > { %v3973_v21 = vpop.eup %3102  ;;  %v1785_v16 = vmax.f32 %v1784_v25, %v3965_v14  ;;  %v1794_v17 = vmax.f32 %v1793_v32, %v3967_v2  ;;  %v2084_v28 = vadd.f32 %v3945_v20, %v2083_v9 }
 0x1ba   : > { %5888 = vst [vmem:[#allocation25_spill] sm:$0xff] %v3973_v21  ;;  %v3977_v57 = vpop.eup %3104 }
 0x1bb   : > { %5889 = vst [vmem:[#allocation26_spill] sm:$0xff] %v3977_v57  ;;  %v3980_v22 = vpop.eup %3106  ;;  %v1786_v11 = vrot.slane %v1785_v16, 4  ;;  %v1795_v12 = vrot.slane %v1794_v17, 4  ;;  %v3985_v56 = vadd.f32 %v3932_v3, %v2084_v28  ;;  %v1859_v28 = vsub.f32 %v3783_v39, %v3831_v5 }
 0x1bc   : > { %5890 = vst [vmem:[#allocation27_spill] sm:$0xff] %v3980_v22  ;;  %v3982_v46 = vpop.eup %3108  ;;  %v2092_v25 = vadd.f32 %v3980_v22, %v3977_v57 }
 0x1bd   : > { %5891 = vst [vmem:[#allocation28_spill] sm:$0xff] %v3982_v46  ;;  %v1787_v9 = vmax.f32 %v1785_v16, %v1786_v11  ;;  %v1796_v63 = vmax.f32 %v1794_v17, %v1795_v12  ;;  %v3998_v55 = vpop.eup %3110  ;;  %v1919_v16 = vmul.f32 1.442695, %v1855_v23  ;;  %v1927_v3 = vmul.f32 1.442695, %v1859_v28 }
 0x1be   : > { %5892 = vst [vmem:[#allocation29_spill] sm:$0xff] %v3985_v56  ;;  %v2093_v7 = vadd.f32 %v3939_v19, %v2092_v25  ;;  %v4004_v57 = vpop.eup %3112 }
 0x1bf   : > { %5893 = vst [vmem:[#allocation30_spill] sm:$0xff] %v3998_v55  ;;  %v1788_v56 = vrot.slane %v1787_v9, 2  ;;  %v1797_v34 = vrot.slane %v1796_v63, 2  ;;  %v4000_v13 = vpop.f32.mrf.mxu2  ;;  %v4002_v32 = vpop.f32.mrf.mxu3  ;;  %v2101_v22 = vadd.f32 %v4004_v57, %v3998_v55  ;;  %3114 = vpow2.f32 %v1919_v16 }
 0x1c0   : > { %5894 = vst [vmem:[#allocation31_spill] sm:$0xff] %v4004_v57  ;;  %v1803_v35 = vmax.f32 %v1802_v31, %v4000_v13  ;;  %v1812_v11 = vmax.f32 %v1811_v0, %v4002_v32  ;;  %v4008_v12 = vpop.f32.mrf.mxu0  ;;  %v4010_v17 = vpop.f32.mrf.mxu1  ;;  %v4013_v39 = vadd.f32 %v3936_v15, %v2093_v7  ;;  %3116 = vpow2.f32 %v1927_v3 }
 0x1c1   : > { %v1789_v25 = vmax.f32 %v1787_v9, %v1788_v56  ;;  %v1798_v8 = vmax.f32 %v1796_v63, %v1797_v34  ;;  %v2102_v7 = vadd.f32 %v3982_v46, %v2101_v22 }
 0x1c2   : > { %5895 = vst [vmem:[#allocation32_spill] sm:$0xff] %v4013_v39  ;;  %v1804_v20 = vrot.slane %v1803_v35, 4  ;;  %v1813_v31 = vrot.slane %v1812_v11, 4 }
 0x1c3   : > { %v1790_v0 = vrot.slane %v1789_v25, 1  ;;  %v1799_v44 = vrot.slane %v1798_v8, 1  ;;  %2818 = vmatmul.msk.bf16.gmra.mxu0 %vm425_vm13, %v3765_v33  ;;  %2842 = vmatmul.msk.bf16.gmra.mxu1 %vm425_vm13, %v3765_v33  ;;  %v4031_v28 = vadd.f32 %v3973_v21, %v2102_v7 }
 0x1c4   : > { %v1805_v56 = vmax.f32 %v1803_v35, %v1804_v20  ;;  %v1814_v23 = vmax.f32 %v1812_v11, %v1813_v31  ;;  %2866 = vmatmul.msk.bf16.gmra.mxu2 %vm425_vm13, %v3765_v33  ;;  %2890 = vmatmul.msk.bf16.gmra.mxu3 %vm425_vm13, %v3765_v33 }
 0x1c5   : > { %v1791_v9 = vmax.f32 %v1789_v25, %v1790_v0  ;;  %v1800_v63 = vmax.f32 %v1798_v8, %v1799_v44  ;;  %5896 = vst [vmem:[#allocation33_spill] sm:$0xff] %v4031_v28 }
 0x1c6   : > { %v1806_v19 = vrot.slane %v1805_v56, 2  ;;  %v1815_v39 = vrot.slane %v1814_v23, 2 }
 0x1c7   : > { %v1899_v22 = vsub.f32 %v3965_v14, %v1791_v9  ;;  %v1900_v20 = vsub.f32 %v3967_v2, %v1800_v63  ;;  %v4035_v35 = vpop.f32.mrf.mxu2  ;;  %v4037_v11 = vpop.f32.mrf.mxu3  ;;  %v1896_v31 = vsub.f32 %v3930_v29, %v1800_v63  ;;  %v1895_v33 = vsub.f32 %v3928_v58, %v1791_v9 }
 0x1c8   : > { %v1807_v44 = vmax.f32 %v1805_v56, %v1806_v19  ;;  %v1816_v8 = vmax.f32 %v1814_v23, %v1815_v39  ;;  %v4041_v25 = vpop.f32.mrf.mxu0  ;;  %v4043_v16 = vpop.f32.mrf.mxu1  ;;  %v1887_v3 = vsub.f32 %v3883_v60, %v1791_v9  ;;  %v1891_v14 = vsub.f32 %v3900_v59, %v1791_v9 }
 0x1c9   : > { %v2007_v0 = vmul.f32 1.442695, %v1899_v22  ;;  %v2009_v2 = vmul.f32 1.442695, %v1900_v20  ;;  %v1819_v7 = vmax.f32 %v4008_v12, %v4041_v25  ;;  %v1828_v29 = vmax.f32 %v4010_v17, %v4043_v16  ;;  %v4051_v56 = vpop.eup %3114 }
 0x1ca   : > { %v1808_v34 = vrot.slane %v1807_v44, 1  ;;  %v1817_v58 = vrot.slane %v1816_v8, 1  ;;  %v2001_v19 = vmul.f32 1.442695, %v1896_v31  ;;  %v1999_v39 = vmul.f32 1.442695, %v1895_v33  ;;  %v4054_v28 = vpop.eup %3116  ;;  %v408_v33 = vpop.trf.xlu0 }
 0x1cb   : > { %5897 = vst [vmem:[#allocation34_spill] sm:$0xff] %v4051_v56  ;;  %3118 = vpow2.f32 %v2007_v0  ;;  %v1983_v23 = vmul.f32 1.442695, %v1887_v3  ;;  %v1888_v60 = vsub.f32 %v3885_v1, %v1800_v63  ;;  %v1892_v22 = vsub.f32 %v3902_v4, %v1800_v63 }
 0x1cc   : > { %5898 = vst [vmem:[#allocation35_spill] sm:$0xff] %v4054_v28  ;;  %3120 = vpow2.f32 %v2009_v2  ;;  %v1809_v59 = vmax.f32 %v1807_v44, %v1808_v34  ;;  %v4056_v9 = vmax.f32 %v1816_v8, %v1817_v58  ;;  %v1991_v20 = vmul.f32 1.442695, %v1891_v14 }
 0x1cd   : > { %3122 = vpow2.f32 %v2001_v19  ;;  %v1985_v3 = vmul.f32 1.442695, %v1888_v60 }
 0x1ce   : > { %v1901_v46 = vsub.f32 %v4000_v13, %v1809_v59  ;;  %v1902_v31 = vsub.f32 %v4002_v32, %v4056_v9  ;;  %3124 = vpow2.f32 %v1999_v39  ;;  %v1897_v34 = vsub.f32 %v3959_v24, %v1809_v59 }
 0x1cf   : > { %v4062_v0 = vpop.f32.mrf.mxu2  ;;  %v4064_v1 = vpop.f32.mrf.mxu3  ;;  %3126 = vpow2.f32 %v1983_v23  ;;  %v1898_v4 = vsub.f32 %v3961_v45, %v4056_v9  ;;  %v1889_v63 = vsub.f32 %v3895_v48, %v1809_v59  ;;  %v1993_v48 = vmul.f32 1.442695, %v1892_v22 }
 0x1d0   : > { %v2011_v44 = vmul.f32 1.442695, %v1901_v46  ;;  %v2013_v13 = vmul.f32 1.442695, %v1902_v31  ;;  %v1837_v32 = vmax.f32 %v4035_v35, %v4062_v0  ;;  %v1846_v8 = vmax.f32 %v4037_v11, %v4064_v1  ;;  %v4074_v14 = vpop.f32.mrf.mxu0  ;;  %v4076_v2 = vpop.f32.mrf.mxu1 }
 0x1d1   : > { %v4078_v58 = vpop.eup %3118  ;;  %v1820_v24 = vmax.f32 %v1819_v7, %v4074_v14  ;;  %v1829_v45 = vmax.f32 %v1828_v29, %v4076_v2  ;;  %3128 = vpow2.f32 %v1991_v20  ;;  %v2003_v19 = vmul.f32 1.442695, %v1897_v34 }
 0x1d2   : > { %5899 = vst [vmem:[#allocation36_spill] sm:$0xff] %v4078_v58  ;;  %v4082_v46 = vpop.eup %3120  ;;  %3130 = vpow2.f32 %v2011_v44  ;;  %v1893_v39 = vsub.f32 %v3916_v47, %v1809_v59  ;;  %v2005_v60 = vmul.f32 1.442695, %v1898_v4  ;;  %v1890_v7 = vsub.f32 %v3897_v53, %v4056_v9  ;;  %v417_v21 = vpop.trf.xlu0 }
 0x1d3   : > { %5900 = vst [vmem:[#allocation37_spill] sm:$0xff] %v4082_v46  ;;  %v4085_v23 = vpop.eup %3122  ;;  %3132 = vpow2.f32 %v2013_v13  ;;  %2819 = vmatmul.msk.bf16.gmra.mxu0 %vm425_vm13, %v408_v33  ;;  %2843 = vmatmul.msk.bf16.gmra.mxu1 %vm425_vm13, %v408_v33  ;;  %v1894_v29 = vsub.f32 %v3918_v54, %v4056_v9  ;;  %v1987_v53 = vmul.f32 1.442695, %v1889_v63  ;;  %v4113_v4 = vadd.f32 %v4054_v28, %v4051_v56 }
 0x1d4   : > { %5901 = vst [vmem:[#allocation38_spill] sm:$0xff] %v4085_v23  ;;  %v4093_v22 = vpop.eup %3124  ;;  %2867 = vmatmul.msk.bf16.gmra.mxu2 %vm425_vm13, %v408_v33  ;;  %2891 = vmatmul.msk.bf16.gmra.mxu3 %vm425_vm13, %v408_v33  ;;  %3134 = vpow2.f32 %v1985_v3  ;;  %v1995_v31 = vmul.f32 1.442695, %v1893_v39  ;;  %v1989_v3 = vmul.f32 1.442695, %v1890_v7  ;;  %v1729_v28 = vmax.f32 %v3779_v37, %v3787_v41 }
 0x1d5   : > { %5902 = vst [vmem:[#allocation39_spill] sm:$0xff] %v4093_v22  ;;  %v4099_v59 = vpop.eup %3126  ;;  %3136 = vpow2.f32 %v1993_v48 }
 0x1d6   : > { %5903 = vst [vmem:[#allocation40_spill] sm:$0xff] %v4099_v59  ;;  %3138 = vpow2.f32 %v2003_v19 }
 0x1d7   : > { %v4105_v9 = vpop.eup %3128  ;;  %v4107_v34 = vpop.f32.mrf.mxu2  ;;  %3140 = vpow2.f32 %v2005_v60  ;;  %5905 = vst [vmem:[#allocation42_spill] sm:$0xff] %v4113_v4 }
 0x1d8   : > { %5904 = vst [vmem:[#allocation41_spill] sm:$0xff] %v4105_v9  ;;  %v4109_v33 = vpop.f32.mrf.mxu3  ;;  %v4115_v44 = vpop.eup %3130  ;;  %v1838_v63 = vmax.f32 %v1837_v32, %v4107_v34  ;;  %v2119_v39 = vadd.f32 %v4105_v9, %v4099_v59  ;;  %3142 = vpow2.f32 %v1987_v53  ;;  %v1997_v32 = vmul.f32 1.442695, %v1894_v29 }
 0x1d9   : > { %5906 = vst [vmem:[#allocation43_spill] sm:$0xff] %v4115_v44  ;;  %v1847_v13 = vmax.f32 %v1846_v8, %v4109_v33  ;;  %v4119_v48 = vpop.f32.mrf.mxu0  ;;  %v4121_v19 = vpop.f32.mrf.mxu1  ;;  %3144 = vpow2.f32 %v1995_v31 }
 0x1da   : > { %v4127_v7 = vpop.eup %3132  ;;  %v1821_v54 = vmax.f32 %v1820_v24, %v4119_v48  ;;  %v1830_v47 = vmax.f32 %v1829_v45, %v4121_v19  ;;  %v2120_v8 = vadd.f32 %v4093_v22, %v2119_v39  ;;  %3146 = vpow2.f32 %v1989_v3 }
 0x1db   : > { %5907 = vst [vmem:[#allocation44_spill] sm:$0xff] %v4127_v7  ;;  %v4131_v20 = vpop.eup %3134  ;;  %3148 = vpow2.f32 %v1997_v32 }
 0x1dc   : > { %5908 = vst [vmem:[#allocation45_spill] sm:$0xff] %v4131_v20  ;;  %v4134_v4 = vpop.eup %3136  ;;  %v1822_v56 = vrot.slane %v1821_v54, 4  ;;  %v1831_v60 = vrot.slane %v1830_v47, 4  ;;  %v4141_v24 = vadd.f32 %v4078_v58, %v2120_v8 }
 0x1dd   : > { %5909 = vst [vmem:[#allocation46_spill] sm:$0xff] %v4134_v4  ;;  %v4138_v55 = vpop.eup %3138  ;;  %v2128_v45 = vadd.f32 %v4134_v4, %v4131_v20 }
 0x1de   : > { %5910 = vst [vmem:[#allocation47_spill] sm:$0xff] %v4138_v55  ;;  %v4147_v53 = vpop.eup %3140  ;;  %v1823_v31 = vmax.f32 %v1821_v54, %v1822_v56  ;;  %v1832_v39 = vmax.f32 %v1830_v47, %v1831_v60  ;;  %v1738_v56 = vmax.f32 %v3781_v38, %v3789_v42  ;;  %v1730_v47 = vmax.f32 %v1729_v28, %v3805_v49 }
 0x1df   : > { %5911 = vst [vmem:[#allocation48_spill] sm:$0xff] %v4141_v24  ;;  %v2129_v15 = vadd.f32 %v4085_v23, %v2128_v45  ;;  %v5913_v24 = vsub.f32 %v3876_v26, %v3911_v30  ;;  %v4157_v29 = vpop.eup %3142  ;;  %v4162_v60 = vpop.f32.mrf.mxu2  ;;  %v5917_v28 = vsub.f32 %v3841_v10, %v3911_v30 }
 0x1e0   : > { %5912 = vst [vmem:[#allocation49_spill] sm:$0xff] %v4147_v53  ;;  %v1824_v54 = vrot.slane %v1823_v31, 2  ;;  %v1833_v3 = vrot.slane %v1832_v39, 2  ;;  %v4164_v32 = vpop.f32.mrf.mxu3  ;;  %v4166_v45 = vpop.eup %3144  ;;  %v1839_v8 = vmax.f32 %v1838_v63, %v4162_v60  ;;  %v1739_v9 = vmax.f32 %v1738_v56, %v3807_v50 }
 0x1e1   : > { %v1973_v59 = vmul.f32 1.442695, %v5913_v24  ;;  %5914 = vst [vmem:[#allocation50_spill] sm:$0xff] %v4157_v29  ;;  %v1848_v26 = vmax.f32 %v1847_v13, %v4164_v32  ;;  %v4170_v24 = vpop.f32.mrf.mxu0  ;;  %v4172_v57 = vpop.f32.mrf.mxu1  ;;  %v4175_v20 = vadd.f32 %v4082_v46, %v2129_v15  ;;  %v1957_v4 = vmul.f32 1.442695, %v5917_v28 }
 0x1e2   : > { %5915 = vst [vmem:[#allocation51_spill] sm:$0xff] %v4166_v45  ;;  %v1825_v43 = vmax.f32 %v1823_v31, %v1824_v54  ;;  %v1834_v23 = vmax.f32 %v1832_v39, %v1833_v3  ;;  %v2137_v63 = vadd.f32 %v4166_v45, %v4157_v29  ;;  %v4183_v22 = vpop.eup %3146  ;;  %v4186_v13 = vmax.f32 %v1730_v47, %v3815_v61 }
 0x1e3   : > { %5916 = vst [vmem:[#allocation52_spill] sm:$0xff] %v4175_v20  ;;  %v1840_v58 = vrot.slane %v1839_v8, 4  ;;  %v1849_v27 = vrot.slane %v1848_v26, 4  ;;  %3150 = vpow2.f32 %v1973_v59  ;;  %v4188_v15 = vpop.eup %3148  ;;  %2820 = vmatmul.msk.bf16.gmra.mxu0 %vm425_vm13, %v417_v21  ;;  %2844 = vmatmul.msk.bf16.gmra.mxu1 %vm425_vm13, %v417_v21  ;;  %v4196_v56 = vmax.f32 %v1739_v9, %v3817_v62 }
 0x1e4   : > { %5918 = vst [vmem:[#allocation53_spill] sm:$0xff] %v4183_v22  ;;  %v1826_v20 = vrot.slane %v1825_v43, 1  ;;  %v1835_v10 = vrot.slane %v1834_v23, 1  ;;  %v2138_v31 = vadd.f32 %v4138_v55, %v2137_v63  ;;  %2868 = vmatmul.msk.bf16.gmra.mxu2 %vm425_vm13, %v417_v21  ;;  %2892 = vmatmul.msk.bf16.gmra.mxu3 %vm425_vm13, %v417_v21  ;;  %3152 = vpow2.f32 %v1957_v4 }
 0x1e5   : > { %5919 = vst [vmem:[#allocation54_spill] sm:$0xff] %v4188_v15  ;;  %v1841_v47 = vmax.f32 %v1839_v8, %v1840_v58  ;;  %v1850_v54 = vmax.f32 %v1848_v26, %v1849_v27  ;;  %v5921_v63 = vsub.f32 %v3857_v18, %v3911_v30  ;;  %v1027_v58 = vmax.f32 %v4170_v24, %v4172_v57 }
 0x1e6   : > { %v1827_v59 = vmax.f32 %v1825_v43, %v1826_v20  ;;  %v1836_v3 = vmax.f32 %v1834_v23, %v1835_v10  ;;  %v4201_v28 = vadd.f32 %v4115_v44, %v2138_v31  ;;  %v4210_v27 = vadd.f32 %v4188_v15, %v4183_v22 }
 0x1e7   : > { %v1965_v55 = vmul.f32 1.442695, %v5921_v63  ;;  %v1842_v39 = vrot.slane %v1841_v47, 2  ;;  %v1851_v29 = vrot.slane %v1850_v54, 2  ;;  %v4214_v23 = vpop.f32.mrf.mxu2  ;;  %v1860_v22 = vsub.f32 %v3785_v40, %v3833_v6 }
 0x1e8   : > { %5920 = vst [vmem:[#allocation55_spill] sm:$0xff] %v4201_v28  ;;  %v1915_v21 = vsub.f32 %v4119_v48, %v1827_v59  ;;  %v1916_v43 = vsub.f32 %v4121_v19, %v1836_v3  ;;  %v4216_v20 = vpop.f32.mrf.mxu3  ;;  %v1911_v18 = vsub.f32 %v4074_v14, %v1827_v59  ;;  %v1912_v9 = vsub.f32 %v4076_v2, %v1836_v3 }
 0x1e9   : > { %v4220_v4 = vpop.eup %3150  ;;  %v1843_v8 = vmax.f32 %v1841_v47, %v1842_v39  ;;  %v1852_v26 = vmax.f32 %v1850_v54, %v1851_v29  ;;  %v1028_v10 = vmax.f32 %v1027_v58, %v4214_v23  ;;  %v4223_v31 = vpop.f32.mrf.mxu0  ;;  %v1903_v48 = vsub.f32 %v4008_v12, %v1827_v59 }
 0x1ea   : > { %5922 = vst [vmem:[#allocation56_spill] sm:$0xff] %v4220_v4  ;;  %v4225_v63 = vpop.f32.mrf.mxu1  ;;  %v2039_v19 = vmul.f32 1.442695, %v1915_v21  ;;  %v2041_v28 = vmul.f32 1.442695, %v1916_v43  ;;  %3154 = vpow2.f32 %v1965_v55  ;;  %v4228_v44 = vpop.eup %3152  ;;  %v1907_v29 = vsub.f32 %v4041_v25, %v1827_v59 }
 0x1eb   : > { %v2031_v45 = vmul.f32 1.442695, %v1911_v18  ;;  %5923 = vst [vmem:[#allocation57_spill] sm:$0xff] %v4228_v44  ;;  %v1844_v14 = vrot.slane %v1843_v8, 1  ;;  %v1853_v2 = vrot.slane %v1852_v26, 1  ;;  %v1029_v46 = vmax.f32 %v1028_v10, %v4216_v20  ;;  %v418_v25 = vpop.trf.xlu0 }
 0x1ec   : > { %v2033_v39 = vmul.f32 1.442695, %v1912_v9  ;;  %3156 = vpow2.f32 %v2039_v19  ;;  %v2015_v47 = vmul.f32 1.442695, %v1903_v48  ;;  %v1904_v54 = vsub.f32 %v4010_v17, %v1836_v3 }
 0x1ed   : > { %3158 = vpow2.f32 %v2041_v28  ;;  %v1845_v58 = vmax.f32 %v1843_v8, %v1844_v14  ;;  %v1854_v12 = vmax.f32 %v1852_v26, %v1853_v2  ;;  %1030 = vmax.xlane.f32.xlu1 %v1029_v46  ;;  %v1908_v21 = vsub.f32 %v4043_v16, %v1836_v3 }
 0x1ee   : > { %v1032_v55 = vmax.f32 %v4223_v31, %v4225_v63  ;;  %3160 = vpow2.f32 %v2031_v45  ;;  %v2023_v43 = vmul.f32 1.442695, %v1907_v29  ;;  %v2017_v18 = vmul.f32 1.442695, %v1904_v54 }
 0x1ef   : > { %v1917_v9 = vsub.f32 %v4162_v60, %v1845_v58  ;;  %v1918_v10 = vsub.f32 %v4164_v32, %v1854_v12  ;;  %3162 = vpow2.f32 %v2033_v39  ;;  %v2025_v59 = vmul.f32 1.442695, %v1908_v21  ;;  %v4240_v28 = vpop.f32.mrf.mxu2 }
 0x1f0   : > { %v4238_v17 = vpop.eup %3154  ;;  %v4242_v46 = vpop.f32.mrf.mxu3  ;;  %3164 = vpow2.f32 %v2015_v47  ;;  %v1913_v16 = vsub.f32 %v4107_v34, %v1845_v58  ;;  %v1914_v45 = vsub.f32 %v4109_v33, %v1854_v12  ;;  %v1905_v3 = vsub.f32 %v4035_v35, %v1845_v58 }
 0x1f1   : > { %5924 = vst [vmem:[#allocation58_spill] sm:$0xff] %v4238_v17  ;;  %v2043_v8 = vmul.f32 1.442695, %v1917_v9  ;;  %v2045_v60 = vmul.f32 1.442695, %v1918_v10  ;;  %v4247_v26 = vpop.f32.mrf.mxu0  ;;  %v1033_v48 = vmax.f32 %v1032_v55, %v4240_v28  ;;  %3166 = vpow2.f32 %v2023_v43 }
 0x1f2   : > { %v4249_v32 = vpop.f32.mrf.mxu1  ;;  %v4252_v19 = vpop.eup %3156  ;;  %v1732_v14 = vrot.slane %v4186_v13, 4  ;;  %3168 = vpow2.f32 %v2017_v18  ;;  %v2035_v2 = vmul.f32 1.442695, %v1913_v16  ;;  %v2037_v33 = vmul.f32 1.442695, %v1914_v45 }
 0x1f3   : > { %5925 = vst [vmem:[#allocation59_spill] sm:$0xff] %v4252_v19  ;;  %v4255_v34 = vpop.eup %3158  ;;  %3170 = vpow2.f32 %v2043_v8  ;;  %v1034_v35 = vmax.f32 %v1033_v48, %v4242_v46  ;;  %v1909_v39 = vsub.f32 %v4062_v0, %v1845_v58  ;;  %2821 = vmatmul.msk.bf16.gmra.mxu0 %vm425_vm13, %v418_v25  ;;  %2845 = vmatmul.msk.bf16.gmra.mxu1 %vm425_vm13, %v418_v25  ;;  %v2019_v47 = vmul.f32 1.442695, %v1905_v3 }
 0x1f4   : > { %5926 = vst [vmem:[#allocation60_spill] sm:$0xff] %v4255_v34  ;;  %v4259_v29 = vpop.eup %3160  ;;  %3172 = vpow2.f32 %v2045_v60  ;;  %v1906_v54 = vsub.f32 %v4037_v11, %v1854_v12  ;;  %v1910_v21 = vsub.f32 %v4064_v1, %v1854_v12  ;;  %v1741_v43 = vrot.slane %v4196_v56, 4  ;;  %2869 = vmatmul.msk.bf16.gmra.mxu2 %vm425_vm13, %v418_v25  ;;  %2893 = vmatmul.msk.bf16.gmra.mxu3 %vm425_vm13, %v418_v25 }
 0x1f5   : > { %5927 = vst [vmem:[#allocation61_spill] sm:$0xff] %v4259_v29  ;;  %v4265_v55 = vpop.eup %3162  ;;  %3174 = vpow2.f32 %v2025_v59  ;;  %v2027_v58 = vmul.f32 1.442695, %v1909_v39  ;;  %v1733_v9 = vmax.f32 %v4186_v13, %v1732_v14  ;;  %1035 = vmax.xlane.f32.xlu1 %v1034_v35  ;;  %v1037_v10 = vmax.f32 %v4247_v26, %v4249_v32 }
 0x1f6   : > { %5928 = vst [vmem:[#allocation62_spill] sm:$0xff] %v4265_v55  ;;  %v4272_v18 = vpop.eup %3164  ;;  %3176 = vpow2.f32 %v2035_v2  ;;  %v2021_v1 = vmul.f32 1.442695, %v1906_v54  ;;  %v2029_v25 = vmul.f32 1.442695, %v1910_v21  ;;  %v2147_v59 = vadd.f32 %v4147_v53, %v4210_v27 }
 0x1f7   : > { %5929 = vst [vmem:[#allocation63_spill] sm:$0xff] %v4272_v18  ;;  %v4277_v12 = vpop.eup %3166  ;;  %3178 = vpow2.f32 %v2037_v33  ;;  %v4285_v45 = vpop.f32.mrf.mxu2  ;;  %v1742_v27 = vmax.f32 %v4196_v56, %v1741_v43  ;;  %v1734_v39 = vrot.slane %v1733_v9, 2  ;;  %v1856_v53 = vsub.f32 %v3773_v36, %v3833_v6 }
 0x1f8   : > { %5930 = vst [vmem:[#allocation64_spill] sm:$0xff] %v4277_v12  ;;  %v4283_v16 = vpop.eup %3168  ;;  %v4287_v13 = vpop.f32.mrf.mxu3  ;;  %v2155_v3 = vadd.f32 %v4277_v12, %v4272_v18  ;;  %3180 = vpow2.f32 %v2019_v47  ;;  %v1038_v14 = vmax.f32 %v1037_v10, %v4285_v45  ;;  %v4307_v47 = vadd.f32 %v4127_v7, %v2147_v59 }
 0x1f9   : > { %5931 = vst [vmem:[#allocation65_spill] sm:$0xff] %v4283_v16  ;;  %v4295_v48 = vpop.eup %3170  ;;  %v4299_v2 = vpop.f32.mrf.mxu0  ;;  %3182 = vpow2.f32 %v2027_v58  ;;  %v1735_v60 = vmax.f32 %v1733_v9, %v1734_v39 }
 0x1fa   : > { %5932 = vst [vmem:[#allocation66_spill] sm:$0xff] %v4295_v48  ;;  %v4301_v35 = vpop.f32.mrf.mxu1  ;;  %v4303_v33 = vpop.eup %3172  ;;  %v2156_v54 = vadd.f32 %v4259_v29, %v2155_v3  ;;  %3184 = vpow2.f32 %v2021_v1  ;;  %v1039_v56 = vmax.f32 %v1038_v14, %v4287_v13 }
 0x1fb   : > { %5933 = vst [vmem:[#allocation67_spill] sm:$0xff] %v4303_v33  ;;  %v4309_v21 = vpop.eup %3174  ;;  %3186 = vpow2.f32 %v2029_v25  ;;  %v2110_v25 = vadd.f32 %v4238_v17, %v4228_v44  ;;  %v419_v3 = vpop.trf.xlu0  ;;  %v1736_v17 = vrot.slane %v1735_v60, 1 }
 0x1fc   : > { %5934 = vst [vmem:[#allocation68_spill] sm:$0xff] %v4307_v47  ;;  %v4312_v43 = vpop.eup %3176  ;;  %v4315_v10 = vadd.f32 %v4252_v19, %v2156_v54  ;;  %v2164_v58 = vadd.f32 %v4309_v21, %v4283_v16  ;;  %1040 = vmax.xlane.f32.xlu2 %v1039_v56  ;;  %v1743_v54 = vrot.slane %v1742_v27, 2  ;;  %v1042_v56 = vmax.f32 %v4299_v2, %v4301_v35 }
 0x1fd   : > { %5935 = vst [vmem:[#allocation69_spill] sm:$0xff] %v4309_v21  ;;  %v4321_v1 = vpop.eup %3178  ;;  %v4337_v59 = vadd.f32 %v4220_v4, %v2110_v25 }
 0x1fe   : > { %5936 = vst [vmem:[#allocation70_spill] sm:$0xff] %v4312_v43  ;;  %v4327_v14 = vpop.eup %3180  ;;  %v2165_v8 = vadd.f32 %v4265_v55, %v2164_v58  ;;  %v1744_v4 = vmax.f32 %v1742_v27, %v1743_v54 }
 0x1ff   : > { %5937 = vst [vmem:[#allocation71_spill] sm:$0xff] %v4315_v10  ;;  %v4332_v0 = vpop.eup %3182  ;;  %v4343_v9 = vpop.f32.mrf.mxu2 }
 0x200   : > { %5938 = vst [vmem:[#allocation72_spill] sm:$0xff] %v4321_v1  ;;  %v4341_v47 = vpop.eup %3184  ;;  %v4345_v39 = vpop.f32.mrf.mxu3  ;;  %v4348_v58 = vadd.f32 %v4255_v34, %v2165_v8  ;;  %v2173_v11 = vadd.f32 %v4332_v0, %v4327_v14  ;;  %v1043_v44 = vmax.f32 %v1042_v56, %v4343_v9  ;;  %v1745_v27 = vrot.slane %v1744_v4, 1 }
 0x201   : > { %5939 = vst [vmem:[#allocation73_spill] sm:$0xff] %v4327_v14  ;;  %v4354_v25 = vpop.eup %3186 }
 0x202   : > { %5940 = vst [vmem:[#allocation74_spill] sm:$0xff] %v4332_v0  ;;  %v4358_v10 = vpop.f32.mrf.mxu1  ;;  %v2174_v15 = vadd.f32 %v4312_v43, %v2173_v11  ;;  %v1044_v8 = vmax.f32 %v1043_v44, %v4345_v39  ;;  %v1737_v11 = vmax.f32 %v1735_v60, %v1736_v17  ;;  %v1746_v60 = vmax.f32 %v1744_v4, %v1745_v27 }
 0x203   : > { %5941 = vst [vmem:[#allocation75_spill] sm:$0xff] %v4337_v59  ;;  %v4356_v59 = vpop.f32.mrf.mxu0  ;;  %2822 = vmatmul.msk.bf16.gmra.mxu0 %vm425_vm13, %v419_v3  ;;  %2846 = vmatmul.msk.bf16.gmra.mxu1 %vm425_vm13, %v419_v3  ;;  %v420_v27 = vpop.trf.xlu0 }
 0x204   : > { %5942 = vst [vmem:[#allocation76_spill] sm:$0xff] %v4341_v47  ;;  %v4372_v56 = vadd.f32 %v4295_v48, %v2174_v15  ;;  %2870 = vmatmul.msk.bf16.gmra.mxu2 %vm425_vm13, %v419_v3  ;;  %2894 = vmatmul.msk.bf16.gmra.mxu3 %vm425_vm13, %v419_v3  ;;  %v1047_v54 = vmax.f32 %v4356_v59, %v4358_v10  ;;  %v1921_v15 = vmul.f32 1.442695, %v1856_v53 }
 0x205   : > { %5943 = vst [vmem:[#allocation77_spill] sm:$0xff] %v4348_v58  ;;  %v2182_v58 = vadd.f32 %v4354_v25, %v4341_v47  ;;  %1045 = vmax.xlane.f32.xlu2 %v1044_v8  ;;  %v1869_v40 = vsub.f32 %v3815_v61, %v1737_v11  ;;  %v1857_v47 = vsub.f32 %v3779_v37, %v1737_v11 }
 0x206   : > { %5944 = vst [vmem:[#allocation78_spill] sm:$0xff] %v4354_v25  ;;  %3188 = vpow2.f32 %v1921_v15  ;;  %v1861_v25 = vsub.f32 %v3787_v41, %v1737_v11  ;;  %v1862_v37 = vsub.f32 %v3789_v42, %v1746_v60 }
 0x207   : > { %5945 = vst [vmem:[#allocation79_spill] sm:$0xff] %v4372_v56  ;;  %v2183_v44 = vadd.f32 %v4321_v1, %v2182_v58  ;;  %v4384_v56 = vpop.f32.mrf.mxu2  ;;  %v1947_v41 = vmul.f32 1.442695, %v1869_v40 }
 0x208   : > { %5947 = vst [vmem:[#allocation81_spill] sm:$0xff] %v4384_v56  ;;  %v4386_v7 = vpop.f32.mrf.mxu3  ;;  %v1048_v3 = vmax.f32 %v1047_v54, %v4384_v56  ;;  %v1866_v54 = vsub.f32 %v3807_v50, %v1746_v60 }
 0x209   : > { %v4380_v36 = vadd.f32 %v4303_v33, %v2183_v44  ;;  %5948 = vst [vmem:[#allocation82_spill] sm:$0xff] %v4386_v7  ;;  %v1929_v44 = vmul.f32 1.442695, %v1860_v22  ;;  %v1858_v22 = vsub.f32 %v3781_v38, %v1746_v60 }
 0x20a   : > { %v4391_v17 = vpop.f32.mrf.mxu1  ;;  %v1049_v8 = vmax.f32 %v1048_v3, %v4386_v7  ;;  %v1923_v3 = vmul.f32 1.442695, %v1857_v47 }
 0x20b   : > { %5946 = vst [vmem:[#allocation80_spill] sm:$0xff] %v4380_v36  ;;  %v4389_v58 = vpop.f32.mrf.mxu0  ;;  %v1865_v36 = vsub.f32 %v3805_v49, %v1737_v11  ;;  %3190 = vpow2.f32 %v1929_v44  ;;  %v1870_v49 = vsub.f32 %v3817_v62, %v1746_v60  ;;  %v1925_v38 = vmul.f32 1.442695, %v1858_v22 }
 0x20c   : > { %5949 = vst [vmem:[#allocation83_spill] sm:$0xff] %v4389_v58  ;;  %1050 = vmax.xlane.f32.xlu1 %v1049_v8  ;;  %v1052_v4 = vmax.f32 %v4389_v58, %v4391_v17  ;;  %v4408_v50 = vpop.eup %3188  ;;  %v1941_v62 = vmul.f32 1.442695, %v1866_v54  ;;  %v1933_v44 = vmul.f32 1.442695, %v1862_v37 }
 0x20d   : > { %5950 = vst [vmem:[#allocation84_spill] sm:$0xff] %v4391_v17  ;;  %v1939_v53 = vmul.f32 1.442695, %v1865_v36  ;;  %v1931_v36 = vmul.f32 1.442695, %v1861_v25 }
 0x20e   : > { %5953 = vst [vmem:[#allocation87_spill] sm:$0xff] %v4408_v50  ;;  %v1949_v42 = vmul.f32 1.442695, %v1870_v49 }
 0x20f   : > { %v4403_v15 = vpop.f32.mrf.mxu2  ;;  %3192 = vpow2.f32 %v1939_v53 }
 0x210   : > { %5951 = vst [vmem:[#allocation85_spill] sm:$0xff] %v4403_v15  ;;  %v4405_v61 = vpop.f32.mrf.mxu3  ;;  %v1053_v47 = vmax.f32 %v1052_v4, %v4403_v15  ;;  %3194 = vpow2.f32 %v1923_v3 }
 0x211   : > { %5952 = vst [vmem:[#allocation86_spill] sm:$0xff] %v4405_v61  ;;  %3196 = vpow2.f32 %v1931_v36  ;;  %v4415_v14 = vpop.eup %3190 }
 0x212   : > { %v4412_v8 = vpop.f32.mrf.mxu1  ;;  %5954 = vst [vmem:[#allocation88_spill] sm:$0xff] %v4415_v14  ;;  %v1054_v25 = vmax.f32 %v1053_v47, %v4405_v61  ;;  %3198 = vpow2.f32 %v1925_v38  ;;  %v4422_v60 = vadd.f32 %v4415_v14, %v4408_v50  ;;  %v421_v14 = vpop.trf.xlu0 }
 0x213   : > { %v4410_v11 = vpop.f32.mrf.mxu0  ;;  %2823 = vmatmul.msk.bf16.gmra.mxu0 %vm425_vm13, %v420_v27  ;;  %2847 = vmatmul.msk.bf16.gmra.mxu1 %vm425_vm13, %v420_v27  ;;  %3200 = vpow2.f32 %v1933_v44 }
 0x214   : > { %5955 = vst [vmem:[#allocation89_spill] sm:$0xff] %v4422_v60  ;;  %3202 = vpow2.f32 %v1947_v41  ;;  %2871 = vmatmul.msk.bf16.gmra.mxu2 %vm425_vm13, %v420_v27  ;;  %2895 = vmatmul.msk.bf16.gmra.mxu3 %vm425_vm13, %v420_v27  ;;  %v1057_v54 = vmax.f32 %v4410_v11, %v4412_v8 }
 0x215   : > { %v4426_v40 = vpop.eup %3192  ;;  %1055 = vmax.xlane.f32.xlu2 %v1054_v25  ;;  %3204 = vpow2.f32 %v1941_v62 }
 0x216   : > { %5956 = vst [vmem:[#allocation90_spill] sm:$0xff] %v4426_v40  ;;  %v4428_v53 = vpop.eup %3194  ;;  %3206 = vpow2.f32 %v1949_v42 }
 0x217   : > { %5957 = vst [vmem:[#allocation91_spill] sm:$0xff] %v4428_v53  ;;  %v4432_v4 = vpop.eup %3196  ;;  %v4434_v3 = vpop.f32.mrf.mxu2 }
 0x218   : > { %5958 = vst [vmem:[#allocation92_spill] sm:$0xff] %v4432_v4  ;;  %v4436_v22 = vpop.f32.mrf.mxu3  ;;  %v4438_v49 = vpop.eup %3198  ;;  %v1058_v27 = vmax.f32 %v1057_v54, %v4434_v3  ;;  %v2065_v41 = vadd.f32 %v4432_v4, %v4428_v53 }
 0x219   : > { %5959 = vst [vmem:[#allocation93_spill] sm:$0xff] %v4434_v3  ;;  %v4447_v47 = vpop.eup %3200 }
 0x21a   : > { %5960 = vst [vmem:[#allocation94_spill] sm:$0xff] %v4436_v22  ;;  %v4443_v37 = vpop.f32.mrf.mxu1  ;;  %v4449_v38 = vpop.eup %3202  ;;  %v1059_v62 = vmax.f32 %v1058_v27, %v4436_v22  ;;  %v2066_v44 = vadd.f32 %v4426_v40, %v2065_v41  ;;  %v2074_v25 = vadd.f32 %v4447_v47, %v4438_v49 }
 0x21b   : > { %5961 = vst [vmem:[#allocation95_spill] sm:$0xff] %v4438_v49  ;;  %v4441_v36 = vpop.f32.mrf.mxu0  ;;  %v4455_v42 = vpop.eup %3204 }
 0x21c   : > { %5962 = vst [vmem:[#allocation96_spill] sm:$0xff] %v4441_v36  ;;  %1060 = vmax.xlane.f32.xlu1 %v1059_v62  ;;  %v4458_v54 = vadd.f32 %v4449_v38, %v2066_v44  ;;  %v2075_v60 = vadd.f32 %v4455_v42, %v2074_v25  ;;  %v4461_v4 = vpop.eup %3206  ;;  %v1062_v53 = vmax.f32 %v4441_v36, %v4443_v37 }
 0x21d   : > { %5963 = vst [vmem:[#allocation97_spill] sm:$0xff] %v4443_v37 }
 0x21e   : > { %5964 = vst [vmem:[#allocation98_spill] sm:$0xff] %v4447_v47  ;;  %v4466_v27 = vadd.f32 %v4461_v4, %v2075_v60 }
 0x21f   : > { %5965 = vst [vmem:[#allocation99_spill] sm:$0xff] %v4449_v38  ;;  %v4468_v41 = vpop.f32.mrf.mxu2 }
 0x220   : > { %5966 = vst [vmem:[#allocation100_spill] sm:$0xff] %v4455_v42  ;;  %v4470_v47 = vpop.f32.mrf.mxu3  ;;  %v1063_v44 = vmax.f32 %v1062_v53, %v4468_v41 }
 0x221   : > { %5967 = vst [vmem:[#allocation101_spill] sm:$0xff] %v4458_v54 }
 0x222   : > { %5968 = vst [vmem:[#allocation102_spill] sm:$0xff] %v4461_v4  ;;  %v4474_v62 = vpop.f32.mrf.mxu1  ;;  %v1064_v25 = vmax.f32 %v1063_v44, %v4470_v47 }
 0x223   : > { %5969 = vst [vmem:[#allocation103_spill] sm:$0xff] %v4466_v27  ;;  %v4472_v49 = vpop.f32.mrf.mxu0  ;;  %2824 = vmatmul.msk.bf16.gmra.mxu0 %vm425_vm13, %v421_v14  ;;  %2848 = vmatmul.msk.bf16.gmra.mxu1 %vm425_vm13, %v421_v14 }
 0x224   : > { %5970 = vst [vmem:[#allocation104_spill] sm:$0xff] %v4468_v41  ;;  %2872 = vmatmul.msk.bf16.gmra.mxu2 %vm425_vm13, %v421_v14  ;;  %2896 = vmatmul.msk.bf16.gmra.mxu3 %vm425_vm13, %v421_v14  ;;  %v1067_v60 = vmax.f32 %v4472_v49, %v4474_v62 }
 0x225   : > { %5971 = vst [vmem:[#allocation105_spill] sm:$0xff] %v4470_v47  ;;  %1065 = vmax.xlane.f32.xlu2 %v1064_v25  ;;  %v422_v25 = vpop.trf.xlu0 }
 0x227   : > { %v4484_v27 = vpop.f32.mrf.mxu2 }
 0x228   : > { %v4486_v54 = vpop.f32.mrf.mxu3  ;;  %v1068_v53 = vmax.f32 %v1067_v60, %v4484_v27 }
 0x22a   : > { %v4491_v44 = vpop.f32.mrf.mxu1  ;;  %v1069_v42 = vmax.f32 %v1068_v53, %v4486_v54 }
 0x22b   : > { %v4489_v4 = vpop.f32.mrf.mxu0 }
 0x22c   : > { %1070 = vmax.xlane.f32.xlu1 %v1069_v42  ;;  %v1072_v14 = vmax.f32 %v4489_v4, %v4491_v44 }
 0x22f   : > { %v4496_v38 = vpop.f32.mrf.mxu2 }
 0x230   : > { %v4498_v40 = vpop.f32.mrf.mxu3  ;;  %v1073_v60 = vmax.f32 %v1072_v14, %v4496_v38 }
 0x232   : > { %v4502_v0 = vpop.f32.mrf.mxu1  ;;  %v1074_v30 = vmax.f32 %v1073_v60, %v4498_v40 }
 0x233   : > { %v4500_v50 = vpop.f32.mrf.mxu0  ;;  %2825 = vmatmul.msk.bf16.gmra.mxu0 %vm425_vm13, %v422_v25  ;;  %2849 = vmatmul.msk.bf16.gmra.mxu1 %vm425_vm13, %v422_v25 }
 0x234   : > { %2873 = vmatmul.msk.bf16.gmra.mxu2 %vm425_vm13, %v422_v25  ;;  %2897 = vmatmul.msk.bf16.gmra.mxu3 %vm425_vm13, %v422_v25  ;;  %v1077_v42 = vmax.f32 %v4500_v50, %v4502_v0 }
 0x235   : > { %1075 = vmax.xlane.f32.xlu2 %v1074_v30  ;;  %v423_v30 = vpop.trf.xlu0 }
 0x237   : > { %v4512_v53 = vpop.f32.mrf.mxu2 }
 0x238   : > { %v4514_v1 = vpop.f32.mrf.mxu3  ;;  %v1078_v14 = vmax.f32 %v1077_v42, %v4512_v53 }
 0x23a   : > { %v4519_v60 = vpop.f32.mrf.mxu1  ;;  %v1079_v6 = vmax.f32 %v1078_v14, %v4514_v1 }
 0x23b   : > { %v4517_v33 = vpop.f32.mrf.mxu0 }
 0x23c   : > { %1080 = vmax.xlane.f32.xlu1 %v1079_v6  ;;  %v1082_v25 = vmax.f32 %v4517_v33, %v4519_v60 }
 0x23f   : > { %v4524_v52 = vpop.f32.mrf.mxu2 }
 0x240   : > { %v4526_v43 = vpop.f32.mrf.mxu3  ;;  %v1083_v42 = vmax.f32 %v1082_v25, %v4524_v52 }
 0x242   : > { %v4530_v5 = vpop.f32.mrf.mxu1  ;;  %v1084_v51 = vmax.f32 %v1083_v42, %v4526_v43 }
 0x243   : > { %v4528_v48 = vpop.f32.mrf.mxu0  ;;  %2826 = vmatmul.msk.bf16.gmra.mxu0 %vm425_vm13, %v423_v30  ;;  %2850 = vmatmul.msk.bf16.gmra.mxu1 %vm425_vm13, %v423_v30 }
 0x244   : > { %2874 = vmatmul.msk.bf16.gmra.mxu2 %vm425_vm13, %v423_v30  ;;  %2898 = vmatmul.msk.bf16.gmra.mxu3 %vm425_vm13, %v423_v30  ;;  %v1087_v6 = vmax.f32 %v4528_v48, %v4530_v5 }
 0x245   : > { %1085 = vmax.xlane.f32.xlu2 %v1084_v51  ;;  %v424_v51 = vpop.trf.xlu0 }
 0x247   : > { %v4540_v14 = vpop.f32.mrf.mxu2 }
 0x248   : > { %v4542_v16 = vpop.f32.mrf.mxu3  ;;  %v1088_v25 = vmax.f32 %v1087_v6, %v4540_v14 }
 0x24a   : > { %v4547_v42 = vpop.f32.mrf.mxu1  ;;  %v1089_v18 = vmax.f32 %v1088_v25, %v4542_v16 }
 0x24b   : > { %v4545_v21 = vpop.f32.mrf.mxu0 }
 0x24c   : > { %1090 = vmax.xlane.f32.xlu1 %v1089_v18  ;;  %v1092_v30 = vmax.f32 %v4545_v21, %v4547_v42 }
 0x24f   : > { %v4552_v12 = vpop.f32.mrf.mxu2 }
 0x250   : > { %v4554_v55 = vpop.f32.mrf.mxu3  ;;  %v1093_v6 = vmax.f32 %v1092_v30, %v4552_v12 }
 0x252   : > { %v4558_v29 = vpop.f32.mrf.mxu1  ;;  %v1094_v19 = vmax.f32 %v1093_v6, %v4554_v55 }
 0x253   : > { %v4556_v34 = vpop.f32.mrf.mxu0  ;;  %2827 = vmatmul.msk.bf16.gmra.mxu0 %vm425_vm13, %v424_v51  ;;  %2851 = vmatmul.msk.bf16.gmra.mxu1 %vm425_vm13, %v424_v51 }
 0x254   : > { %2875 = vmatmul.msk.bf16.gmra.mxu2 %vm425_vm13, %v424_v51  ;;  %2899 = vmatmul.msk.bf16.gmra.mxu3 %vm425_vm13, %v424_v51  ;;  %v1097_v18 = vmax.f32 %v4556_v34, %v4558_v29 }
 0x255   : > { %1095 = vmax.xlane.f32.xlu2 %v1094_v19 }
 0x257   : > { %v4568_v25 = vpop.f32.mrf.mxu2 }
 0x258   : > { %v4570_v61 = vpop.f32.mrf.mxu3  ;;  %v1098_v30 = vmax.f32 %v1097_v18, %v4568_v25 }
 0x25a   : > { %v4575_v6 = vpop.f32.mrf.mxu1  ;;  %v1099_v47 = vmax.f32 %v1098_v30, %v4570_v61 }
 0x25b   : > { %v4573_v15 = vpop.f32.mrf.mxu0  ;;  %5973 = vst [vmem:[#allocation107_spill] sm:$0xff] %v4575_v6 }
 0x25c   : > { %5972 = vst [vmem:[#allocation106_spill] sm:$0xff] %v4573_v15  ;;  %1100 = vmax.xlane.f32.xlu1 %v1099_v47  ;;  %v1102_v51 = vmax.f32 %v4573_v15, %v4575_v6 }
 0x25f   : > { %v4580_v19 = vpop.f32.mrf.mxu2 }
 0x260   : > { %v4582_v17 = vpop.f32.mrf.mxu3  ;;  %v1031_v58 = vpop.xlane.xlu1 %1030  ;;  %v1103_v7 = vmax.f32 %v1102_v51, %v4580_v19 }
 0x261   : > { %v1107_v18 = vsub.f32 %v4170_v24, %v1031_v58  ;;  %v1108_v56 = vsub.f32 %v4172_v57, %v1031_v58  ;;  %v1109_v30 = vsub.f32 %v4214_v23, %v1031_v58  ;;  %v1110_v6 = vsub.f32 %v4216_v20, %v1031_v58 }
 0x262   : > { %v4588_v22 = vpop.f32.mrf.mxu1  ;;  %v1104_v47 = vmax.f32 %v1103_v7, %v4582_v17 }
 0x263   : > { %v4584_v41 = vpop.f32.mrf.mxu0  ;;  %5975 = vst [vmem:[#allocation109_spill] sm:$0xff] %v4588_v22  ;;  %v1171_v15 = vmul.f32 1.442695, %v1107_v18  ;;  %v1173_v37 = vmul.f32 1.442695, %v1108_v56 }
 0x264   : > { %5974 = vst [vmem:[#allocation108_spill] sm:$0xff] %v4584_v41  ;;  %1105 = vmax.xlane.f32.xlu2 %v1104_v47  ;;  %v1175_v36 = vmul.f32 1.442695, %v1109_v30  ;;  %v1177_v24 = vmul.f32 1.442695, %v1110_v6 }
 0x265   : > { %3208 = vpow2.f32 %v1171_v15 }
 0x266   : > { %3210 = vpow2.f32 %v1173_v37 }
 0x267   : > { %v4594_v3 = vpop.f32.mrf.mxu2  ;;  %3212 = vpow2.f32 %v1175_v36 }
 0x268   : > { %5976 = vst [vmem:[#allocation110_spill] sm:$0xff] %v4594_v3  ;;  %v4596_v41 = vpop.f32.mrf.mxu3  ;;  %v1036_v51 = vpop.xlane.xlu1 %1035  ;;  %3214 = vpow2.f32 %v1177_v24 }
 0x269   : > { %5977 = vst [vmem:[#allocation111_spill] sm:$0xff] %v4596_v41  ;;  %v1111_v57 = vsub.f32 %v4223_v31, %v1036_v51  ;;  %v1112_v7 = vsub.f32 %v4225_v63, %v1036_v51  ;;  %v1113_v23 = vsub.f32 %v4240_v28, %v1036_v51  ;;  %v1114_v20 = vsub.f32 %v4242_v46, %v1036_v51 }
 0x26a   : > { %v4604_v58 = vpop.f32.mrf.mxu1 }
 0x26b   : > { %v4598_v22 = vpop.f32.mrf.mxu0  ;;  %5979 = vst [vmem:[#allocation113_spill] sm:$0xff] %v4604_v58  ;;  %v1179_v56 = vmul.f32 1.442695, %v1111_v57  ;;  %v1181_v18 = vmul.f32 1.442695, %v1112_v7  ;;  %v4606_v6 = vpop.eup %3208 }
 0x26c   : > { %5978 = vst [vmem:[#allocation112_spill] sm:$0xff] %v4598_v22  ;;  %v1183_v47 = vmul.f32 1.442695, %v1113_v23  ;;  %v1185_v15 = vmul.f32 1.442695, %v1114_v20  ;;  %v4612_v28 = vpop.eup %3210 }
 0x26d   : > { %3216 = vpow2.f32 %v1179_v56  ;;  %5982 = vst [vmem:[#allocation116_spill] sm:$0xff] %v4612_v28  ;;  %v4616_v36 = vpop.eup %3212 }
 0x26e   : > { %3218 = vpow2.f32 %v1181_v18  ;;  %5984 = vst [vmem:[#allocation118_spill] sm:$0xff] %v4616_v36  ;;  %v4621_v51 = vpop.eup %3214 }
 0x26f   : > { %3220 = vpow2.f32 %v1183_v47  ;;  %v4608_v31 = vpop.f32.mrf.mxu2  ;;  %v1041_v46 = vpop.xlane.xlu2 %1040  ;;  %5986 = vst [vmem:[#allocation120_spill] sm:$0xff] %v4621_v51 }
 0x270   : > { %5980 = vst [vmem:[#allocation114_spill] sm:$0xff] %v4608_v31  ;;  %v4610_v63 = vpop.f32.mrf.mxu3  ;;  %3222 = vpow2.f32 %v1185_v15  ;;  %v1115_v30 = vsub.f32 %v4247_v26, %v1041_v46  ;;  %v1116_v57 = vsub.f32 %v4249_v32, %v1041_v46  ;;  %v1117_v23 = vsub.f32 %v4285_v45, %v1041_v46 }
 0x271   : > { %5981 = vst [vmem:[#allocation115_spill] sm:$0xff] %v4610_v63  ;;  %v1118_v56 = vsub.f32 %v4287_v13, %v1041_v46 }
 0x272   : > { %v4619_v24 = vpop.f32.mrf.mxu1  ;;  %v1187_v18 = vmul.f32 1.442695, %v1115_v30  ;;  %v1189_v32 = vmul.f32 1.442695, %v1116_v57  ;;  %v1191_v45 = vmul.f32 1.442695, %v1117_v23 }
 0x273   : > { %v4614_v37 = vpop.f32.mrf.mxu0  ;;  %5985 = vst [vmem:[#allocation119_spill] sm:$0xff] %v4619_v24  ;;  %v4624_v7 = vpop.eup %3216  ;;  %v1193_v46 = vmul.f32 1.442695, %v1118_v56 }
 0x274   : > { %5983 = vst [vmem:[#allocation117_spill] sm:$0xff] %v4614_v37  ;;  %v4627_v20 = vpop.eup %3218  ;;  %3224 = vpow2.f32 %v1187_v18 }
 0x275   : > { %5987 = vst [vmem:[#allocation121_spill] sm:$0xff] %v4624_v7  ;;  %v4632_v15 = vpop.eup %3220  ;;  %3226 = vpow2.f32 %v1189_v32 }
 0x276   : > { %5988 = vst [vmem:[#allocation122_spill] sm:$0xff] %v4627_v20  ;;  %v4636_v63 = vpop.eup %3222  ;;  %3228 = vpow2.f32 %v1191_v45 }
 0x277   : > { %5989 = vst [vmem:[#allocation123_spill] sm:$0xff] %v4632_v15  ;;  %v4640_v31 = vpop.f32.mrf.mxu2  ;;  %3230 = vpow2.f32 %v1193_v46 }
 0x278   : > { %5990 = vst [vmem:[#allocation124_spill] sm:$0xff] %v4636_v63  ;;  %v4642_v3 = vpop.f32.mrf.mxu3  ;;  %v1046_v30 = vpop.xlane.xlu2 %1045 }
 0x279   : > { %5991 = vst [vmem:[#allocation125_spill] sm:$0xff] %v4640_v31  ;;  %v1119_v26 = vsub.f32 %v4299_v2, %v1046_v30  ;;  %v1120_v57 = vsub.f32 %v4301_v35, %v1046_v30  ;;  %v1121_v58 = vsub.f32 %v4343_v9, %v1046_v30  ;;  %v1122_v23 = vsub.f32 %v4345_v39, %v1046_v30 }
 0x27a   : > { %5992 = vst [vmem:[#allocation126_spill] sm:$0xff] %v4642_v3  ;;  %v4652_v41 = vpop.f32.mrf.mxu1  ;;  %v4654_v18 = vpop.eup %3224 }
 0x27b   : > { %v4646_v47 = vpop.f32.mrf.mxu0  ;;  %5994 = vst [vmem:[#allocation128_spill] sm:$0xff] %v4652_v41  ;;  %v1195_v22 = vmul.f32 1.442695, %v1119_v26  ;;  %v1197_v3 = vmul.f32 1.442695, %v1120_v57  ;;  %v4660_v9 = vpop.eup %3226 }
 0x27c   : > { %5993 = vst [vmem:[#allocation127_spill] sm:$0xff] %v4646_v47  ;;  %v1199_v13 = vmul.f32 1.442695, %v1121_v58  ;;  %v1201_v56 = vmul.f32 1.442695, %v1122_v23  ;;  %v4664_v32 = vpop.eup %3228 }
 0x27d   : > { %3232 = vpow2.f32 %v1195_v22  ;;  %v4668_v58 = vpop.eup %3230 }
 0x27e   : > { %3234 = vpow2.f32 %v1197_v3 }
 0x27f   : > { %3236 = vpow2.f32 %v1199_v13  ;;  %v4656_v2 = vpop.f32.mrf.mxu2  ;;  %v4698_v46 = vpop.xlane.xlu1 %1050 }
 0x280   : > { %5995 = vst [vmem:[#allocation129_spill] sm:$0xff] %v4656_v2  ;;  %v4658_v35 = vpop.f32.mrf.mxu3  ;;  %3238 = vpow2.f32 %v1201_v56 }
 0x281   : > { %5996 = vst [vmem:[#allocation130_spill] sm:$0xff] %v4658_v35 }
 0x282   : > { %v4666_v26 = vpop.f32.mrf.mxu1 }
 0x283   : > { %v4662_v39 = vpop.f32.mrf.mxu0  ;;  %5998 = vst [vmem:[#allocation132_spill] sm:$0xff] %v4666_v26  ;;  %v4670_v22 = vpop.eup %3232 }
 0x284   : > { %5997 = vst [vmem:[#allocation131_spill] sm:$0xff] %v4662_v39  ;;  %v4672_v45 = vpop.eup %3234 }
 0x285   : > { %5999 = vst [vmem:[#allocation133_spill] sm:$0xff] %v4670_v22  ;;  %v4676_v13 = vpop.eup %3236 }
 0x286   : > { %6000 = vst [vmem:[#allocation134_spill] sm:$0xff] %v4672_v45  ;;  %v4680_v30 = vpop.eup %3238 }
 0x287   : > { %6001 = vst [vmem:[#allocation135_spill] sm:$0xff] %v4676_v13  ;;  %v4684_v23 = vpop.f32.mrf.mxu2 }
 0x288   : > { %6002 = vst [vmem:[#allocation136_spill] sm:$0xff] %v4680_v30  ;;  %v4686_v56 = vpop.f32.mrf.mxu3  ;;  %v4704_v47 = vpop.xlane.xlu2 %1055 }
 0x289   : > { %6003 = vst [vmem:[#allocation137_spill] sm:$0xff] %v4684_v23 }
 0x28a   : > { %6004 = vst [vmem:[#allocation138_spill] sm:$0xff] %v4686_v56  ;;  %v4692_v3 = vpop.f32.mrf.mxu1 }
 0x28b   : > { %v4690_v2 = vpop.f32.mrf.mxu0  ;;  %6006 = vst [vmem:[#allocation140_spill] sm:$0xff] %v4692_v3 }
 0x28c   : > { %6005 = vst [vmem:[#allocation139_spill] sm:$0xff] %v4690_v2 }
 0x28f   : > { %v4694_v31 = vpop.f32.mrf.mxu2  ;;  %v4710_v35 = vpop.xlane.xlu1 %1060 }
 0x290   : > { %6007 = vst [vmem:[#allocation141_spill] sm:$0xff] %v4694_v31  ;;  %v4696_v41 = vpop.f32.mrf.mxu3 }
 0x291   : > { %6008 = vst [vmem:[#allocation142_spill] sm:$0xff] %v4696_v41 }
 0x292   : > { %v4702_v57 = vpop.f32.mrf.mxu1 }
 0x293   : > { %v4700_v24 = vpop.f32.mrf.mxu0  ;;  %6010 = vst [vmem:[#allocation144_spill] sm:$0xff] %v4702_v57 }
 0x294   : > { %6009 = vst [vmem:[#allocation143_spill] sm:$0xff] %v4700_v24 }
 0x297   : > { %v4706_v37 = vpop.f32.mrf.mxu2 }
 0x298   : > { %6011 = vst [vmem:[#allocation145_spill] sm:$0xff] %v4706_v37  ;;  %v4708_v63 = vpop.f32.mrf.mxu3  ;;  %v4716_v31 = vpop.xlane.xlu2 %1065 }
 0x299   : > { %6012 = vst [vmem:[#allocation146_spill] sm:$0xff] %v4708_v63 }
 0x29a   : > { %v4714_v23 = vpop.f32.mrf.mxu1 }
 0x29b   : > { %v4712_v56 = vpop.f32.mrf.mxu0  ;;  %6014 = vst [vmem:[#allocation148_spill] sm:$0xff] %v4714_v23 }
 0x29c   : > { %6013 = vst [vmem:[#allocation147_spill] sm:$0xff] %v4712_v56  ;;  %v6046_v56 = vld [vmem:[#allocation107_spill] sm:$0xff] }
 0x29f   : > { %v4718_v41 = vpop.f32.mrf.mxu2  ;;  %v1071_v3 = vpop.xlane.xlu1 %1070 }
 0x2a0   : > { %6015 = vst [vmem:[#allocation149_spill] sm:$0xff] %v4718_v41  ;;  %v4720_v15 = vpop.f32.mrf.mxu3  ;;  %v1139_v2 = vsub.f32 %v4472_v49, %v1071_v3  ;;  %v1140_v39 = vsub.f32 %v4474_v62, %v1071_v3  ;;  %v1141_v20 = vsub.f32 %v4484_v27, %v1071_v3  ;;  %v1142_v30 = vsub.f32 %v4486_v54, %v1071_v3 }
 0x2a1   : > { %6016 = vst [vmem:[#allocation150_spill] sm:$0xff] %v4720_v15 }
 0x2a2   : > { %v4727_v7 = vpop.f32.mrf.mxu1  ;;  %v1235_v51 = vmul.f32 1.442695, %v1139_v2  ;;  %v1237_v63 = vmul.f32 1.442695, %v1140_v39  ;;  %v1239_v37 = vmul.f32 1.442695, %v1141_v20 }
 0x2a3   : > { %v4722_v26 = vpop.f32.mrf.mxu0  ;;  %v1241_v41 = vmul.f32 1.442695, %v1142_v30 }
 0x2a4   : > { %3240 = vpow2.f32 %v1235_v51 }
 0x2a5   : > { %3242 = vpow2.f32 %v1237_v63 }
 0x2a6   : > { %3244 = vpow2.f32 %v1239_v37 }
 0x2a7   : > { %v4730_v15 = vpop.f32.mrf.mxu2  ;;  %3246 = vpow2.f32 %v1241_v41 }
 0x2a8   : > { %v4732_v13 = vpop.f32.mrf.mxu3  ;;  %v1076_v49 = vpop.xlane.xlu2 %1075 }
 0x2a9   : > { %v1143_v27 = vsub.f32 %v4489_v4, %v1076_v49  ;;  %v1144_v62 = vsub.f32 %v4491_v44, %v1076_v49  ;;  %v1145_v54 = vsub.f32 %v4496_v38, %v1076_v49  ;;  %v1146_v63 = vsub.f32 %v4498_v40, %v1076_v49 }
 0x2aa   : > { %v4739_v2 = vpop.f32.mrf.mxu1  ;;  %v4741_v20 = vpop.eup %3240 }
 0x2ab   : > { %v4734_v36 = vpop.f32.mrf.mxu0  ;;  %6017 = vst [vmem:[#allocation151_spill] sm:$0xff] %v4741_v20  ;;  %v1243_v51 = vmul.f32 1.442695, %v1143_v27  ;;  %v1245_v39 = vmul.f32 1.442695, %v1144_v62  ;;  %v4744_v3 = vpop.eup %3242 }
 0x2ac   : > { %6018 = vst [vmem:[#allocation152_spill] sm:$0xff] %v4744_v3  ;;  %v1247_v37 = vmul.f32 1.442695, %v1145_v54  ;;  %v1339_v4 = vadd.f32 %v4744_v3, %v4741_v20  ;;  %v4748_v30 = vpop.eup %3244  ;;  %v1249_v38 = vmul.f32 1.442695, %v1146_v63 }
 0x2ad   : > { %3248 = vpow2.f32 %v1243_v51  ;;  %6019 = vst [vmem:[#allocation153_spill] sm:$0xff] %v4748_v30  ;;  %v4757_v27 = vpop.eup %3246 }
 0x2ae   : > { %3250 = vpow2.f32 %v1245_v39  ;;  %v1340_v41 = vadd.f32 %v4748_v30, %v1339_v4  ;;  %6020 = vst [vmem:[#allocation154_spill] sm:$0xff] %v4757_v27 }
 0x2af   : > { %v4750_v44 = vpop.f32.mrf.mxu2  ;;  %3252 = vpow2.f32 %v1247_v37  ;;  %v1081_v40 = vpop.xlane.xlu1 %1080 }
 0x2b0   : > { %v4752_v23 = vpop.f32.mrf.mxu3  ;;  %v1147_v62 = vsub.f32 %v4500_v50, %v1081_v40  ;;  %v1148_v54 = vsub.f32 %v4502_v0, %v1081_v40  ;;  %v1149_v51 = vsub.f32 %v4512_v53, %v1081_v40  ;;  %v1341_v63 = vadd.f32 %v4757_v27, %v1340_v41 }
 0x2b1   : > { %3254 = vpow2.f32 %v1249_v38  ;;  %v1150_v37 = vsub.f32 %v4514_v1, %v1081_v40 }
 0x2b2   : > { %v4762_v39 = vpop.f32.mrf.mxu1  ;;  %v1251_v4 = vmul.f32 1.442695, %v1147_v62  ;;  %v1253_v30 = vmul.f32 1.442695, %v1148_v54  ;;  %v1255_v57 = vmul.f32 1.442695, %v1149_v51  ;;  %1342 = vadd.xlane.f32.xlu1 %v1341_v63 }
 0x2b3   : > { %v4755_v49 = vpop.f32.mrf.mxu0  ;;  %v4765_v3 = vpop.eup %3248  ;;  %v1257_v53 = vmul.f32 1.442695, %v1150_v37 }
 0x2b4   : > { %6021 = vst [vmem:[#allocation155_spill] sm:$0xff] %v4765_v3  ;;  %v4768_v20 = vpop.eup %3250  ;;  %3256 = vpow2.f32 %v1251_v4 }
 0x2b5   : > { %6022 = vst [vmem:[#allocation156_spill] sm:$0xff] %v4768_v20  ;;  %v1344_v0 = vadd.f32 %v4768_v20, %v4765_v3  ;;  %v4772_v50 = vpop.eup %3252  ;;  %3258 = vpow2.f32 %v1253_v30 }
 0x2b6   : > { %6023 = vst [vmem:[#allocation157_spill] sm:$0xff] %v4772_v50  ;;  %3260 = vpow2.f32 %v1255_v57 }
 0x2b7   : > { %v4774_v41 = vpop.f32.mrf.mxu2  ;;  %v1345_v1 = vadd.f32 %v4772_v50, %v1344_v0  ;;  %v4781_v62 = vpop.eup %3254  ;;  %3262 = vpow2.f32 %v1257_v53 }
 0x2b8   : > { %v4776_v27 = vpop.f32.mrf.mxu3  ;;  %v1086_v38 = vpop.xlane.xlu2 %1085  ;;  %6024 = vst [vmem:[#allocation158_spill] sm:$0xff] %v4781_v62 }
 0x2b9   : > { %v1151_v54 = vsub.f32 %v4517_v33, %v1086_v38  ;;  %v1152_v51 = vsub.f32 %v4519_v60, %v1086_v38  ;;  %v1153_v63 = vsub.f32 %v4524_v52, %v1086_v38  ;;  %v1346_v37 = vadd.f32 %v4781_v62, %v1345_v1 }
 0x2ba   : > { %v4786_v30 = vpop.f32.mrf.mxu1  ;;  %v4789_v4 = vpop.eup %3256  ;;  %v1154_v57 = vsub.f32 %v4526_v43, %v1086_v38 }
 0x2bb   : > { %v4779_v40 = vpop.f32.mrf.mxu0  ;;  %6025 = vst [vmem:[#allocation159_spill] sm:$0xff] %v4789_v4  ;;  %v1259_v0 = vmul.f32 1.442695, %v1151_v54  ;;  %v1261_v50 = vmul.f32 1.442695, %v1152_v51  ;;  %v4792_v20 = vpop.eup %3258  ;;  %1347 = vadd.xlane.f32.xlu2 %v1346_v37 }
 0x2bc   : > { %6026 = vst [vmem:[#allocation160_spill] sm:$0xff] %v4792_v20  ;;  %v1263_v3 = vmul.f32 1.442695, %v1153_v63  ;;  %v1349_v33 = vadd.f32 %v4792_v20, %v4789_v4  ;;  %v4796_v52 = vpop.eup %3260  ;;  %v1265_v60 = vmul.f32 1.442695, %v1154_v57 }
 0x2bd   : > { %3264 = vpow2.f32 %v1259_v0  ;;  %6027 = vst [vmem:[#allocation161_spill] sm:$0xff] %v4796_v52  ;;  %v4805_v54 = vpop.eup %3262 }
 0x2be   : > { %3266 = vpow2.f32 %v1261_v50  ;;  %v1350_v43 = vadd.f32 %v4796_v52, %v1349_v33  ;;  %6028 = vst [vmem:[#allocation162_spill] sm:$0xff] %v4805_v54 }
 0x2bf   : > { %v4798_v1 = vpop.f32.mrf.mxu2  ;;  %3268 = vpow2.f32 %v1263_v3  ;;  %v1091_v53 = vpop.xlane.xlu1 %1090 }
 0x2c0   : > { %v4800_v62 = vpop.f32.mrf.mxu3  ;;  %v1155_v51 = vsub.f32 %v4528_v48, %v1091_v53  ;;  %v1156_v63 = vsub.f32 %v4530_v5, %v1091_v53  ;;  %v1157_v37 = vsub.f32 %v4540_v14, %v1091_v53  ;;  %v1351_v57 = vadd.f32 %v4805_v54, %v1350_v43 }
 0x2c1   : > { %3270 = vpow2.f32 %v1265_v60  ;;  %v1158_v3 = vsub.f32 %v4542_v16, %v1091_v53  ;;  %v1123_v14 = vsub.f32 %v4356_v59, %v4698_v46 }
 0x2c2   : > { %v4810_v50 = vpop.f32.mrf.mxu1  ;;  %v1267_v33 = vmul.f32 1.442695, %v1155_v51  ;;  %v1269_v52 = vmul.f32 1.442695, %v1156_v63  ;;  %v1271_v4 = vmul.f32 1.442695, %v1157_v37  ;;  %1352 = vadd.xlane.f32.xlu1 %v1351_v57 }
 0x2c3   : > { %v4803_v38 = vpop.f32.mrf.mxu0  ;;  %v4813_v0 = vpop.eup %3264  ;;  %v1273_v43 = vmul.f32 1.442695, %v1158_v3  ;;  %v1124_v3 = vsub.f32 %v4358_v10, %v4698_v46  ;;  %v1203_v54 = vmul.f32 1.442695, %v1123_v14 }
 0x2c4   : > { %6029 = vst [vmem:[#allocation163_spill] sm:$0xff] %v4813_v0  ;;  %v4816_v20 = vpop.eup %3266  ;;  %3272 = vpow2.f32 %v1267_v33 }
 0x2c5   : > { %6030 = vst [vmem:[#allocation164_spill] sm:$0xff] %v4816_v20  ;;  %v1354_v5 = vadd.f32 %v4816_v20, %v4813_v0  ;;  %v4820_v48 = vpop.eup %3268  ;;  %3274 = vpow2.f32 %v1269_v52 }
 0x2c6   : > { %6031 = vst [vmem:[#allocation165_spill] sm:$0xff] %v4820_v48  ;;  %3276 = vpow2.f32 %v1271_v4 }
 0x2c7   : > { %v4824_v60 = vpop.f32.mrf.mxu2  ;;  %v1355_v53 = vadd.f32 %v4820_v48, %v1354_v5  ;;  %v4831_v37 = vpop.eup %3270  ;;  %3278 = vpow2.f32 %v1273_v43 }
 0x2c8   : > { %v4826_v16 = vpop.f32.mrf.mxu3  ;;  %v1096_v51 = vpop.xlane.xlu2 %1095  ;;  %6032 = vst [vmem:[#allocation166_spill] sm:$0xff] %v4831_v37 }
 0x2c9   : > { %v1159_v57 = vsub.f32 %v4545_v21, %v1096_v51  ;;  %v1160_v33 = vsub.f32 %v4547_v42, %v1096_v51  ;;  %v1161_v59 = vsub.f32 %v4552_v12, %v1096_v51  ;;  %v1356_v5 = vadd.f32 %v4831_v37, %v1355_v53 }
 0x2ca   : > { %v4836_v52 = vpop.f32.mrf.mxu1  ;;  %v4841_v4 = vpop.eup %3272  ;;  %v1162_v48 = vsub.f32 %v4554_v55, %v1096_v51  ;;  %v1131_v12 = vsub.f32 %v4410_v11, %v4710_v35  ;;  %v1205_v53 = vmul.f32 1.442695, %v1124_v3  ;;  %v1132_v55 = vsub.f32 %v4412_v8, %v4710_v35 }
 0x2cb   : > { %v4829_v63 = vpop.f32.mrf.mxu0  ;;  %6033 = vst [vmem:[#allocation167_spill] sm:$0xff] %v4841_v4  ;;  %v1275_v20 = vmul.f32 1.442695, %v1159_v57  ;;  %v1277_v0 = vmul.f32 1.442695, %v1160_v33  ;;  %v4844_v21 = vpop.eup %3274  ;;  %1357 = vadd.xlane.f32.xlu2 %v1356_v5 }
 0x2cc   : > { %6034 = vst [vmem:[#allocation168_spill] sm:$0xff] %v4844_v21  ;;  %v1279_v42 = vmul.f32 1.442695, %v1161_v59  ;;  %v1359_v10 = vadd.f32 %v4844_v21, %v4841_v4  ;;  %v4850_v14 = vpop.eup %3276  ;;  %v1281_v43 = vmul.f32 1.442695, %v1162_v48  ;;  %v6037_v21 = vld [vmem:[#allocation93_spill] sm:$0xff] }
 0x2cd   : > { %3280 = vpow2.f32 %v1275_v20  ;;  %6035 = vst [vmem:[#allocation169_spill] sm:$0xff] %v4850_v14  ;;  %v1219_v33 = vmul.f32 1.442695, %v1131_v12  ;;  %v4859_v5 = vpop.eup %3278  ;;  %v1133_v4 = vsub.f32 %v6037_v21, %v4710_v35 }
 0x2ce   : > { %3282 = vpow2.f32 %v1277_v0  ;;  %v1360_v11 = vadd.f32 %v4850_v14, %v1359_v10  ;;  %6036 = vst [vmem:[#allocation170_spill] sm:$0xff] %v4859_v5  ;;  %v1221_v10 = vmul.f32 1.442695, %v1132_v55 }
 0x2cf   : > { %3284 = vpow2.f32 %v1203_v54  ;;  %v4854_v51 = vpop.f32.mrf.mxu2  ;;  %v1101_v20 = vpop.xlane.xlu1 %1100  ;;  %v1223_v55 = vmul.f32 1.442695, %v1133_v4 }
 0x2d0   : > { %v4856_v57 = vpop.f32.mrf.mxu3  ;;  %3286 = vpow2.f32 %v1279_v42  ;;  %v1163_v3 = vsub.f32 %v4556_v34, %v1101_v20  ;;  %v1164_v54 = vsub.f32 %v4558_v29, %v1101_v20  ;;  %v1165_v0 = vsub.f32 %v4568_v25, %v1101_v20  ;;  %v6040_v29 = vld [vmem:[#allocation96_spill] sm:$0xff] }
 0x2d1   : > { %v1166_v8 = vsub.f32 %v4570_v61, %v1101_v20  ;;  %3288 = vpow2.f32 %v1205_v53  ;;  %v1361_v12 = vadd.f32 %v4859_v5, %v1360_v11  ;;  %v1135_v25 = vsub.f32 %v6040_v29, %v4716_v31  ;;  %v6044_v29 = vld [vmem:[#allocation94_spill] sm:$0xff] }
 0x2d2   : > { %v764_v48 = vpop.f32.mrf.mxu1  ;;  %3290 = vpow2.f32 %v1281_v43  ;;  %v1283_v14 = vmul.f32 1.442695, %v1163_v3  ;;  %v1285_v37 = vmul.f32 1.442695, %v1164_v54  ;;  %v1287_v61 = vmul.f32 1.442695, %v1165_v0 }
 0x2d3   : > { %v635_v59 = vpop.f32.mrf.mxu0  ;;  %v4868_v42 = vpop.eup %3280  ;;  %3292 = vpow2.f32 %v1219_v33  ;;  %1362 = vadd.xlane.f32.xlu1 %v1361_v12  ;;  %v1289_v21 = vmul.f32 1.442695, %v1166_v8  ;;  %v6042_v43 = vld [vmem:[#allocation97_spill] sm:$0xff]  ;;  %v1134_v5 = vsub.f32 %v6044_v29, %v4710_v35 }
 0x2d4   : > { %6038 = vst [vmem:[#allocation93_spill] sm:$0xff] %v4868_v42  ;;  %v4870_v34 = vpop.eup %3282  ;;  %3294 = vpow2.f32 %v1283_v14  ;;  %v1136_v33 = vsub.f32 %v6042_v43, %v4716_v31  ;;  %v6043_v14 = vld [vmem:[#allocation81_spill] sm:$0xff]  ;;  %v6045_v43 = vld [vmem:[#allocation106_spill] sm:$0xff] }
 0x2d5   : > { %6039 = vst [vmem:[#allocation171_spill] sm:$0xff] %v4870_v34  ;;  %v4874_v53 = vpop.eup %3284  ;;  %v1364_v11 = vadd.f32 %v4870_v34, %v4868_v42  ;;  %3296 = vpow2.f32 %v1285_v37  ;;  %v1125_v8 = vsub.f32 %v6043_v14, %v4698_v46  ;;  %v1227_v34 = vmul.f32 1.442695, %v1135_v25 }
 0x2d6   : > { %v4878_v20 = vpop.eup %3286  ;;  %3298 = vpow2.f32 %v1221_v10  ;;  %v1229_v29 = vmul.f32 1.442695, %v1136_v33 }
 0x2d7   : > { %6041 = vst [vmem:[#allocation96_spill] sm:$0xff] %v4878_v20  ;;  %v893_v3 = vpop.f32.mrf.mxu2  ;;  %v1365_v0 = vadd.f32 %v4878_v20, %v1364_v11  ;;  %v4883_v12 = vpop.eup %3288  ;;  %3300 = vpow2.f32 %v1287_v61 }
 0x2d8   : > { %v1022_v54 = vpop.f32.mrf.mxu3  ;;  %v1106_v37 = vpop.xlane.xlu2 %1105  ;;  %3302 = vpow2.f32 %v1289_v21 }
 0x2d9   : > { %v4889_v4 = vpop.eup %3290  ;;  %v1167_v42 = vsub.f32 %v6045_v43, %v1106_v37  ;;  %v1168_v24 = vsub.f32 %v6046_v56, %v1106_v37  ;;  %v1169_v11 = vsub.f32 %v4580_v19, %v1106_v37  ;;  %v1170_v14 = vsub.f32 %v4582_v17, %v1106_v37  ;;  %v6047_v17 = vld [vmem:[#allocation82_spill] sm:$0xff]  ;;  %v6049_v37 = vld [vmem:[#allocation83_spill] sm:$0xff] }
 0x2da   : > { %v766_v20 = vpop.f32.mrf.mxu1  ;;  %v4894_v45 = vpop.eup %3292  ;;  %v1366_v35 = vadd.f32 %v4889_v4, %v1365_v0  ;;  %3304 = vpow2.f32 %v1223_v55  ;;  %v1207_v0 = vmul.f32 1.442695, %v1125_v8 }
 0x2db   : > { %v637_v10 = vpop.f32.mrf.mxu0  ;;  %v1440_v22 = vpack.c.bf16 %v766_v20, %v764_v48  ;;  %v4898_v61 = vpop.eup %3294  ;;  %v1291_v21 = vmul.f32 1.442695, %v1167_v42  ;;  %v1293_v28 = vmul.f32 1.442695, %v1168_v24  ;;  %3306 = vpow2.f32 %v1227_v34  ;;  %v6048_v24 = vld [vmem:[#allocation104_spill] sm:$0xff] }
 0x2dc   : > { %v1439_v25 = vpack.c.bf16 %v637_v10, %v635_v59  ;;  %v4900_v43 = vpop.eup %3296  ;;  %v1295_v56 = vmul.f32 1.442695, %v1169_v11  ;;  %1367 = vadd.xlane.f32.xlu2 %v1366_v35  ;;  %v1126_v48 = vsub.f32 %v6047_v17, %v4698_v46  ;;  %v1225_v20 = vmul.f32 1.442695, %v1134_v5  ;;  %v6050_v11 = vld [vmem:[#allocation84_spill] sm:$0xff] }
 0x2dd   : > { %v4902_v19 = vpop.eup %3298  ;;  %3308 = vpow2.f32 %v1291_v21  ;;  %1492 = vmatpush.bf16.xpose.msra.mxu1 %v1440_v22  ;;  %v1369_v59 = vadd.f32 %v4900_v43, %v4898_v61  ;;  %v1137_v42 = vsub.f32 %v6048_v24, %v4716_v31  ;;  %v1297_v34 = vmul.f32 1.442695, %v1170_v14  ;;  %v6051_v24 = vld [vmem:[#allocation105_spill] sm:$0xff] }
 0x2de   : > { %1443 = vmatpush.bf16.xpose.msra.mxu0 %v1439_v25  ;;  %v4908_v55 = vpop.eup %3300  ;;  %3310 = vpow2.f32 %v1293_v28  ;;  %v1127_v10 = vsub.f32 %v6049_v37, %v4704_v47  ;;  %v1128_v35 = vsub.f32 %v6050_v11, %v4704_v47  ;;  %v1209_v28 = vmul.f32 1.442695, %v1126_v48 }
 0x2df   : > { %v4912_v33 = vpop.eup %3302  ;;  %3312 = vpow2.f32 %v1229_v29  ;;  %v895_v46 = vpop.f32.mrf.mxu2  ;;  %v1370_v22 = vadd.f32 %v4908_v55, %v1369_v59  ;;  %v1329_v14 = vadd.f32 %v4902_v19, %v4894_v45  ;;  %v1138_v59 = vsub.f32 %v6051_v24, %v4716_v31 }
 0x2e0   : > { %v1024_v5 = vpop.f32.mrf.mxu3  ;;  %3314 = vpow2.f32 %v1295_v56  ;;  %v1441_v25 = vpack.c.bf16 %v895_v46, %v893_v3  ;;  %v4919_v17 = vpop.eup %3304  ;;  %v1231_v37 = vmul.f32 1.442695, %v1137_v42  ;;  %v1435_v56 = vpack.c.bf16 %v4829_v63, %v4803_v38 }
 0x2e1   : > { %v1442_v21 = vpack.c.bf16 %v1024_v5, %v1022_v54  ;;  %3316 = vpow2.f32 %v1225_v20  ;;  %v1371_v8 = vadd.f32 %v4912_v33, %v1370_v22  ;;  %v4924_v29 = vpop.eup %3306  ;;  %v1211_v54 = vmul.f32 1.442695, %v1127_v10 }
 0x2e2   : > { %3318 = vpow2.f32 %v1297_v34  ;;  %1541 = vmatpush.bf16.xpose.msra.mxu2 %v1441_v25  ;;  %v1436_v48 = vpack.c.bf16 %v4836_v52, %v4810_v50  ;;  %v1213_v46 = vmul.f32 1.442695, %v1128_v35  ;;  %v1330_v38 = vadd.f32 %v4919_v17, %v1329_v14  ;;  %v6052_v34 = vld [vmem:[#allocation85_spill] sm:$0xff]  ;;  %v6053_v14 = vld [vmem:[#allocation86_spill] sm:$0xff] }
 0x2e3   : > { %1590 = vmatpush.bf16.xpose.msra.mxu3 %v1442_v21  ;;  %v4930_v3 = vpop.eup %3308  ;;  %1372 = vadd.xlane.f32.xlu1 %v1371_v8  ;;  %3320 = vpow2.f32 %v1207_v0  ;;  %v1129_v50 = vsub.f32 %v6052_v34, %v4704_v47  ;;  %v1233_v52 = vmul.f32 1.442695, %v1138_v59  ;;  %v1437_v22 = vpack.c.bf16 %v4854_v51, %v4824_v60 }
 0x2e4   : > { %v4934_v20 = vpop.eup %3310  ;;  %3322 = vpow2.f32 %v1209_v28  ;;  %v1438_v11 = vpack.c.bf16 %v4856_v57, %v4826_v16  ;;  %v1319_v21 = vadd.f32 %v4883_v12, %v4874_v53  ;;  %v1130_v24 = vsub.f32 %v6053_v14, %v4704_v47  ;;  %v6059_v14 = vld [vmem:[#allocation144_spill] sm:$0xff] }
 0x2e5   : > { %v4936_v31 = vpop.eup %3312  ;;  %1493 = vmatpush.bf16.xpose.msra.mxu1 %v1436_v48  ;;  %v1374_v63 = vadd.f32 %v4934_v20, %v4930_v3  ;;  %3324 = vpow2.f32 %v1231_v37  ;;  %v1215_v59 = vmul.f32 1.442695, %v1129_v50  ;;  %v1431_v60 = vpack.c.bf16 %v4779_v40, %v4755_v49 }
 0x2e6   : > { %1444 = vmatpush.bf16.xpose.msra.mxu0 %v1435_v56  ;;  %v4941_v42 = vpop.eup %3314  ;;  %3326 = vpow2.f32 %v1211_v54  ;;  %v1334_v28 = vadd.f32 %v4936_v31, %v4924_v29  ;;  %v1432_v51 = vpack.c.bf16 %v4786_v30, %v4762_v39  ;;  %v1217_v40 = vmul.f32 1.442695, %v1130_v24  ;;  %v6062_v24 = vld [vmem:[#allocation135_spill] sm:$0xff] }
 0x2e7   : > { %v4945_v10 = vpop.eup %3316  ;;  %v1375_v0 = vadd.f32 %v4941_v42, %v1374_v63  ;;  %3328 = vpow2.f32 %v1213_v46  ;;  %v1433_v39 = vpack.c.bf16 %v4798_v1, %v4774_v41  ;;  %v1434_v30 = vpack.c.bf16 %v4800_v62, %v4776_v27 }
 0x2e8   : > { %v4948_v5 = vpop.eup %3318  ;;  %v1331_v35 = vadd.f32 %v4945_v10, %v1330_v38  ;;  %3330 = vpow2.f32 %v1233_v52  ;;  %v1309_v38 = vadd.f32 %v4660_v9, %v4654_v18  ;;  %v1427_v34 = vpack.c.bf16 %v4734_v36, %v4722_v26  ;;  %v6054_v52 = vld [vmem:[#allocation116_spill] sm:$0xff] }
 0x2e9   : > { %v1376_v25 = vadd.f32 %v4948_v5, %v1375_v0  ;;  %v4960_v8 = vpop.eup %3320  ;;  %3332 = vpow2.f32 %v1215_v59  ;;  %v1428_v41 = vpack.c.bf16 %v4739_v2, %v4727_v7  ;;  %v1429_v36 = vpack.c.bf16 %v4750_v44, %v4730_v15  ;;  %v6060_v15 = vld [vmem:[#allocation148_spill] sm:$0xff] }
 0x2ea   : > { %1542 = vmatpush.bf16.xpose.msra.mxu2 %v1437_v22  ;;  %v4966_v16 = vpop.eup %3322  ;;  %v1320_v47 = vadd.f32 %v4960_v8, %v1319_v21  ;;  %3334 = vpow2.f32 %v1217_v40  ;;  %v1310_v62 = vadd.f32 %v4664_v32, %v1309_v38  ;;  %v1430_v26 = vpack.c.bf16 %v4752_v23, %v4732_v13  ;;  %v6055_v22 = vld [vmem:[#allocation133_spill] sm:$0xff]  ;;  %v6058_v21 = vld [vmem:[#allocation147_spill] sm:$0xff]  ;;  %v6061_v13 = vld [vmem:[#allocation118_spill] sm:$0xff] }
 0x2eb   : > { %1591 = vmatpush.bf16.xpose.msra.mxu3 %v1438_v11  ;;  %1332 = vadd.xlane.f32.xlu1 %v1331_v35  ;;  %v4970_v57 = vpop.eup %3324  ;;  %v1299_v0 = vadd.f32 %v6054_v52, %v4606_v6  ;;  %v6056_v11 = vld [vmem:[#allocation134_spill] sm:$0xff]  ;;  %v1424_v44 = vpack.c.bf16 %v6060_v15, %v6059_v14 }
 0x2ec   : > { %1377 = vadd.xlane.f32.xlu2 %v1376_v25  ;;  %v4972_v37 = vpop.eup %3326  ;;  %v1335_v56 = vadd.f32 %v4970_v57, %v1334_v28  ;;  %v1321_v48 = vadd.f32 %v4966_v16, %v1320_v47  ;;  %v1311_v7 = vadd.f32 %v4668_v58, %v1310_v62  ;;  %v1314_v35 = vadd.f32 %v6056_v11, %v6055_v22  ;;  %v6057_v25 = vld [vmem:[#allocation143_spill] sm:$0xff]  ;;  %v6066_v40 = vld [vmem:[#allocation150_spill] sm:$0xff] }
 0x2ed   : > { %1494 = vmatpush.bf16.xpose.msra.mxu1 %v1432_v51  ;;  %v4976_v49 = vpop.eup %3328  ;;  %v1423_v28 = vpack.c.bf16 %v6058_v21, %v6057_v25  ;;  %v1300_v23 = vadd.f32 %v6061_v13, %v1299_v0  ;;  %v6064_v51 = vld [vmem:[#allocation149_spill] sm:$0xff]  ;;  %v6071_v62 = vld [vmem:[#allocation131_spill] sm:$0xff]  ;;  %v6078_v14 = vld [vmem:[#allocation138_spill] sm:$0xff] }
 0x2ee   : > { %1445 = vmatpush.bf16.xpose.msra.mxu0 %v1431_v60  ;;  %v4978_v54 = vpop.eup %3330  ;;  %v1324_v63 = vadd.f32 %v4976_v49, %v4972_v37  ;;  %v1315_v59 = vadd.f32 %v6062_v24, %v1314_v35  ;;  %v6063_v60 = vld [vmem:[#allocation145_spill] sm:$0xff]  ;;  %v6075_v0 = vld [vmem:[#allocation123_spill] sm:$0xff]  ;;  %v6079_v15 = vld [vmem:[#allocation142_spill] sm:$0xff] }
 0x2ef   : > { %v1336_v46 = vadd.f32 %v4978_v54, %v1335_v56  ;;  %v4994_v27 = vpop.eup %3332  ;;  %v1425_v47 = vpack.c.bf16 %v6064_v51, %v6063_v60  ;;  %v6065_v56 = vld [vmem:[#allocation146_spill] sm:$0xff]  ;;  %v6076_v25 = vld [vmem:[#allocation137_spill] sm:$0xff]  ;;  %v6082_v51 = vld [vmem:[#allocation127_spill] sm:$0xff] }
 0x2f0   : > { %v1325_v1 = vadd.f32 %v4994_v27, %v1324_v63  ;;  %v4998_v50 = vpop.eup %3334  ;;  %v6069_v63 = vld [vmem:[#allocation121_spill] sm:$0xff] }
 0x2f1   : > { %v6077_v21 = vld [vmem:[#allocation141_spill] sm:$0xff] }
 0x2f2   : > { %1543 = vmatpush.bf16.xpose.msra.mxu2 %v1433_v39  ;;  %v1326_v2 = vadd.f32 %v4998_v50, %v1325_v1  ;;  %v1426_v39 = vpack.c.bf16 %v6066_v40, %v6065_v56  ;;  %v6072_v1 = vld [vmem:[#allocation139_spill] sm:$0xff]  ;;  %v6081_v60 = vld [vmem:[#allocation117_spill] sm:$0xff]  ;;  %v6084_v40 = vld [vmem:[#allocation128_spill] sm:$0xff] }
 0x2f3   : > { %1592 = vmatpush.bf16.xpose.msra.mxu3 %v1434_v30  ;;  %1322 = vadd.xlane.f32.xlu1 %v1321_v48  ;;  %v6067_v30 = vld [vmem:[#allocation120_spill] sm:$0xff]  ;;  %v6083_v56 = vld [vmem:[#allocation119_spill] sm:$0xff] }
 0x2f4   : > { %1337 = vadd.xlane.f32.xlu2 %v1336_v46  ;;  %v1301_v48 = vadd.f32 %v6067_v30, %v1300_v23  ;;  %v6068_v46 = vld [vmem:[#allocation136_spill] sm:$0xff] }
 0x2f5   : > { %1495 = vmatpush.bf16.xpose.msra.mxu1 %v1428_v41  ;;  %v1316_v38 = vadd.f32 %v6068_v46, %v1315_v59  ;;  %v6080_v23 = vld [vmem:[#allocation124_spill] sm:$0xff] }
 0x2f6   : > { %1446 = vmatpush.bf16.xpose.msra.mxu0 %v1427_v34  ;;  %v6070_v34 = vld [vmem:[#allocation122_spill] sm:$0xff] }
 0x2f7   : > { %v1304_v41 = vadd.f32 %v6070_v34, %v6069_v63 }
 0x2f9   : > { %v1305_v35 = vadd.f32 %v6075_v0, %v1304_v41 }
 0x2fa   : > { %1544 = vmatpush.bf16.xpose.msra.mxu2 %v1429_v36  ;;  %v1419_v36 = vpack.c.bf16 %v6072_v1, %v6071_v62  ;;  %v6087_v62 = vld [vmem:[#allocation126_spill] sm:$0xff] }
 0x2fb   : > { %1593 = vmatpush.bf16.xpose.msra.mxu3 %v1430_v26  ;;  %1312 = vadd.xlane.f32.xlu1 %v1311_v7  ;;  %v6073_v26 = vld [vmem:[#allocation132_spill] sm:$0xff]  ;;  %v1306_v59 = vadd.f32 %v6080_v23, %v1305_v35  ;;  %v6088_v1 = vld [vmem:[#allocation130_spill] sm:$0xff]  ;;  %v6091_v35 = vld [vmem:[#allocation109_spill] sm:$0xff] }
 0x2fc   : > { %1327 = vadd.xlane.f32.xlu2 %v1326_v2  ;;  %v6074_v7 = vld [vmem:[#allocation140_spill] sm:$0xff] }
 0x2fd   : > { %1496 = vmatpush.bf16.xpose.msra.mxu1 %v1424_v44  ;;  %v1420_v2 = vpack.c.bf16 %v6074_v7, %v6073_v26  ;;  %v1422_v44 = vpack.c.bf16 %v6079_v15, %v6078_v14  ;;  %v6089_v26 = vld [vmem:[#allocation108_spill] sm:$0xff]  ;;  %v6094_v14 = vld [vmem:[#allocation114_spill] sm:$0xff] }
 0x2fe   : > { %1447 = vmatpush.bf16.xpose.msra.mxu0 %v1423_v28  ;;  %v1421_v28 = vpack.c.bf16 %v6077_v21, %v6076_v25  ;;  %v6090_v7 = vld [vmem:[#allocation112_spill] sm:$0xff]  ;;  %v6092_v25 = vld [vmem:[#allocation113_spill] sm:$0xff] }
 0x2ff   : > { %v1412_v21 = vpack.c.bf16 %v6092_v25, %v6091_v35  ;;  %v6115_v25 = vpack.c.bf16 %v6080_v23, %v6067_v30  ;;  %v6131_v23 = vld [vmem:[#allocation37_spill] sm:$0xff] }
 0x302   : > { %1545 = vmatpush.bf16.xpose.msra.mxu2 %v1425_v47  ;;  %v1415_v47 = vpack.c.bf16 %v6082_v51, %v6081_v60  ;;  %v6097_v51 = vpack.c.bf16 %v6069_v63, %v4606_v6  ;;  %v6112_v63 = vld [vmem:[#allocation13_spill] sm:$0xff] }
 0x303   : > { %1594 = vmatpush.bf16.xpose.msra.mxu3 %v1426_v39  ;;  %1302 = vadd.xlane.f32.xlu1 %v1301_v48  ;;  %v1416_v39 = vpack.c.bf16 %v6084_v40, %v6083_v56  ;;  %v6085_v48 = vld [vmem:[#allocation125_spill] sm:$0xff]  ;;  %v6099_v56 = vld [vmem:[#allocation59_spill] sm:$0xff] }
 0x304   : > { %1317 = vadd.xlane.f32.xlu2 %v1316_v38  ;;  %v6086_v38 = vld [vmem:[#allocation129_spill] sm:$0xff] }
 0x305   : > { %1497 = vmatpush.bf16.xpose.msra.mxu1 %v1420_v2  ;;  %v1417_v41 = vpack.c.bf16 %v6086_v38, %v6085_v48  ;;  %v1411_v2 = vpack.c.bf16 %v6090_v7, %v6089_v26  ;;  %v6100_v40 = vld [vmem:[#allocation61_spill] sm:$0xff]  ;;  %v6102_v48 = vld [vmem:[#allocation60_spill] sm:$0xff]  ;;  %v6103_v38 = vld [vmem:[#allocation62_spill] sm:$0xff] }
 0x306   : > { %1448 = vmatpush.bf16.xpose.msra.mxu0 %v1419_v36  ;;  %v1418_v36 = vpack.c.bf16 %v6088_v1, %v6087_v62  ;;  %v6105_v62 = vld [vmem:[#allocation64_spill] sm:$0xff]  ;;  %v6106_v1 = vld [vmem:[#allocation63_spill] sm:$0xff]  ;;  %v6108_v26 = vld [vmem:[#allocation69_spill] sm:$0xff] }
 0x307   : > { %v6109_v7 = vld [vmem:[#allocation65_spill] sm:$0xff] }
 0x308   : > { %v6110_v6 = vpack.c.bf16 %v6108_v26, %v6109_v7  ;;  %v6136_v7 = vld [vmem:[#allocation74_spill] sm:$0xff] }
 0x30a   : > { %1546 = vmatpush.bf16.xpose.msra.mxu2 %v1421_v28  ;;  %v6093_v28 = vld [vmem:[#allocation110_spill] sm:$0xff] }
 0x30b   : > { %1595 = vmatpush.bf16.xpose.msra.mxu3 %v1422_v44  ;;  %v1413_v15 = vpack.c.bf16 %v6094_v14, %v6093_v28  ;;  %v6095_v44 = vld [vmem:[#allocation111_spill] sm:$0xff]  ;;  %v6117_v28 = vld [vmem:[#allocation70_spill] sm:$0xff] }
 0x30c   : > { %1307 = vadd.xlane.f32.xlu2 %v1306_v59  ;;  %v6096_v59 = vld [vmem:[#allocation115_spill] sm:$0xff] }
 0x30d   : > { %1498 = vmatpush.bf16.xpose.msra.mxu1 %v1416_v39  ;;  %v1414_v60 = vpack.c.bf16 %v6096_v59, %v6095_v44  ;;  %v6101_v39 = vpack.c.bf16 %v6099_v56, %v6100_v40  ;;  %v6120_v44 = vld [vmem:[#allocation16_spill] sm:$0xff]  ;;  %v6126_v56 = vld [vmem:[#allocation18_spill] sm:$0xff] }
 0x30e   : > { %1449 = vmatpush.bf16.xpose.msra.mxu0 %v1415_v47  ;;  %v6098_v47 = vpack.c.bf16 %v6070_v34, %v6054_v52  ;;  %v6111_v52 = vpack.c.bf16 %v6075_v0, %v6061_v13  ;;  %v6113_v34 = vld [vmem:[#allocation15_spill] sm:$0xff]  ;;  %v6125_v0 = vld [vmem:[#allocation17_spill] sm:$0xff] }
 0x30f   : > { %v6127_v40 = vsub.f32 %v6125_v0, %v6126_v56  ;;  %v6151_v0 = vld [vmem:[#allocation47_spill] sm:$0xff] }
 0x312   : > { %1547 = vmatpush.bf16.xpose.msra.mxu2 %v1417_v41  ;;  %v6104_v41 = vpack.c.bf16 %v6102_v48, %v6103_v38  ;;  %v6128_v48 = vld [vmem:[#allocation36_spill] sm:$0xff]  ;;  %v6129_v38 = vld [vmem:[#allocation39_spill] sm:$0xff] }
 0x313   : > { %1596 = vmatpush.bf16.xpose.msra.mxu3 %v1418_v36  ;;  %v6107_v36 = vpack.c.bf16 %v6105_v62, %v6106_v1  ;;  %v6130_v30 = vpack.c.bf16 %v6128_v48, %v6129_v38  ;;  %v6134_v1 = vld [vmem:[#allocation11_spill] sm:$0xff]  ;;  %v6158_v38 = vpack.c.bf16 %v6056_v11, %v4660_v9  ;;  %v6171_v9 = vld [vmem:[#allocation54_spill] sm:$0xff]  ;;  %v6172_v11 = vld [vmem:[#allocation53_spill] sm:$0xff] }
 0x315   : > { %1499 = vmatpush.bf16.xpose.msra.mxu1 %v1412_v21  ;;  %v6116_v21 = vld [vmem:[#allocation66_spill] sm:$0xff] }
 0x316   : > { %1450 = vmatpush.bf16.xpose.msra.mxu0 %v1411_v2  ;;  %v6114_v2 = vsub.f32 %v6112_v63, %v6113_v34  ;;  %v6118_v14 = vpack.c.bf16 %v6116_v21, %v6117_v28  ;;  %v6139_v63 = vld [vmem:[#allocation12_spill] sm:$0xff]  ;;  %v6141_v21 = vld [vmem:[#allocation78_spill] sm:$0xff] }
 0x317   : > { %v6142_v28 = vld [vmem:[#allocation76_spill] sm:$0xff] }
 0x318   : > { %v1943_v35 = vmul.f32 1.442695, %v6114_v2  ;;  %v6140_v2 = vsub.f32 %v6139_v63, %v6120_v44  ;;  %v6173_v63 = vpack.c.bf16 %v6171_v9, %v6172_v11  ;;  %v6200_v9 = vld [vmem:[#allocation102_spill] sm:$0xff] }
 0x31a   : > { %1548 = vmatpush.bf16.xpose.msra.mxu2 %v1413_v15  ;;  %v6119_v15 = vld [vmem:[#allocation14_spill] sm:$0xff]  ;;  %3336 = vpow2.f32 %v1943_v35  ;;  %v6148_v35 = vld [vmem:[#allocation45_spill] sm:$0xff] }
 0x31b   : > { %1597 = vmatpush.bf16.xpose.msra.mxu3 %v1414_v60  ;;  %v6121_v59 = vsub.f32 %v6119_v15, %v6120_v44  ;;  %v6144_v15 = vld [vmem:[#allocation41_spill] sm:$0xff]  ;;  %v6153_v44 = vld [vmem:[#allocation44_spill] sm:$0xff] }
 0x31c   : > { %1500 = vmatmul.bf16.vlgmr.msra.gmra.mxu1 %v6098_v47  ;;  %v6123_v47 = vld [vmem:[#allocation72_spill] sm:$0xff] }
 0x31d   : > { %1451 = vmatmul.bf16.vlgmr.msra.gmra.mxu0 %v6097_v51  ;;  %2288 = vmatpush.bf16.msra.mxu1 %v6104_v41  ;;  %v1945_v60 = vmul.f32 1.442695, %v6121_v59  ;;  %v6122_v51 = vld [vmem:[#allocation67_spill] sm:$0xff]  ;;  %v6132_v41 = vld [vmem:[#allocation38_spill] sm:$0xff]  ;;  %v6145_v59 = vld [vmem:[#allocation40_spill] sm:$0xff] }
 0x31e   : > { %2239 = vmatpush.bf16.msra.mxu0 %v6101_v39  ;;  %v6124_v13 = vpack.c.bf16 %v6122_v51, %v6123_v47  ;;  %v1981_v39 = vmul.f32 1.442695, %v6127_v40  ;;  %v6133_v62 = vpack.c.bf16 %v6131_v23, %v6132_v41  ;;  %v6146_v51 = vpack.c.bf16 %v6144_v15, %v6145_v59  ;;  %v6160_v23 = vld [vmem:[#allocation22_spill] sm:$0xff] }
 0x31f   : > { %3338 = vpow2.f32 %v1945_v60  ;;  %v6154_v60 = vld [vmem:[#allocation49_spill] sm:$0xff]  ;;  %v6179_v15 = vld [vmem:[#allocation26_spill] sm:$0xff] }
 0x320   : > { %3340 = vpow2.f32 %v1981_v39  ;;  %v6155_v40 = vpack.c.bf16 %v6153_v44, %v6154_v60  ;;  %v6156_v39 = vpack.c.bf16 %v6055_v22, %v4654_v18  ;;  %v5122_v48 = vpop.eup %3336  ;;  %v6167_v18 = vld [vmem:[#allocation51_spill] sm:$0xff]  ;;  %v6168_v22 = vld [vmem:[#allocation50_spill] sm:$0xff] }
 0x321   : > { %2289 = vmatpush.bf16.msra.mxu1 %v6110_v6  ;;  %1549 = vmatmul.bf16.vlgmr.msra.gmra.mxu2 %v6111_v52  ;;  %v6137_v6 = vld [vmem:[#allocation73_spill] sm:$0xff]  ;;  %6157 = vst [vmem:[#allocation97_spill] sm:$0xff] %v5122_v48 }
 0x322   : > { %2240 = vmatpush.bf16.msra.mxu0 %v6107_v36  ;;  %1598 = vmatmul.bf16.vlgmr.msra.gmra.mxu3 %v6115_v25  ;;  %v6135_v36 = vsub.f32 %v6134_v1, %v6113_v34  ;;  %v6138_v52 = vpack.c.bf16 %v6136_v7, %v6137_v6  ;;  %v1937_v25 = vmul.f32 1.442695, %v6140_v2  ;;  %v6147_v34 = vld [vmem:[#allocation46_spill] sm:$0xff]  ;;  %v6163_v1 = vld [vmem:[#allocation20_spill] sm:$0xff]  ;;  %v6169_v6 = vpack.c.bf16 %v6167_v18, %v6168_v22  ;;  %v6198_v18 = vld [vmem:[#allocation99_spill] sm:$0xff] }
 0x323   : > { %2337 = vmatpush.bf16.msra.mxu2 %v6118_v14  ;;  %2386 = vmatpush.bf16.msra.mxu3 %v6124_v13  ;;  %v6143_v14 = vpack.c.bf16 %v6141_v21, %v6142_v28  ;;  %v6149_v47 = vpack.c.bf16 %v6147_v34, %v6148_v35  ;;  %v6150_v13 = vld [vmem:[#allocation43_spill] sm:$0xff]  ;;  %v6182_v34 = vld [vmem:[#allocation56_spill] sm:$0xff] }
 0x324   : > { %v1935_v26 = vmul.f32 1.442695, %v6135_v36  ;;  %v6152_v56 = vpack.c.bf16 %v6150_v13, %v6151_v0  ;;  %v6164_v36 = vld [vmem:[#allocation21_spill] sm:$0xff]  ;;  %v6176_v21 = vld [vmem:[#allocation23_spill] sm:$0xff]  ;;  %v6185_v0 = vld [vmem:[#allocation28_spill] sm:$0xff] }
 0x325   : > { %2290 = vmatpush.bf16.msra.mxu1 %v6133_v62  ;;  %v5130_v62 = vpop.eup %3338  ;;  %v6184_v13 = vld [vmem:[#allocation25_spill] sm:$0xff] }
 0x326   : > { %2241 = vmatpush.bf16.msra.mxu0 %v6130_v30  ;;  %3342 = vpow2.f32 %v1935_v26  ;;  %v6159_v30 = vld [vmem:[#allocation19_spill] sm:$0xff]  ;;  %6162 = vst [vmem:[#allocation81_spill] sm:$0xff] %v5130_v62  ;;  %v6165_v26 = vpack.c.bf16 %v6163_v1, %v6164_v36  ;;  %v5135_v7 = vpop.eup %3340  ;;  %v6196_v1 = vld [vmem:[#allocation88_spill] sm:$0xff] }
 0x327   : > { %2338 = vmatpush.bf16.msra.mxu2 %v6138_v52  ;;  %2387 = vmatpush.bf16.msra.mxu3 %v6143_v14  ;;  %3344 = vpow2.f32 %v1937_v25  ;;  %v6161_v41 = vpack.c.bf16 %v6159_v30, %v6160_v23  ;;  %6166 = vst [vmem:[#allocation94_spill] sm:$0xff] %v5135_v7  ;;  %v6175_v25 = vld [vmem:[#allocation24_spill] sm:$0xff]  ;;  %v6178_v14 = vld [vmem:[#allocation27_spill] sm:$0xff]  ;;  %v2206_v35 = vpack.c.bf16 %v5135_v7, %v6182_v34  ;;  %v6193_v30 = vld [vmem:[#allocation57_spill] sm:$0xff] }
 0x328   : > { %v6177_v28 = vpack.c.bf16 %v6175_v25, %v6176_v21  ;;  %v6180_v59 = vpack.c.bf16 %v6178_v14, %v6179_v15  ;;  %v1388_v25 = vpack.c.bf16 %v4976_v49, %v4883_v12  ;;  %v6201_v21 = vld [vmem:[#allocation91_spill] sm:$0xff]  ;;  %v1389_v34 = vpack.c.bf16 %v4994_v27, %v4960_v8 }
 0x329   : > { %2291 = vmatpush.bf16.msra.mxu1 %v6149_v47  ;;  %v6183_v47 = vpack.c.bf16 %v6068_v46, %v4668_v58  ;;  %v6191_v58 = vld [vmem:[#allocation35_spill] sm:$0xff]  ;;  %v1391_v12 = vpack.c.bf16 %v4924_v29, %v4894_v45  ;;  %v1393_v49 = vpack.c.bf16 %v4970_v57, %v4919_v17  ;;  %v6209_v45 = vld [vmem:[#allocation153_spill] sm:$0xff] }
 0x32a   : > { %2242 = vmatpush.bf16.msra.mxu0 %v6146_v51  ;;  %v6181_v51 = vpack.c.bf16 %v6062_v24, %v4664_v32  ;;  %v6187_v32 = vld [vmem:[#allocation31_spill] sm:$0xff]  ;;  %v6188_v24 = vld [vmem:[#allocation30_spill] sm:$0xff] }
 0x32b   : > { %2339 = vmatpush.bf16.msra.mxu2 %v6152_v56  ;;  %2388 = vmatpush.bf16.msra.mxu3 %v6155_v40  ;;  %v6186_v56 = vpack.c.bf16 %v6184_v13, %v6185_v0  ;;  %v6189_v40 = vpack.c.bf16 %v6187_v32, %v6188_v24  ;;  %v6203_v15 = vld [vmem:[#allocation95_spill] sm:$0xff]  ;;  %v6212_v0 = vld [vmem:[#allocation158_spill] sm:$0xff]  ;;  %v6217_v32 = vld [vmem:[#allocation161_spill] sm:$0xff] }
 0x32c   : > { %1505 = vmatmul.bf16.gmra.mxu1 %v6158_v38  ;;  %v5140_v52 = vpop.eup %3342  ;;  %v6192_v38 = vld [vmem:[#allocation58_spill] sm:$0xff]  ;;  %v6205_v8 = vld [vmem:[#allocation151_spill] sm:$0xff]  ;;  %v6218_v24 = vld [vmem:[#allocation165_spill] sm:$0xff] }
 0x32d   : > { %1456 = vmatmul.bf16.gmra.mxu0 %v6156_v39  ;;  %2292 = vmatpush.bf16.msra.mxu1 %v6165_v26  ;;  %6170 = vst [vmem:[#allocation106_spill] sm:$0xff] %v5140_v52  ;;  %v5145_v2 = vpop.eup %3344  ;;  %v2195_v44 = vpack.c.bf16 %v5122_v48, %v5140_v52  ;;  %v6190_v39 = vld [vmem:[#allocation34_spill] sm:$0xff]  ;;  %v6194_v23 = vpack.c.bf16 %v6192_v38, %v6193_v30  ;;  %v6213_v17 = vld [vmem:[#allocation159_spill] sm:$0xff]  ;;  %v6222_v30 = vld [vmem:[#allocation93_spill] sm:$0xff] }
 0x32e   : > { %2243 = vmatpush.bf16.msra.mxu0 %v6161_v41  ;;  %6174 = vst [vmem:[#allocation107_spill] sm:$0xff] %v5145_v2  ;;  %v2196_v60 = vpack.c.bf16 %v5130_v62, %v5145_v2  ;;  %v2191_v46 = vpack.c.bf16 %v6191_v58, %v6190_v39  ;;  %v6195_v41 = vld [vmem:[#allocation87_spill] sm:$0xff]  ;;  %v6197_v26 = vld [vmem:[#allocation90_spill] sm:$0xff] }
 0x32f   : > { %2340 = vmatpush.bf16.msra.mxu2 %v6169_v6  ;;  %2389 = vmatpush.bf16.msra.mxu3 %v6173_v63  ;;  %v2192_v36 = vpack.c.bf16 %v6196_v1, %v6195_v41  ;;  %v2197_v22 = vpack.c.bf16 %v6198_v18, %v6197_v26  ;;  %v6199_v6 = vld [vmem:[#allocation100_spill] sm:$0xff]  ;;  %v1387_v63 = vpack.c.bf16 %v4972_v37, %v4874_v53  ;;  %v6219_v39 = vld [vmem:[#allocation162_spill] sm:$0xff]  ;;  %v6221_v38 = vld [vmem:[#allocation167_spill] sm:$0xff] }
 0x330   : > { %v2198_v11 = vpack.c.bf16 %v6200_v9, %v6199_v6  ;;  %v1390_v53 = vpack.c.bf16 %v4998_v50, %v4966_v16  ;;  %v1392_v37 = vpack.c.bf16 %v4936_v31, %v4902_v19  ;;  %v6206_v16 = vld [vmem:[#allocation155_spill] sm:$0xff]  ;;  %v6207_v50 = vld [vmem:[#allocation152_spill] sm:$0xff]  ;;  %v6210_v19 = vld [vmem:[#allocation157_spill] sm:$0xff] }
 0x331   : > { %2293 = vmatpush.bf16.msra.mxu1 %v6180_v59  ;;  %1554 = vmatmul.bf16.gmra.mxu2 %v6181_v51  ;;  %v6204_v59 = vld [vmem:[#allocation98_spill] sm:$0xff]  ;;  %v1395_v27 = vpack.c.bf16 %v6206_v16, %v6205_v8  ;;  %v1397_v29 = vpack.c.bf16 %v6210_v19, %v6209_v45  ;;  %v6223_v41 = vld [vmem:[#allocation168_spill] sm:$0xff]  ;;  %v6224_v1 = vld [vmem:[#allocation171_spill] sm:$0xff] }
 0x332   : > { %2244 = vmatpush.bf16.msra.mxu0 %v6177_v28  ;;  %1603 = vmatmul.bf16.gmra.mxu3 %v6183_v47  ;;  %v6202_v28 = vld [vmem:[#allocation92_spill] sm:$0xff]  ;;  %v2194_v51 = vpack.c.bf16 %v6204_v59, %v6203_v15  ;;  %v6211_v31 = vld [vmem:[#allocation154_spill] sm:$0xff]  ;;  %v6225_v26 = vld [vmem:[#allocation169_spill] sm:$0xff] }
 0x333   : > { %2341 = vmatpush.bf16.msra.mxu2 %v6186_v56  ;;  %2390 = vmatpush.bf16.msra.mxu3 %v2206_v35  ;;  %v2193_v14 = vpack.c.bf16 %v6202_v28, %v6201_v21  ;;  %v1394_v35 = vpack.c.bf16 %v4978_v54, %v4945_v10  ;;  %v6208_v47 = vld [vmem:[#allocation156_spill] sm:$0xff]  ;;  %v1398_v56 = vpack.c.bf16 %v6212_v0, %v6211_v31  ;;  %v6214_v10 = vld [vmem:[#allocation163_spill] sm:$0xff]  ;;  %v6220_v58 = vld [vmem:[#allocation166_spill] sm:$0xff] }
 0x334   : > { %v1396_v13 = vpack.c.bf16 %v6208_v47, %v6207_v50  ;;  %v1399_v57 = vpack.c.bf16 %v6214_v10, %v6213_v17  ;;  %v6215_v54 = vld [vmem:[#allocation160_spill] sm:$0xff]  ;;  %v6227_v6 = vld [vmem:[#allocation170_spill] sm:$0xff]  ;;  %v1410_v21 = vpack.c.bf16 %v4948_v5, %v4912_v33 }
 0x335   : > { %2294 = vmatpush.bf16.msra.mxu1 %v2196_v60  ;;  %v6226_v18 = vld [vmem:[#allocation96_spill] sm:$0xff]  ;;  %v1406_v9 = vpack.c.bf16 %v4889_v4, %v6227_v6 }
 0x336   : > { %2245 = vmatpush.bf16.msra.mxu0 %v2195_v44  ;;  %v6216_v44 = vld [vmem:[#allocation164_spill] sm:$0xff] }
 0x337   : > { %2342 = vmatpush.bf16.msra.mxu2 %v6189_v40  ;;  %2391 = vmatpush.bf16.msra.mxu3 %v6194_v23  ;;  %v1400_v60 = vpack.c.bf16 %v6216_v44, %v6215_v54  ;;  %v1401_v40 = vpack.c.bf16 %v6218_v24, %v6217_v32  ;;  %v1403_v23 = vpack.c.bf16 %v6222_v30, %v6221_v38  ;;  %v5304_v30 = vpop.xlane.xlu2 %1347 }
 0x339   : > { %2295 = vmatpush.bf16.msra.mxu1 %v2192_v36  ;;  %v1404_v36 = vpack.c.bf16 %v6224_v1, %v6223_v41  ;;  %v5306_v41 = vpop.xlane.xlu1 %1342 }
 0x33a   : > { %2246 = vmatpush.bf16.msra.mxu0 %v2191_v46  ;;  %v1402_v46 = vpack.c.bf16 %v6220_v58, %v6219_v39 }
 0x33b   : > { %2343 = vmatpush.bf16.msra.mxu2 %v2197_v22  ;;  %2392 = vmatpush.bf16.msra.mxu3 %v2198_v11  ;;  %v1405_v22 = vpack.c.bf16 %v6226_v18, %v6225_v26  ;;  %v1407_v11 = vpack.c.bf16 %v4930_v3, %v4898_v61 }
 0x33c   : > { %1510 = vmatmul.bf16.gmra.mxu1 %v1388_v25  ;;  %v1409_v25 = vpack.c.bf16 %v4941_v42, %v4908_v55 }
 0x33d   : > { %1461 = vmatmul.bf16.gmra.mxu0 %v1387_v63  ;;  %v1408_v63 = vpack.c.bf16 %v4934_v20, %v4900_v43 }
 0x33f   : > { %2344 = vmatpush.bf16.msra.mxu2 %v2193_v14  ;;  %2393 = vmatpush.bf16.msra.mxu3 %v2194_v51  ;;  %v1358_v18 = vpop.xlane.xlu2 %1357 }
 0x341   : > { %1559 = vmatmul.bf16.gmra.mxu2 %v1389_v34 }
 0x342   : > { %1608 = vmatmul.bf16.gmra.mxu3 %v1390_v53 }
 0x34c   : > { %1515 = vmatmul.bf16.gmra.mxu1 %v1392_v37 }
 0x34d   : > { %1466 = vmatmul.bf16.gmra.mxu0 %v1391_v12 }
 0x351   : > { %1564 = vmatmul.bf16.gmra.mxu2 %v1393_v49 }
 0x352   : > { %1613 = vmatmul.bf16.gmra.mxu3 %v1394_v35 }
 0x35c   : > { %1520 = vmatmul.bf16.gmra.mxu1 %v1396_v13 }
 0x35d   : > { %1471 = vmatmul.bf16.gmra.mxu0 %v1395_v27 }
 0x361   : > { %1569 = vmatmul.bf16.gmra.mxu2 %v1397_v29 }
 0x362   : > { %1618 = vmatmul.bf16.gmra.mxu3 %v1398_v56 }
 0x36c   : > { %1525 = vmatmul.bf16.gmra.mxu1 %v1400_v60 }
 0x36d   : > { %1476 = vmatmul.bf16.gmra.mxu0 %v1399_v57 }
 0x371   : > { %1574 = vmatmul.bf16.gmra.mxu2 %v1401_v40 }
 0x372   : > { %1623 = vmatmul.bf16.gmra.mxu3 %v1402_v46 }
 0x37c   : > { %1530 = vmatmul.bf16.gmra.mxu1 %v1404_v36 }
 0x37d   : > { %1481 = vmatmul.bf16.gmra.mxu0 %v1403_v23 }
 0x381   : > { %1579 = vmatmul.bf16.gmra.mxu2 %v1405_v22  ;;  %v1353_v22 = vpop.xlane.xlu1 %1352 }
 0x382   : > { %1628 = vmatmul.bf16.gmra.mxu3 %v1406_v9 }
 0x38c   : > { %1535 = vmatmul.bf16.gmra.mxu1 %v1408_v63 }
 0x38d   : > { %1486 = vmatmul.bf16.gmra.mxu0 %v1407_v11 }
 0x391   : > { %1584 = vmatmul.bf16.gmra.mxu2 %v1409_v25  ;;  %v1368_v25 = vpop.xlane.xlu2 %1367 }
 0x392   : > { %1633 = vmatmul.bf16.gmra.mxu3 %v1410_v21  ;;  %v1363_v21 = vpop.xlane.xlu1 %1362 }
 0x399   : > { %v5236_v4 = vpop.f32.mrf.mxu1 }
 0x39a   : > { %v5234_v28 = vpop.f32.mrf.mxu0  ;;  %6229 = vst [vmem:[#allocation104_spill] sm:$0xff] %v5236_v4 }
 0x39b   : > { %6228 = vst [vmem:[#allocation82_spill] sm:$0xff] %v5234_v28 }
 0x3a1   : > { %v5240_v61 = vpop.f32.mrf.mxu1 }
 0x3a2   : > { %v5238_v14 = vpop.f32.mrf.mxu0  ;;  %6231 = vst [vmem:[#allocation84_spill] sm:$0xff] %v5240_v61 }
 0x3a3   : > { %6230 = vst [vmem:[#allocation83_spill] sm:$0xff] %v5238_v14 }
 0x3a4   : > { %v5242_v3 = vpop.f32.mrf.mxu2 }
 0x3a5   : > { %6232 = vst [vmem:[#allocation105_spill] sm:$0xff] %v5242_v3  ;;  %v5244_v43 = vpop.f32.mrf.mxu3 }
 0x3a6   : > { %6233 = vst [vmem:[#allocation85_spill] sm:$0xff] %v5244_v43 }
 0x3a9   : > { %v5248_v55 = vpop.f32.mrf.mxu1 }
 0x3aa   : > { %v5246_v20 = vpop.f32.mrf.mxu0  ;;  %6235 = vst [vmem:[#allocation116_spill] sm:$0xff] %v5248_v55 }
 0x3ab   : > { %6234 = vst [vmem:[#allocation86_spill] sm:$0xff] %v5246_v20 }
 0x3ac   : > { %v5250_v42 = vpop.f32.mrf.mxu2 }
 0x3ad   : > { %6236 = vst [vmem:[#allocation133_spill] sm:$0xff] %v5250_v42  ;;  %v5252_v33 = vpop.f32.mrf.mxu3 }
 0x3ae   : > { %6237 = vst [vmem:[#allocation134_spill] sm:$0xff] %v5252_v33 }
 0x3b1   : > { %v5256_v15 = vpop.f32.mrf.mxu1 }
 0x3b2   : > { %v5254_v5 = vpop.f32.mrf.mxu0 }
 0x3b4   : > { %v5258_v59 = vpop.f32.mrf.mxu2 }
 0x3b5   : > { %6238 = vst [vmem:[#allocation143_spill] sm:$0xff] %v5258_v59  ;;  %v5260_v51 = vpop.f32.mrf.mxu3 }
 0x3b6   : > { %6239 = vst [vmem:[#allocation147_spill] sm:$0xff] %v5260_v51 }
 0x3b9   : > { %v5264_v53 = vpop.f32.mrf.mxu1 }
 0x3ba   : > { %v5262_v34 = vpop.f32.mrf.mxu0 }
 0x3bc   : > { %v5266_v12 = vpop.f32.mrf.mxu2 }
 0x3bd   : > { %6240 = vst [vmem:[#allocation144_spill] sm:$0xff] %v5266_v12  ;;  %v5268_v37 = vpop.f32.mrf.mxu3 }
 0x3be   : > { %6241 = vst [vmem:[#allocation148_spill] sm:$0xff] %v5268_v37 }
 0x3c1   : > { %v5272_v35 = vpop.f32.mrf.mxu1 }
 0x3c2   : > { %v5270_v49 = vpop.f32.mrf.mxu0 }
 0x3c4   : > { %v5274_v8 = vpop.f32.mrf.mxu2 }
 0x3c5   : > { %v5276_v16 = vpop.f32.mrf.mxu3 }
 0x3c6   : > { %6242 = vst [vmem:[#allocation118_spill] sm:$0xff] %v5276_v16 }
 0x3c9   : > { %v5280_v50 = vpop.f32.mrf.mxu1 }
 0x3ca   : > { %v5278_v27 = vpop.f32.mrf.mxu0 }
 0x3cc   : > { %v5282_v47 = vpop.f32.mrf.mxu2 }
 0x3cd   : > { %v5284_v13 = vpop.f32.mrf.mxu3 }
 0x3ce   : > { %6243 = vst [vmem:[#allocation135_spill] sm:$0xff] %v5284_v13 }
 0x3d1   : > { %v5288_v19 = vpop.f32.mrf.mxu1 }
 0x3d2   : > { %v5286_v45 = vpop.f32.mrf.mxu0 }
 0x3d4   : > { %v5290_v29 = vpop.f32.mrf.mxu2 }
 0x3d5   : > { %v5292_v31 = vpop.f32.mrf.mxu3 }
 0x3d9   : > { %v1521_v56 = vpop.f32.mrf.mxu1 }
 0x3da   : > { %v1472_v0 = vpop.f32.mrf.mxu0 }
 0x3db   : > { %v1522_v17 = vadd.f32 %v1521_v56, %v1472_v0 }
 0x3dc   : > { %v5294_v10 = vpop.f32.mrf.mxu2 }
 0x3dd   : > { %v5296_v57 = vpop.f32.mrf.mxu3 }
 0x3e1   : > { %v1523_v44 = vpop.f32.mrf.mxu1 }
 0x3e2   : > { %v1474_v54 = vpop.f32.mrf.mxu0 }
 0x3e4   : > { %v1570_v60 = vpop.f32.mrf.mxu2 }
 0x3e5   : > { %v1571_v32 = vadd.f32 %v1570_v60, %v1522_v17  ;;  %v1619_v24 = vpop.f32.mrf.mxu3 }
 0x3e7   : > { %v5298_v40 = vadd.f32 %v1619_v24, %v1571_v32  ;;  %v1378_v32 = vpop.xlane.xlu2 %1377  ;;  %v1373_v24 = vpop.xlane.xlu1 %1372 }
 0x3e8   : > { %3346 = vrcp.f32 %v1373_v24  ;;  %v1680_v24 = vld [vmem:[#allocation5 + $0x48] sm:$0xff] }
 0x3e9   : > { %6244 = vst [vmem:[#allocation145_spill] sm:$0xff] %v5298_v40  ;;  %v1526_v58 = vpop.f32.mrf.mxu1  ;;  %3348 = vrcp.f32 %v1368_v25  ;;  %v1524_v25 = vadd.f32 %v1523_v44, %v1474_v54 }
 0x3ea   : > { %v1477_v39 = vpop.f32.mrf.mxu0  ;;  %3350 = vrcp.f32 %v1378_v32  ;;  %v1509_v32 = vadd.f32 %v5256_v15, %v5254_v5  ;;  %v6249_v5 = vld [vmem:[#allocation135_spill] sm:$0xff] }
 0x3eb   : > { %3352 = vrcp.f32 %v1363_v21 }
 0x3ec   : > { %v5300_v46 = vpop.f32.mrf.mxu2  ;;  %3354 = vrcp.f32 %v1358_v18 }
 0x3ed   : > { %v5302_v38 = vpop.f32.mrf.mxu3  ;;  %3356 = vrcp.f32 %v1353_v22 }
 0x3ee   : > { %3358 = vrcp.f32 %v5304_v30 }
 0x3ef   : > { %v1338_v52 = vpop.xlane.xlu2 %1337  ;;  %v5310_v43 = vpop.xlane.xlu1 %1332  ;;  %3360 = vrcp.f32 %v5306_v41 }
 0x3f0   : > { %3362 = vrcp.f32 %v1338_v52  ;;  %v1681_v52 = vld [vmem:[#allocation5 + $0x50] sm:$0xff] }
 0x3f1   : > { %v1528_v1 = vpop.f32.mrf.mxu1  ;;  %3364 = vrcp.f32 %v5310_v43 }
 0x3f2   : > { %v1479_v23 = vpop.f32.mrf.mxu0 }
 0x3f3   : > { %v1529_v14 = vadd.f32 %v1528_v1, %v1479_v23  ;;  %v1683_v1 = vld [vmem:[#allocation5 + $0x60] sm:$0xff] }
 0x3f4   : > { %v1575_v36 = vpop.f32.mrf.mxu2 }
 0x3f5   : > { %v5308_v26 = vpop.f32.mrf.mxu3 }
 0x3f7   : > { %v5312_v61 = vpop.xlane.xlu2 %1327  ;;  %v5314_v40 = vpop.xlane.xlu1 %1322 }
 0x3f8   : > { %3366 = vrcp.f32 %v5312_v61  ;;  %v6248_v61 = vld [vmem:[#allocation144_spill] sm:$0xff] }
 0x3f9   : > { %v1531_v9 = vpop.f32.mrf.mxu1  ;;  %3368 = vrcp.f32 %v5314_v40 }
 0x3fa   : > { %v1482_v6 = vpop.f32.mrf.mxu0 }
 0x3fb   : > { %v1532_v16 = vadd.f32 %v1531_v9, %v1482_v6 }
 0x3fc   : > { %v1577_v11 = vpop.f32.mrf.mxu2 }
 0x3fd   : > { %v1626_v63 = vpop.f32.mrf.mxu3 }
 0x401   : > { %v1533_v56 = vpop.f32.mrf.mxu1 }
 0x402   : > { %v1484_v0 = vpop.f32.mrf.mxu0 }
 0x403   : > { %v1534_v37 = vadd.f32 %v1533_v56, %v1484_v0  ;;  %v3347_v0 = vpop.eup %3346 }
 0x404   : > { %v1580_v17 = vpop.f32.mrf.mxu2 }
 0x405   : > { %v1629_v60 = vpop.f32.mrf.mxu3  ;;  %v1581_v13 = vadd.f32 %v1580_v17, %v1532_v16 }
 0x407   : > { %v1630_v9 = vadd.f32 %v1629_v60, %v1581_v13 }
 0x409   : > { %v1536_v2 = vpop.f32.mrf.mxu1 }
 0x40a   : > { %v1487_v48 = vpop.f32.mrf.mxu0 }
 0x40b   : > { %v1537_v51 = vadd.f32 %v1536_v2, %v1487_v48  ;;  %v1527_v48 = vadd.f32 %v1526_v58, %v1477_v39  ;;  %v1578_v2 = vadd.f32 %v1577_v11, %v1529_v14  ;;  %v1517_v58 = vadd.f32 %v5280_v50, %v5278_v27  ;;  %v1682_v11 = vld [vmem:[#allocation5 + $0x58] sm:$0xff] }
 0x40c   : > { %v1582_v7 = vpop.f32.mrf.mxu2 }
 0x40d   : > { %v1631_v62 = vpop.f32.mrf.mxu3  ;;  %v1583_v59 = vadd.f32 %v1582_v7, %v1534_v37  ;;  %v3349_v7 = vpop.eup %3348  ;;  %v1576_v37 = vadd.f32 %v1575_v36, %v1527_v48  ;;  %v1566_v41 = vadd.f32 %v5290_v29, %v1517_v58 }
 0x40e   : > { %v3351_v16 = vpop.eup %3350  ;;  %v1318_v36 = vpop.xlane.xlu2 %1317 }
 0x40f   : > { %3370 = vrcp.f32 %v1318_v36 }
 0x411   : > { %v1538_v28 = vpop.f32.mrf.mxu1 }
 0x412   : > { %v1489_v4 = vpop.f32.mrf.mxu0 }
 0x413   : > { %v1539_v12 = vadd.f32 %v1538_v28, %v1489_v4  ;;  %v1685_v28 = vld [vmem:[#allocation5 + $0x70] sm:$0xff]  ;;  %v1686_v4 = vld [vmem:[#allocation5 + $0x78] sm:$0xff] }
 0x414   : > { %v1585_v33 = vpop.f32.mrf.mxu2 }
 0x415   : > { %v1634_v3 = vpop.f32.mrf.mxu3  ;;  %v1586_v42 = vadd.f32 %v1585_v33, %v1537_v51  ;;  %v1632_v33 = vadd.f32 %v1631_v62, %v1583_v59  ;;  %v3353_v62 = vpop.eup %3352  ;;  %v1684_v59 = vld [vmem:[#allocation5 + $0x68] sm:$0xff] }
 0x416   : > { %v3355_v44 = vpop.eup %3354 }
 0x417   : > { %v1635_v55 = vadd.f32 %v1634_v3, %v1586_v42  ;;  %v1573_v3 = vadd.f32 %v5300_v46, %v1524_v25  ;;  %v1627_v42 = vadd.f32 %v1626_v63, %v1578_v2  ;;  %v1668_v39 = vmul.f32 %v3349_v7, %v1632_v33  ;;  %v3357_v22 = vpop.eup %3356  ;;  %v1313_v63 = vpop.xlane.xlu1 %1312  ;;  %v6246_v2 = vld [vmem:[#allocation86_spill] sm:$0xff]  ;;  %v6247_v33 = vld [vmem:[#allocation116_spill] sm:$0xff]  ;;  %v1679_v25 = vld [vmem:[#allocation5 + $0x40] sm:$0xff] }
 0x418   : > { %v3359_v50 = vpop.eup %3358  ;;  %3372 = vrcp.f32 %v1313_v63 }
 0x419   : > { %v1669_v56 = vmul.f32 %v3347_v0, %v1635_v55  ;;  %v1667_v55 = vmul.f32 %v3353_v62, %v1630_v9  ;;  %v1622_v30 = vadd.f32 %v5302_v38, %v1573_v3  ;;  %v1666_v18 = vmul.f32 %v3355_v44, %v1627_v42  ;;  %v3361_v60 = vpop.eup %3360  ;;  %v6251_v9 = vld [vmem:[#allocation84_spill] sm:$0xff]  ;;  %v6254_v62 = vld [vmem:[#allocation82_spill] sm:$0xff] }
 0x41a   : > { %v1558_v0 = vadd.f32 %v6248_v61, %v1509_v32  ;;  %v6257_v44 = vld [vmem:[#allocation148_spill] sm:$0xff] }
 0x41b   : > { %v1701_v13 = vmul.f32 %v1685_v28, %v1669_v56  ;;  %v1699_v27 = vmul.f32 %v1683_v1, %v1667_v55  ;;  %v1698_v17 = vmul.f32 %v1682_v11, %v1666_v18  ;;  %v1308_v28 = vpop.xlane.xlu2 %1307  ;;  %v6258_v18 = vld [vmem:[#allocation105_spill] sm:$0xff] }
 0x41c   : > { %v1587_v20 = vpop.f32.mrf.mxu2  ;;  %v1607_v58 = vadd.f32 %v6257_v44, %v1558_v0  ;;  %3374 = vrcp.f32 %v1308_v28 }
 0x41d   : > { %v1588_v51 = vadd.f32 %v1587_v20, %v1539_v12  ;;  %v1636_v6 = vpop.f32.mrf.mxu3  ;;  %v1519_v20 = vadd.f32 %v5288_v19, %v5286_v45  ;;  %v1625_v12 = vadd.f32 %v5308_v26, %v1576_v37  ;;  %v1700_v45 = vmul.f32 %v1684_v59, %v1668_v39  ;;  %v6250_v37 = vld [vmem:[#allocation83_spill] sm:$0xff] }
 0x41e   : > { %v1514_v26 = vadd.f32 %v5272_v35, %v5270_v49  ;;  %v1664_v35 = vmul.f32 %v3359_v50, %v1622_v30  ;;  %v1504_v56 = vadd.f32 %v6251_v9, %v6250_v37  ;;  %v6266_v9 = vld [vmem:[#allocation97_spill] sm:$0xff] }
 0x41f   : > { %v1637_v23 = vadd.f32 %v1636_v6, %v1588_v51  ;;  %v1568_v46 = vadd.f32 %v5294_v10, %v1519_v20  ;;  %v1665_v21 = vmul.f32 %v3357_v22, %v1625_v12  ;;  %v1512_v10 = vadd.f32 %v5264_v53, %v5262_v34  ;;  %v6245_v53 = vld [vmem:[#allocation145_spill] sm:$0xff]  ;;  %v6255_v20 = vld [vmem:[#allocation104_spill] sm:$0xff]  ;;  %v6259_v22 = vld [vmem:[#allocation147_spill] sm:$0xff] }
 0x420   : > { %v1563_v38 = vadd.f32 %v5282_v47, %v1514_v26  ;;  %v1709_v29 = vpack.c.bf16 %v1700_v45, %v1699_v27  ;;  %v1615_v34 = vadd.f32 %v5292_v31, %v1566_v41  ;;  %v1663_v47 = vmul.f32 %v3361_v60, %v6245_v53  ;;  %v6256_v12 = vld [vmem:[#allocation133_spill] sm:$0xff]  ;;  %v6260_v27 = vld [vmem:[#allocation134_spill] sm:$0xff] }
 0x421   : > { %v1670_v14 = vmul.f32 %v3351_v16, %v1637_v23  ;;  %v1617_v49 = vadd.f32 %v5296_v57, %v1568_v46  ;;  %v1561_v43 = vadd.f32 %v5274_v8, %v1512_v10  ;;  %v1697_v48 = vmul.f32 %v1681_v52, %v1665_v21  ;;  %v3363_v57 = vpop.eup %3362  ;;  %v6252_v23 = vld [vmem:[#allocation143_spill] sm:$0xff]  ;;  %v1678_v16 = vld [vmem:[#allocation5 + $0x38] sm:$0xff] }
 0x422   : > { %v1507_v51 = vadd.f32 %v6247_v33, %v6246_v2  ;;  %v1612_v15 = vadd.f32 %v6249_v5, %v1563_v38  ;;  %v1696_v31 = vmul.f32 %v1680_v24, %v1664_v35  ;;  %v3365_v7 = vpop.eup %3364  ;;  %v1695_v39 = vmul.f32 %v1679_v25, %v1663_v47  ;;  %v1675_v21 = vld [vmem:[#allocation5 + $0x20] sm:$0xff]  ;;  %v1674_v35 = vld [vmem:[#allocation5 + $0x18] sm:$0xff]  ;;  %v1673_v24 = vld [vmem:[#allocation5 + $0x10] sm:$0xff] }
 0x423   : > { %v1702_v54 = vmul.f32 %v1686_v4, %v1670_v14  ;;  %v1662_v8 = vmul.f32 %v3363_v57, %v1617_v49  ;;  %v1708_v6 = vpack.c.bf16 %v1698_v17, %v1697_v48  ;;  %v6253_v4 = vld [vmem:[#allocation118_spill] sm:$0xff]  ;;  %v1661_v42 = vmul.f32 %v3365_v7, %v1615_v34  ;;  %v3367_v14 = vpop.eup %3366  ;;  %v6261_v17 = vld [vmem:[#allocation85_spill] sm:$0xff]  ;;  %v1672_v57 = vld [vmem:[#allocation5 + $0x8] sm:$0xff] }
 0x424   : > { %v1556_v40 = vadd.f32 %v6252_v23, %v1507_v51  ;;  %v1610_v3 = vadd.f32 %v6253_v4, %v1561_v43  ;;  %v1502_v59 = vadd.f32 %v6255_v20, %v6254_v62  ;;  %v1553_v55 = vadd.f32 %v6256_v12, %v1504_v56  ;;  %v3369_v30 = vpop.eup %3368  ;;  %v1671_v51 = vld [vmem:[#allocation5] sm:$0xff]  ;;  %v6267_v23 = vld [vmem:[#allocation81_spill] sm:$0xff] }
 0x425   : > { %v1710_v19 = vpack.c.bf16 %v1702_v54, %v1701_v13  ;;  %v1677_v13 = vld [vmem:[#allocation5 + $0x30] sm:$0xff]  ;;  %v1303_v54 = vpop.xlane.xlu1 %1302  ;;  %v1660_v46 = vmul.f32 %v3367_v14, %v1612_v15  ;;  %v1694_v1 = vmul.f32 %v1678_v16, %v1662_v8  ;;  %v1707_v36 = vpack.c.bf16 %v1696_v31, %v1695_v39  ;;  %v3371_v41 = vpop.eup %3370  ;;  %v6262_v15 = vld [vmem:[#allocation42_spill] sm:$0xff]  ;;  %v6265_v7 = vld [vmem:[#allocation107_spill] sm:$0xff] }
 0x426   : > { %v1551_v45 = vadd.f32 %v6258_v18, %v1502_v59  ;;  %v1605_v26 = vadd.f32 %v6259_v22, %v1556_v40  ;;  %v1659_v11 = vmul.f32 %v3369_v30, %v1610_v3  ;;  %v1693_v63 = vmul.f32 %v1677_v13, %v1661_v42  ;;  %v3373_v49 = vpop.eup %3372  ;;  %v6263_v8 = vld [vmem:[#allocation106_spill] sm:$0xff]  ;;  %v6268_v42 = vld [vmem:[#allocation101_spill] sm:$0xff]  ;;  %v6269_v62 = vld [vmem:[#allocation103_spill] sm:$0xff] }
 0x427   : > { %2910 = vmatpush.lsf.bf16.msrb.mxu0 %v1710_v19  ;;  %2938 = vmatpush.lsf.bf16.msrb.mxu1 %v1710_v19  ;;  %3376 = vrcp.f32 %v1303_v54  ;;  %v1602_v50 = vadd.f32 %v6260_v27, %v1553_v55  ;;  %v1658_v10 = vmul.f32 %v3371_v41, %v1607_v58  ;;  %v3375_v43 = vpop.eup %3374  ;;  %v2048_v31 = vadd.f32 %v6263_v8, %v6262_v15 }
 0x428   : > { %2966 = vmatpush.lsf.bf16.msrb.mxu2 %v1710_v19  ;;  %2994 = vmatpush.lsf.bf16.msrb.mxu3 %v1710_v19  ;;  %v1676_v19 = vld [vmem:[#allocation5 + $0x28] sm:$0xff]  ;;  %v1706_v52 = vpack.c.bf16 %v1694_v1, %v1693_v63  ;;  %v1657_v60 = vmul.f32 %v3373_v49, %v1605_v26  ;;  %v1691_v32 = vmul.f32 %v1675_v21, %v1659_v11  ;;  %v2068_v39 = vrot.slane %v6268_v42, 4 }
 0x429   : > { %v1692_v38 = vmul.f32 %v1676_v19, %v1660_v46  ;;  %v1656_v34 = vmul.f32 %v3375_v43, %v1602_v50  ;;  %v1690_v53 = vmul.f32 %v1674_v35, %v1658_v10  ;;  %v2049_v56 = vadd.f32 %v6266_v9, %v2048_v31  ;;  %v6270_v50 = vld [vmem:[#allocation29_spill] sm:$0xff]  ;;  %v6273_v49 = vld [vmem:[#allocation32_spill] sm:$0xff] }
 0x42a   : > { %v1689_v33 = vmul.f32 %v1673_v24, %v1657_v60  ;;  %v2077_v20 = vrot.slane %v6269_v62, 4  ;;  %v2069_v12 = vadd.f32 %v2068_v39, %v6268_v42  ;;  %v2086_v10 = vrot.slane %v6270_v50, 4  ;;  %v6275_v60 = vld [vmem:[#allocation94_spill] sm:$0xff] }
 0x42b   : > { %2911 = vmatpush.lsf.bf16.msrb.mxu0 %v1709_v29  ;;  %2939 = vmatpush.lsf.bf16.msrb.mxu1 %v1709_v29  ;;  %v1705_v47 = vpack.c.bf16 %v1692_v38, %v1691_v32  ;;  %v1688_v61 = vmul.f32 %v1672_v57, %v1656_v34  ;;  %v2050_v16 = vrot.slane %v2049_v56, 4  ;;  %v2095_v35 = vrot.slane %v6273_v49, 4 }
 0x42c   : > { %2967 = vmatpush.lsf.bf16.msrb.mxu2 %v1709_v29  ;;  %2995 = vmatpush.lsf.bf16.msrb.mxu3 %v1709_v29  ;;  %v1600_v29 = vadd.f32 %v6261_v17, %v1551_v45  ;;  %v1704_v0 = vpack.c.bf16 %v1690_v53, %v1689_v33  ;;  %v2078_v13 = vadd.f32 %v2077_v20, %v6269_v62  ;;  %v2070_v44 = vrot.slane %v2069_v12, 2 }
 0x42d   : > { %v3377_v48 = vpop.eup %3376  ;;  %v2051_v4 = vadd.f32 %v2050_v16, %v2049_v56  ;;  %v2087_v17 = vadd.f32 %v2086_v10, %v6270_v50  ;;  %v2096_v24 = vadd.f32 %v2095_v35, %v6273_v49 }
 0x42e   : > { %v1655_v2 = vmul.f32 %v3377_v48, %v1600_v29  ;;  %v2079_v46 = vrot.slane %v2078_v13, 2  ;;  %v6274_v29 = vld [vmem:[#allocation75_spill] sm:$0xff]  ;;  %v6276_v48 = vld [vmem:[#allocation33_spill] sm:$0xff] }
 0x42f   : > { %2912 = vmatpush.lsf.bf16.msrb.mxu0 %v1708_v6  ;;  %2940 = vmatpush.lsf.bf16.msrb.mxu1 %v1708_v6  ;;  %v2052_v14 = vrot.slane %v2051_v4, 2  ;;  %v2112_v32 = vadd.f32 %v6275_v60, %v6274_v29  ;;  %v2104_v57 = vrot.slane %v6276_v48, 4  ;;  %v2097_v8 = vrot.slane %v2096_v24, 2 }
 0x430   : > { %2968 = vmatpush.lsf.bf16.msrb.mxu2 %v1708_v6  ;;  %2996 = vmatpush.lsf.bf16.msrb.mxu3 %v1708_v6  ;;  %v1687_v25 = vmul.f32 %v1671_v51, %v1655_v2  ;;  %v6264_v6 = vld [vmem:[#allocation89_spill] sm:$0xff]  ;;  %v2080_v18 = vadd.f32 %v2079_v46, %v2078_v13 }
 0x431   : > { %v2057_v37 = vadd.f32 %v6265_v7, %v6264_v6  ;;  %v2053_v55 = vadd.f32 %v2052_v14, %v2051_v4  ;;  %v2105_v7 = vadd.f32 %v2104_v57, %v6276_v48  ;;  %v2098_v56 = vadd.f32 %v2097_v8, %v2096_v24  ;;  %v6291_v24 = vld [vmem:[#allocation48_spill] sm:$0xff] }
 0x432   : > { %v1703_v5 = vpack.c.bf16 %v1688_v61, %v1687_v25  ;;  %v2081_v22 = vrot.slane %v2080_v18, 1  ;;  %v2113_v25 = vrot.slane %v2112_v32, 4  ;;  %v6292_v57 = vld [vmem:[#allocation52_spill] sm:$0xff] }
 0x433   : > { %2913 = vmatpush.lsf.bf16.msrb.mxu0 %v1707_v36  ;;  %2941 = vmatpush.lsf.bf16.msrb.mxu1 %v1707_v36  ;;  %v2058_v40 = vadd.f32 %v6267_v23, %v2057_v37  ;;  %v2054_v58 = vrot.slane %v2053_v55, 1  ;;  %v2106_v16 = vrot.slane %v2105_v7, 2 }
 0x434   : > { %2969 = vmatpush.lsf.bf16.msrb.mxu2 %v1707_v36  ;;  %2997 = vmatpush.lsf.bf16.msrb.mxu3 %v1707_v36  ;;  %v2071_v36 = vadd.f32 %v2070_v44, %v2069_v12  ;;  %v2082_v11 = vadd.f32 %v2081_v22, %v2080_v18  ;;  %v2114_v9 = vadd.f32 %v2113_v25, %v2112_v32 }
 0x435   : > { %v2059_v28 = vrot.slane %v2058_v40, 4  ;;  %v2055_v30 = vadd.f32 %v2054_v58, %v2053_v55  ;;  %v2107_v13 = vadd.f32 %v2106_v16, %v2105_v7 }
 0x436   : > { %v2072_v19 = vrot.slane %v2071_v36, 1  ;;  %v2115_v14 = vrot.slane %v2114_v9, 2 }
 0x437   : > { %2914 = vmatpush.lsf.bf16.msrb.mxu0 %v1706_v52  ;;  %2942 = vmatpush.lsf.bf16.msrb.mxu1 %v1706_v52  ;;  %v2060_v3 = vadd.f32 %v2059_v28, %v2058_v40  ;;  %3378 = vrcp.f32 %v2055_v30 }
 0x438   : > { %2970 = vmatpush.lsf.bf16.msrb.mxu2 %v1706_v52  ;;  %2998 = vmatpush.lsf.bf16.msrb.mxu3 %v1706_v52  ;;  %v2073_v26 = vadd.f32 %v2072_v19, %v2071_v36  ;;  %v2116_v44 = vadd.f32 %v2115_v14, %v2114_v9  ;;  %v2108_v36 = vrot.slane %v2107_v13, 1  ;;  %v6293_v9 = vld [vmem:[#allocation55_spill] sm:$0xff] }
 0x439   : > { %v2061_v59 = vrot.slane %v2060_v3, 2 }
 0x43a   : > { %v2117_v22 = vrot.slane %v2116_v44, 1  ;;  %v2109_v50 = vadd.f32 %v2108_v36, %v2107_v13 }
 0x43b   : > { %2915 = vmatpush.lsf.bf16.msrb.mxu0 %v1705_v47  ;;  %2943 = vmatpush.lsf.bf16.msrb.mxu1 %v1705_v47  ;;  %v2062_v54 = vadd.f32 %v2061_v59, %v2060_v3  ;;  %v2099_v59 = vrot.slane %v2098_v56, 1 }
 0x43c   : > { %2971 = vmatpush.lsf.bf16.msrb.mxu2 %v1705_v47  ;;  %2999 = vmatpush.lsf.bf16.msrb.mxu3 %v1705_v47  ;;  %v2118_v10 = vadd.f32 %v2117_v22, %v2116_v44 }
 0x43d   : > { %v2063_v1 = vrot.slane %v2062_v54, 1  ;;  %v3379_v63 = vpop.eup %3378  ;;  %v2100_v58 = vadd.f32 %v2099_v59, %v2098_v56  ;;  %v2140_v56 = vrot.slane %v6293_v9, 4 }
 0x43f   : > { %2916 = vmatpush.lsf.bf16.msrb.mxu0 %v1704_v0  ;;  %2944 = vmatpush.lsf.bf16.msrb.mxu1 %v1704_v0  ;;  %v2064_v45 = vadd.f32 %v2063_v1, %v2062_v54 }
 0x440   : > { %2972 = vmatpush.lsf.bf16.msrb.mxu2 %v1704_v0  ;;  %3000 = vmatpush.lsf.bf16.msrb.mxu3 %v1704_v0  ;;  %v2088_v0 = vrot.slane %v2087_v17, 2 }
 0x441   : > { %3380 = vrcp.f32 %v2064_v45 }
 0x442   : > { %3382 = vrcp.f32 %v2073_v26  ;;  %v2089_v37 = vadd.f32 %v2088_v0, %v2087_v17 }
 0x443   : > { %2917 = vmatpush.lsf.bf16.msrb.mxu0 %v1703_v5  ;;  %2945 = vmatpush.lsf.bf16.msrb.mxu1 %v1703_v5  ;;  %3384 = vrcp.f32 %v2082_v11 }
 0x444   : > { %2973 = vmatpush.lsf.bf16.msrb.mxu2 %v1703_v5  ;;  %3001 = vmatpush.lsf.bf16.msrb.mxu3 %v1703_v5  ;;  %v2090_v39 = vrot.slane %v2089_v37, 1 }
 0x445   : > { %2918 = vllmr.16.mxu0  ;;  %2946 = vllmr.16.mxu1 }
 0x446   : > { %2974 = vllmr.16.mxu2  ;;  %3002 = vllmr.16.mxu3  ;;  %v2091_v54 = vadd.f32 %v2090_v39, %v2089_v37  ;;  %v6296_v39 = vld [vmem:[#allocation68_spill] sm:$0xff] }
 0x447   : > { %v3381_v41 = vpop.eup %3380  ;;  %v2149_v14 = vrot.slane %v6296_v39, 4 }
 0x448   : > { %v3383_v43 = vpop.eup %3382  ;;  %3386 = vrcp.f32 %v2091_v54 }
 0x449   : > { %v3385_v34 = vpop.eup %3384  ;;  %3388 = vrcp.f32 %v2100_v58  ;;  %v2150_v36 = vadd.f32 %v2149_v14, %v6296_v39  ;;  %v6301_v58 = vld [vmem:[#allocation79_spill] sm:$0xff] }
 0x44a   : > { %3390 = vrcp.f32 %v2109_v50  ;;  %v2176_v44 = vrot.slane %v6301_v58, 4 }
 0x44b   : > { %3392 = vrcp.f32 %v2118_v10 }
 0x44e   : > { %v5415_v49 = vpop.eup %3386 }
 0x44f   : > { %v3389_v29 = vpop.eup %3388 }
 0x450   : > { %v3391_v0 = vpop.eup %3390 }
 0x451   : > { %v3393_v8 = vpop.eup %3392 }
 0x466   : > { %2919 = vmatmul.lmr.bf16.vlgmr.msra.gmra.16.mxu0  ;;  %2947 = vmatmul.lmr.bf16.vlgmr.msra.gmra.16.mxu1 }
 0x467   : > { %2975 = vmatmul.lmr.bf16.vlgmr.msra.gmra.16.mxu2  ;;  %3003 = vmatmul.lmr.bf16.vlgmr.msra.gmra.16.mxu3 }
 0x46e   : > { %2920 = vmatmul.lmr.bf16.gmra.16.mxu0  ;;  %2948 = vmatmul.lmr.bf16.gmra.16.mxu1 }
 0x46f   : > { %2976 = vmatmul.lmr.bf16.gmra.16.mxu2  ;;  %3004 = vmatmul.lmr.bf16.gmra.16.mxu3 }
 0x476   : > { %2921 = vmatmul.lmr.bf16.gmra.16.mxu0  ;;  %2949 = vmatmul.lmr.bf16.gmra.16.mxu1 }
 0x477   : > { %2977 = vmatmul.lmr.bf16.gmra.16.mxu2  ;;  %3005 = vmatmul.lmr.bf16.gmra.16.mxu3 }
 0x47e   : > { %2922 = vmatmul.lmr.bf16.gmra.16.mxu0  ;;  %2950 = vmatmul.lmr.bf16.gmra.16.mxu1 }
 0x47f   : > { %2978 = vmatmul.lmr.bf16.gmra.16.mxu2  ;;  %3006 = vmatmul.lmr.bf16.gmra.16.mxu3 }
 0x486   : > { %2923 = vmatmul.lmr.bf16.gmra.16.mxu0  ;;  %2951 = vmatmul.lmr.bf16.gmra.16.mxu1 }
 0x487   : > { %2979 = vmatmul.lmr.bf16.gmra.16.mxu2  ;;  %3007 = vmatmul.lmr.bf16.gmra.16.mxu3 }
 0x48e   : > { %2924 = vmatmul.lmr.bf16.gmra.16.mxu0  ;;  %2952 = vmatmul.lmr.bf16.gmra.16.mxu1 }
 0x48f   : > { %2980 = vmatmul.lmr.bf16.gmra.16.mxu2  ;;  %3008 = vmatmul.lmr.bf16.gmra.16.mxu3 }
 0x496   : > { %2925 = vmatmul.lmr.bf16.gmra.16.mxu0  ;;  %2953 = vmatmul.lmr.bf16.gmra.16.mxu1 }
 0x497   : > { %2981 = vmatmul.lmr.bf16.gmra.16.mxu2  ;;  %3009 = vmatmul.lmr.bf16.gmra.16.mxu3 }
 0x49e   : > { %2926 = vmatmul.lmr.bf16.gmra.16.mxu0  ;;  %2954 = vmatmul.lmr.bf16.gmra.16.mxu1 }
 0x49f   : > { %2982 = vmatmul.lmr.bf16.gmra.16.mxu2  ;;  %3010 = vmatmul.lmr.bf16.gmra.16.mxu3 }
 0x4a6   : > { %2927 = vmatmul.lmr.bf16.gmra.16.mxu0  ;;  %2955 = vmatmul.lmr.bf16.gmra.16.mxu1 }
 0x4a7   : > { %2983 = vmatmul.lmr.bf16.gmra.16.mxu2  ;;  %3011 = vmatmul.lmr.bf16.gmra.16.mxu3 }
 0x4ae   : > { %2928 = vmatmul.lmr.bf16.gmra.16.mxu0  ;;  %2956 = vmatmul.lmr.bf16.gmra.16.mxu1 }
 0x4af   : > { %2984 = vmatmul.lmr.bf16.gmra.16.mxu2  ;;  %3012 = vmatmul.lmr.bf16.gmra.16.mxu3 }
 0x4b6   : > { %2929 = vmatmul.lmr.bf16.gmra.16.mxu0  ;;  %2957 = vmatmul.lmr.bf16.gmra.16.mxu1 }
 0x4b7   : > { %2985 = vmatmul.lmr.bf16.gmra.16.mxu2  ;;  %3013 = vmatmul.lmr.bf16.gmra.16.mxu3 }
 0x4be   : > { %2930 = vmatmul.lmr.bf16.gmra.16.mxu0  ;;  %2958 = vmatmul.lmr.bf16.gmra.16.mxu1 }
 0x4bf   : > { %2986 = vmatmul.lmr.bf16.gmra.16.mxu2  ;;  %3014 = vmatmul.lmr.bf16.gmra.16.mxu3 }
 0x4c6   : > { %2931 = vmatmul.lmr.bf16.gmra.16.mxu0  ;;  %2959 = vmatmul.lmr.bf16.gmra.16.mxu1 }
 0x4c7   : > { %2987 = vmatmul.lmr.bf16.gmra.16.mxu2  ;;  %3015 = vmatmul.lmr.bf16.gmra.16.mxu3 }
 0x4ce   : > { %2932 = vmatmul.lmr.bf16.gmra.16.mxu0  ;;  %2960 = vmatmul.lmr.bf16.gmra.16.mxu1 }
 0x4cf   : > { %2988 = vmatmul.lmr.bf16.gmra.16.mxu2  ;;  %3016 = vmatmul.lmr.bf16.gmra.16.mxu3 }
 0x4d6   : > { %2933 = vmatmul.lmr.bf16.gmra.16.mxu0  ;;  %2961 = vmatmul.lmr.bf16.gmra.16.mxu1 }
 0x4d7   : > { %2989 = vmatmul.lmr.bf16.gmra.16.mxu2  ;;  %3017 = vmatmul.lmr.bf16.gmra.16.mxu3 }
 0x4de   : > { %2934 = vmatmul.lmr.bf16.gmra.16.mxu0  ;;  %2962 = vmatmul.lmr.bf16.gmra.16.mxu1 }
 0x4df   : > { %2990 = vmatmul.lmr.bf16.gmra.16.mxu2  ;;  %3018 = vmatmul.lmr.bf16.gmra.16.mxu3 }
 0x4e3   : > { %v2248_v21 = vpop.f32.mrf.mxu0  ;;  %v2297_v27 = vpop.f32.mrf.mxu1 }
 0x4e4   : > { %v5368_v38 = vmul.f32 %v3379_v63, %v2248_v21  ;;  %v5370_v52 = vmul.f32 %v3381_v41, %v2297_v27 }
 0x4e6   : > { %6271 = vst [vmem:[#allocation149_spill] sm:$0xff] %v5368_v38 }
 0x4e7   : > { %6272 = vst [vmem:[#allocation146_spill] sm:$0xff] %v5370_v52 }
 0x4ea   : > { %v2346_v53 = vpop.f32.mrf.mxu2  ;;  %v2395_v47 = vpop.f32.mrf.mxu3 }
 0x4eb   : > { %v5378_v2 = vmul.f32 %v3383_v43, %v2346_v53  ;;  %v5380_v33 = vmul.f32 %v3385_v34, %v2395_v47  ;;  %v2250_v51 = vpop.f32.mrf.mxu0  ;;  %v2299_v61 = vpop.f32.mrf.mxu1  ;;  %v2122_v53 = vrot.slane %v6291_v24, 4 }
 0x4ec   : > { %v5382_v5 = vmul.f32 %v3379_v63, %v2250_v51  ;;  %v5384_v15 = vmul.f32 %v3381_v41, %v2299_v61  ;;  %v2131_v51 = vrot.slane %v6292_v57, 4  ;;  %v6302_v61 = vld [vmem:[#allocation80_spill] sm:$0xff] }
 0x4ed   : > { %6277 = vst [vmem:[#allocation150_spill] sm:$0xff] %v5378_v2  ;;  %v2177_v2 = vadd.f32 %v2176_v44, %v6301_v58 }
 0x4ee   : > { %6278 = vst [vmem:[#allocation120_spill] sm:$0xff] %v5380_v33  ;;  %v2132_v25 = vadd.f32 %v2131_v51, %v6292_v57 }
 0x4ef   : > { %6279 = vst [vmem:[#allocation136_spill] sm:$0xff] %v5382_v5 }
 0x4f0   : > { %6280 = vst [vmem:[#allocation121_spill] sm:$0xff] %v5384_v15  ;;  %v2133_v54 = vrot.slane %v2132_v25, 2 }
 0x4f2   : > { %v2348_v23 = vpop.f32.mrf.mxu2  ;;  %v2397_v40 = vpop.f32.mrf.mxu3 }
 0x4f3   : > { %v5391_v28 = vmul.f32 %v3383_v43, %v2348_v23  ;;  %v5393_v4 = vmul.f32 %v3385_v34, %v2397_v40  ;;  %v2253_v3 = vpop.f32.mrf.mxu0  ;;  %v2302_v42 = vpop.f32.mrf.mxu1 }
 0x4f4   : > { %v5395_v62 = vmul.f32 %v3379_v63, %v2253_v3  ;;  %v5397_v20 = vmul.f32 %v3381_v41, %v2302_v42 }
 0x4f5   : > { %6281 = vst [vmem:[#allocation122_spill] sm:$0xff] %v5391_v28 }
 0x4f6   : > { %6282 = vst [vmem:[#allocation131_spill] sm:$0xff] %v5393_v4 }
 0x4f7   : > { %6283 = vst [vmem:[#allocation139_spill] sm:$0xff] %v5395_v62 }
 0x4f8   : > { %6284 = vst [vmem:[#allocation132_spill] sm:$0xff] %v5397_v20 }
 0x4fa   : > { %v2351_v46 = vpop.f32.mrf.mxu2  ;;  %v2400_v1 = vpop.f32.mrf.mxu3 }
 0x4fb   : > { %v5403_v30 = vmul.f32 %v3383_v43, %v2351_v46  ;;  %v5405_v18 = vmul.f32 %v3385_v34, %v2400_v1  ;;  %v2255_v45 = vpop.f32.mrf.mxu0  ;;  %v2304_v19 = vpop.f32.mrf.mxu1  ;;  %v2141_v46 = vadd.f32 %v2140_v56, %v6293_v9 }
 0x4fc   : > { %v5407_v26 = vmul.f32 %v3379_v63, %v2255_v45  ;;  %v5409_v11 = vmul.f32 %v3381_v41, %v2304_v19  ;;  %v2134_v45 = vadd.f32 %v2133_v54, %v2132_v25 }
 0x4fd   : > { %6285 = vst [vmem:[#allocation140_spill] sm:$0xff] %v5403_v30  ;;  %v2142_v50 = vrot.slane %v2141_v46, 2 }
 0x4fe   : > { %6286 = vst [vmem:[#allocation123_spill] sm:$0xff] %v5405_v18  ;;  %v2135_v51 = vrot.slane %v2134_v45, 1 }
 0x4ff   : > { %6287 = vst [vmem:[#allocation137_spill] sm:$0xff] %v5407_v26 }
 0x500   : > { %6288 = vst [vmem:[#allocation141_spill] sm:$0xff] %v5409_v11  ;;  %v2136_v56 = vadd.f32 %v2135_v51, %v2134_v45 }
 0x502   : > { %v2353_v35 = vpop.f32.mrf.mxu2  ;;  %v2402_v17 = vpop.f32.mrf.mxu3 }
 0x503   : > { %v5417_v60 = vmul.f32 %v3383_v43, %v2353_v35  ;;  %v5419_v63 = vmul.f32 %v3385_v34, %v2402_v17  ;;  %v2258_v41 = vpop.f32.mrf.mxu0  ;;  %v2307_v32 = vpop.f32.mrf.mxu1  ;;  %v2123_v34 = vadd.f32 %v2122_v53, %v6291_v24  ;;  %v2151_v24 = vrot.slane %v2150_v36, 2 }
 0x504   : > { %v5423_v47 = vmul.f32 %v5415_v49, %v2258_v41  ;;  %v5425_v48 = vmul.f32 %v3389_v29, %v2307_v32 }
 0x505   : > { %6289 = vst [vmem:[#allocation138_spill] sm:$0xff] %v5417_v60  ;;  %v2124_v42 = vrot.slane %v2123_v34, 2  ;;  %v2152_v9 = vadd.f32 %v2151_v24, %v2150_v36 }
 0x506   : > { %6290 = vst [vmem:[#allocation142_spill] sm:$0xff] %v5419_v63 }
 0x507   : > { %v2125_v1 = vadd.f32 %v2124_v42, %v2123_v34  ;;  %v6299_v34 = vld [vmem:[#allocation71_spill] sm:$0xff] }
 0x508   : > { %v2158_v27 = vrot.slane %v6299_v34, 4 }
 0x509   : > { %v2126_v32 = vrot.slane %v2125_v1, 1 }
 0x50a   : > { %v2356_v7 = vpop.f32.mrf.mxu2  ;;  %v2405_v37 = vpop.f32.mrf.mxu3 }
 0x50b   : > { %v5435_v23 = vmul.f32 %v3391_v0, %v2356_v7  ;;  %v5437_v40 = vmul.f32 %v3393_v8, %v2405_v37  ;;  %v2260_v16 = vpop.f32.mrf.mxu0  ;;  %v2309_v3 = vpop.f32.mrf.mxu1  ;;  %v2143_v7 = vadd.f32 %v2142_v50, %v2141_v46  ;;  %v2127_v37 = vadd.f32 %v2126_v32, %v2125_v1 }
 0x50c   : > { %v5441_v59 = vmul.f32 %v5415_v49, %v2260_v16  ;;  %v5443_v13 = vmul.f32 %v3389_v29, %v2309_v3  ;;  %v2185_v46 = vrot.slane %v6302_v61, 4 }
 0x50d   : > { %6294 = vst [vmem:[#allocation124_spill] sm:$0xff] %v5435_v23  ;;  %v2144_v42 = vrot.slane %v2143_v7, 1  ;;  %3394 = vrcp.f32 %v2127_v37 }
 0x50e   : > { %6295 = vst [vmem:[#allocation117_spill] sm:$0xff] %v5437_v40  ;;  %3396 = vrcp.f32 %v2136_v56  ;;  %v2186_v28 = vadd.f32 %v2185_v46, %v6302_v61 }
 0x50f   : > { %v2145_v36 = vadd.f32 %v2144_v42, %v2143_v7 }
 0x510   : > { %v2187_v63 = vrot.slane %v2186_v28, 2 }
 0x511   : > { %3398 = vrcp.f32 %v2145_v36 }
 0x512   : > { %v2358_v19 = vpop.f32.mrf.mxu2  ;;  %v2407_v22 = vpop.f32.mrf.mxu3  ;;  %v2188_v5 = vadd.f32 %v2187_v63, %v2186_v28 }
 0x513   : > { %v5451_v10 = vmul.f32 %v3391_v0, %v2358_v19  ;;  %v5453_v35 = vmul.f32 %v3393_v8, %v2407_v22  ;;  %v2263_v17 = vpop.f32.mrf.mxu0  ;;  %v2312_v41 = vpop.f32.mrf.mxu1  ;;  %v2153_v22 = vrot.slane %v2152_v9, 1 }
 0x514   : > { %v5456_v53 = vmul.f32 %v5415_v49, %v2263_v17  ;;  %v5458_v57 = vmul.f32 %v3389_v29, %v2312_v41  ;;  %v5477_v50 = vpop.eup %3394  ;;  %v2189_v61 = vrot.slane %v2188_v5, 1 }
 0x515   : > { %6297 = vst [vmem:[#allocation127_spill] sm:$0xff] %v5451_v10  ;;  %v2154_v45 = vadd.f32 %v2153_v22, %v2152_v9  ;;  %v5479_v51 = vpop.eup %3396  ;;  %v2159_v9 = vadd.f32 %v2158_v27, %v6299_v34  ;;  %v2178_v34 = vrot.slane %v2177_v2, 2 }
 0x516   : > { %6298 = vst [vmem:[#allocation119_spill] sm:$0xff] %v5453_v35 }
 0x517   : > { %3400 = vrcp.f32 %v2154_v45  ;;  %v2160_v33 = vrot.slane %v2159_v9, 2  ;;  %v2179_v38 = vadd.f32 %v2178_v34, %v2177_v2 }
 0x519   : > { %v2161_v18 = vadd.f32 %v2160_v33, %v2159_v9  ;;  %v2180_v23 = vrot.slane %v2179_v38, 1 }
 0x51a   : > { %v2361_v16 = vpop.f32.mrf.mxu2  ;;  %v2410_v3 = vpop.f32.mrf.mxu3 }
 0x51b   : > { %v5464_v39 = vmul.f32 %v3391_v0, %v2361_v16  ;;  %v5466_v14 = vmul.f32 %v3393_v8, %v2410_v3  ;;  %v2265_v54 = vpop.f32.mrf.mxu0  ;;  %v2314_v19 = vpop.f32.mrf.mxu1  ;;  %v2162_v52 = vrot.slane %v2161_v18, 1  ;;  %v2181_v46 = vadd.f32 %v2180_v23, %v2179_v38 }
 0x51c   : > { %v5469_v17 = vmul.f32 %v5415_v49, %v2265_v54  ;;  %v5471_v41 = vmul.f32 %v3389_v29, %v2314_v19 }
 0x51d   : > { %v2163_v40 = vadd.f32 %v2162_v52, %v2161_v18 }
 0x51f   : > { %3402 = vrcp.f32 %v2163_v40 }
 0x522   : > { %v2363_v32 = vpop.f32.mrf.mxu2  ;;  %v2412_v24 = vpop.f32.mrf.mxu3 }
 0x523   : > { %v5481_v49 = vmul.f32 %v3391_v0, %v2363_v32  ;;  %v5483_v29 = vmul.f32 %v3393_v8, %v2412_v24  ;;  %v2268_v37 = vpop.f32.mrf.mxu0  ;;  %v2317_v56 = vpop.f32.mrf.mxu1 }
 0x524   : > { %v5486_v16 = vmul.f32 %v5477_v50, %v2268_v37  ;;  %v5489_v3 = vmul.f32 %v5479_v51, %v2317_v56  ;;  %v5495_v0 = vpop.eup %3398 }
 0x525   : > { %v5497_v8 = vpop.eup %3400 }
 0x526   : > { %v3403_v9 = vpop.eup %3402 }
 0x52a   : > { %v2366_v42 = vpop.f32.mrf.mxu2  ;;  %v2415_v54 = vpop.f32.mrf.mxu3 }
 0x52b   : > { %v5500_v19 = vmul.f32 %v5495_v0, %v2366_v42  ;;  %v5503_v22 = vmul.f32 %v5497_v8, %v2415_v54  ;;  %v2270_v36 = vpop.f32.mrf.mxu0  ;;  %v2319_v45 = vpop.f32.mrf.mxu1 }
 0x52c   : > { %v5506_v32 = vmul.f32 %v5477_v50, %v2270_v36  ;;  %v5509_v24 = vmul.f32 %v5479_v51, %v2319_v45 }
 0x532   : > { %v2368_v55 = vpop.f32.mrf.mxu2  ;;  %v2417_v42 = vpop.f32.mrf.mxu3 }
 0x533   : > { %v5516_v12 = vmul.f32 %v5495_v0, %v2368_v55  ;;  %v5519_v54 = vmul.f32 %v5497_v8, %v2417_v42  ;;  %v5521_v43 = vpop.f32.mrf.mxu0  ;;  %v5523_v36 = vpop.f32.mrf.mxu1  ;;  %v6300_v42 = vld [vmem:[#allocation77_spill] sm:$0xff] }
 0x534   : > { %v2167_v21 = vrot.slane %v6300_v42, 4 }
 0x536   : > { %v2168_v7 = vadd.f32 %v2167_v21, %v6300_v42 }
 0x538   : > { %v2169_v4 = vrot.slane %v2168_v7, 2 }
 0x53a   : > { %v5529_v6 = vpop.f32.mrf.mxu2  ;;  %v5531_v31 = vpop.f32.mrf.mxu3  ;;  %v2170_v27 = vadd.f32 %v2169_v4, %v2168_v7  ;;  %v2190_v7 = vadd.f32 %v2189_v61, %v2188_v5 }
 0x53b   : > { %v2275_v25 = vpop.f32.mrf.mxu0  ;;  %v2324_v55 = vpop.f32.mrf.mxu1 }
 0x53c   : > { %v2171_v15 = vrot.slane %v2170_v27, 1  ;;  %v2495_v23 = vmul.f32 %v5477_v50, %v2275_v25  ;;  %v2496_v61 = vmul.f32 %v5479_v51, %v2324_v55 }
 0x53e   : > { %v2172_v35 = vadd.f32 %v2171_v15, %v2170_v27 }
 0x540   : > { %3404 = vrcp.f32 %v2172_v35 }
 0x541   : > { %3406 = vrcp.f32 %v2181_v46 }
 0x542   : > { %v5538_v45 = vpop.f32.mrf.mxu2  ;;  %v5540_v1 = vpop.f32.mrf.mxu3  ;;  %3408 = vrcp.f32 %v2190_v7 }
 0x543   : > { %v2278_v56 = vpop.f32.mrf.mxu0  ;;  %v2327_v37 = vpop.f32.mrf.mxu1 }
 0x544   : > { %v2499_v35 = vmul.f32 %v3403_v9, %v2278_v56 }
 0x546   : > { %v3405_v11 = vpop.eup %3404 }
 0x547   : > { %v3407_v40 = vpop.eup %3406  ;;  %v2500_v38 = vmul.f32 %v3405_v11, %v2327_v37 }
 0x548   : > { %v3409_v5 = vpop.eup %3408 }
 0x54a   : > { %v5545_v21 = vpop.f32.mrf.mxu2  ;;  %v5547_v42 = vpop.f32.mrf.mxu3 }
 0x54b   : > { %v2280_v30 = vpop.f32.mrf.mxu0  ;;  %v2329_v60 = vpop.f32.mrf.mxu1 }
 0x54c   : > { %v2503_v27 = vmul.f32 %v3403_v9, %v2280_v30  ;;  %v2504_v34 = vmul.f32 %v3405_v11, %v2329_v60 }
 0x54e   : > { %v2542_v46 = vpack.c.bf16 %v2503_v27, %v2499_v35  ;;  %v2543_v7 = vpack.c.bf16 %v2504_v34, %v2500_v38  ;;  %v2515_v34 = vld [vmem:[%s5699_s3] sm:$0xf]  ;;  %v6332_v35 = vld [vmem:[#allocation140_spill] sm:$0xff] }
 0x552   : > { %v2378_v44 = vpop.f32.mrf.mxu2  ;;  %v2427_v58 = vpop.f32.mrf.mxu3 }
 0x553   : > { %v2283_v33 = vpop.f32.mrf.mxu0  ;;  %v2332_v4 = vpop.f32.mrf.mxu1 }
 0x554   : > { %v2507_v52 = vmul.f32 %v3403_v9, %v2283_v33  ;;  %v2508_v15 = vmul.f32 %v3405_v11, %v2332_v4 }
 0x55a   : > { %v2381_v10 = vpop.f32.mrf.mxu2  ;;  %v2430_v20 = vpop.f32.mrf.mxu3 }
 0x55b   : > { %v2285_v2 = vpop.f32.mrf.mxu0  ;;  %v2334_v28 = vpop.f32.mrf.mxu1 }
 0x55c   : > { %v2511_v18 = vmul.f32 %v3403_v9, %v2285_v2  ;;  %v2512_v63 = vmul.f32 %v3405_v11, %v2334_v28  ;;  %v2509_v2 = vmul.f32 %v3407_v40, %v2381_v10  ;;  %v2510_v28 = vmul.f32 %v3409_v5, %v2430_v20  ;;  %v2517_v10 = vld [vmem:[%s5701_s5] sm:$0xff] }
 0x55d   : > { %v2506_v11 = vmul.f32 %v3409_v5, %v2427_v58  ;;  %v2501_v9 = vmul.f32 %v3407_v40, %v5545_v21  ;;  %v2502_v20 = vmul.f32 %v3409_v5, %v5547_v42  ;;  %v3553_v42 = vmov 0  }
 0x55e   : > { %v2546_v62 = vpack.c.bf16 %v2511_v18, %v2507_v52  ;;  %v2547_v26 = vpack.c.bf16 %v2512_v63, %v2508_v15  ;;  %v2491_v52 = vmul.f32 %v5477_v50, %v5521_v43  ;;  %v2516_v43 = vld [vmem:[%s5700_s4] sm:$0xff]  ;;  %v2497_v50 = vmul.f32 %v5495_v0, %v5538_v45  ;;  %3079 = vset.pattern.permute.xlu1 %v3553_v42  ;;  %v6329_v63 = vld [vmem:[#allocation146_spill] sm:$0xff] }
 0x55f   : > { %v2545_v21 = vpack.c.bf16 %v2506_v11, %v2502_v20  ;;  %3080 = vset.pattern.permute.xlu2 %v3553_v42  ;;  %2552 = vperm.xlu1 %3079, %v2516_v43   ;;  %v2494_v58 = vmul.f32 %v5497_v8, %v5531_v31  ;;  %v6303_v45 = vpack.c.bf16 %v5506_v32, %v5486_v16  ;;  %v6320_v32 = vld [vmem:[#allocation124_spill] sm:$0xff] }
 0x560   : > { %2555 = vmatpush.bf16.msra.mxu0 %v2546_v62  ;;  %2568 = vmatpush.bf16.msra.mxu1 %v2547_v26  ;;  %v2492_v62 = vmul.f32 %v5479_v51, %v5523_v36  ;;  %v2505_v26 = vmul.f32 %v3407_v40, %v2378_v44  ;;  %v2538_v56 = vpack.c.bf16 %v2495_v23, %v2491_v52  ;;  %v6335_v23 = vld [vmem:[#allocation123_spill] sm:$0xff] }
 0x561   : > { %v2498_v51 = vmul.f32 %v5497_v8, %v5540_v1  ;;  %2685 = vperm.xlu2 %3080, %v2517_v10   ;;  %v2493_v44 = vmul.f32 %v5495_v0, %v5529_v6  ;;  %v6304_v1 = vpack.c.bf16 %v5509_v24, %v5489_v3  ;;  %3081 = vset.pattern.permute.xlu0 %v3553_v42  ;;  %v6323_v24 = vld [vmem:[#allocation117_spill] sm:$0xff] }
 0x562   : > { %v2383_v33 = vpop.f32.mrf.mxu2  ;;  %v2432_v4 = vpop.f32.mrf.mxu3  ;;  %v2539_v55 = vpack.c.bf16 %v2496_v61, %v2492_v62  ;;  %v2544_v36 = vpack.c.bf16 %v2505_v26, %v2501_v9  ;;  %v6305_v6 = vpack.c.bf16 %v5469_v17, %v5456_v53  ;;  %v6306_v31 = vpack.c.bf16 %v5471_v41, %v5458_v57  ;;  %v6313_v17 = vld [vmem:[#allocation137_spill] sm:$0xff]  ;;  %v6314_v41 = vld [vmem:[#allocation139_spill] sm:$0xff] }
 0x563   : > { %v2513_v30 = vmul.f32 %v3407_v40, %v2383_v33  ;;  %v2514_v60 = vmul.f32 %v3409_v5, %v2432_v4  ;;  %v2540_v15 = vpack.c.bf16 %v2497_v50, %v2493_v44  ;;  %v2541_v18 = vpack.c.bf16 %v2498_v51, %v2494_v58  ;;  %v6331_v40 = vld [vmem:[#allocation138_spill] sm:$0xff]  ;;  %v6340_v4 = vld [vmem:[#allocation131_spill] sm:$0xff] }
 0x564   : > { %2556 = vmatpush.bf16.msra.mxu0 %v2542_v46  ;;  %2569 = vmatpush.bf16.msra.mxu1 %v2543_v7  ;;  %v6307_v16 = vpack.c.bf16 %v5516_v12, %v5500_v19  ;;  %v6308_v3 = vpack.c.bf16 %v5519_v54, %v5503_v22  ;;  %v6309_v0 = vpack.c.bf16 %v5441_v59, %v5423_v47  ;;  %v6316_v19 = vld [vmem:[#allocation141_spill] sm:$0xff]  ;;  %v6317_v22 = vld [vmem:[#allocation132_spill] sm:$0xff]  ;;  %v6319_v59 = vld [vmem:[#allocation127_spill] sm:$0xff] }
 0x565   : > { %v2548_v25 = vpack.c.bf16 %v2513_v30, %v2509_v2  ;;  %v2549_v37 = vpack.c.bf16 %v2514_v60, %v2510_v28  ;;  %v6310_v53 = vpack.c.bf16 %v5443_v13, %v5425_v48  ;;  %v6311_v57 = vpack.c.bf16 %v5481_v49, %v5464_v39  ;;  %v6322_v13 = vld [vmem:[#allocation119_spill] sm:$0xff]  ;;  %v6325_v49 = vld [vmem:[#allocation136_spill] sm:$0xff]  ;;  %v6326_v54 = vld [vmem:[#allocation149_spill] sm:$0xff] }
 0x566   : > { %v6312_v12 = vpack.c.bf16 %v5483_v29, %v5466_v14  ;;  %v6315_v8 = vpack.c.bf16 %v6313_v17, %v6314_v41  ;;  %v6318_v47 = vpack.c.bf16 %v6316_v19, %v6317_v22  ;;  %v6321_v48 = vpack.c.bf16 %v6319_v59, %v6320_v32  ;;  %v6328_v29 = vld [vmem:[#allocation121_spill] sm:$0xff]  ;;  %v6334_v5 = vld [vmem:[#allocation142_spill] sm:$0xff]  ;;  %v6341_v2 = vld [vmem:[#allocation120_spill] sm:$0xff] }
 0x567   : > { %2581 = vmatpush.bf16.msra.mxu2 %v2548_v25  ;;  %2594 = vmatpush.bf16.msra.mxu3 %v2549_v37  ;;  %v6324_v39 = vpack.c.bf16 %v6322_v13, %v6323_v24  ;;  %v6327_v14 = vpack.c.bf16 %v6325_v49, %v6326_v54  ;;  %v6330_v27 = vpack.c.bf16 %v6328_v29, %v6329_v63  ;;  %v6337_v46 = vld [vmem:[#allocation122_spill] sm:$0xff] }
 0x568   : > { %2557 = vmatpush.bf16.msra.mxu0 %v2538_v56  ;;  %2570 = vmatpush.bf16.msra.mxu1 %v2539_v55  ;;  %v6333_v38 = vpack.c.bf16 %v6331_v40, %v6332_v35  ;;  %v6336_v61 = vpack.c.bf16 %v6334_v5, %v6335_v23  ;;  %v6338_v7 = vld [vmem:[#allocation150_spill] sm:$0xff]  ;;  %v6342_v28 = vpack.c.bf16 %v6340_v4, %v6341_v2 }
 0x569   : > { %v6339_v33 = vpack.c.bf16 %v6337_v46, %v6338_v7 }
 0x56b   : > { %2582 = vmatpush.bf16.msra.mxu2 %v2544_v36  ;;  %2595 = vmatpush.bf16.msra.mxu3 %v2545_v21 }
 0x56c   : > { %2558 = vmatpush.bf16.msra.mxu0 %v6303_v45  ;;  %2571 = vmatpush.bf16.msra.mxu1 %v6304_v1 }
 0x56f   : > { %2583 = vmatpush.bf16.msra.mxu2 %v2540_v15  ;;  %2596 = vmatpush.bf16.msra.mxu3 %v2541_v18 }
 0x570   : > { %2559 = vmatpush.bf16.msra.mxu0 %v6305_v6  ;;  %2572 = vmatpush.bf16.msra.mxu1 %v6306_v31 }
 0x573   : > { %2584 = vmatpush.bf16.msra.mxu2 %v6307_v16  ;;  %2597 = vmatpush.bf16.msra.mxu3 %v6308_v3 }
 0x574   : > { %2560 = vmatpush.bf16.msra.mxu0 %v6309_v0  ;;  %2573 = vmatpush.bf16.msra.mxu1 %v6310_v53 }
 0x577   : > { %2585 = vmatpush.bf16.msra.mxu2 %v6311_v57  ;;  %2598 = vmatpush.bf16.msra.mxu3 %v6312_v12 }
 0x578   : > { %2561 = vmatpush.bf16.msra.mxu0 %v6315_v8  ;;  %2574 = vmatpush.bf16.msra.mxu1 %v6318_v47 }
 0x57b   : > { %2586 = vmatpush.bf16.msra.mxu2 %v6321_v48  ;;  %2599 = vmatpush.bf16.msra.mxu3 %v6324_v39 }
 0x57c   : > { %2562 = vmatpush.bf16.msra.mxu0 %v6327_v14  ;;  %2575 = vmatpush.bf16.msra.mxu1 %v6330_v27 }
 0x57f   : > { %2587 = vmatpush.bf16.msra.mxu2 %v6333_v38  ;;  %2600 = vmatpush.bf16.msra.mxu3 %v6336_v61 }
 0x580   : > { %2563 = vmatmul.bf16.vlgmr.msra.gmra.mxu0 %v2515_v34  ;;  %2576 = vmatmul.bf16.vlgmr.msra.gmra.mxu1 %v2515_v34 }
 0x583   : > { %2588 = vmatpush.bf16.msra.mxu2 %v6339_v33  ;;  %2601 = vmatpush.bf16.msra.mxu3 %v6342_v28 }
 0x586   : > { %2589 = vmatmul.bf16.vlgmr.msra.gmra.mxu2 %v2515_v34  ;;  %2602 = vmatmul.bf16.vlgmr.msra.gmra.mxu3 %v2515_v34 }
 0x5bb   : > { %v2686_v23 = vpop.permute.xlu2 %2685 }
 0x5d1   : > { %v2553_v30 = vpop.permute.xlu1 %2552 }
 0x5fd   : > { %v2564_v60 = vpop.f32.mrf.mxu0  ;;  %v2577_v11 = vpop.f32.mrf.mxu1 }
 0x5fe   : > { %v5634_v52 = vadd.f32 %v2564_v60, %v2553_v30  ;;  %v5638_v25 = vadd.f32 %v2577_v11, %v2553_v30 }
 0x600   : > { %v2607_v62 = vmul.f32 %v5634_v52, %v5634_v52  ;;  %v2608_v56 = vmul.f32 %v5638_v25, %v5638_v25 }
 0x602   : > { %v2611_v26 = vrot.slane %v2607_v62, 4  ;;  %v2617_v20 = vrot.slane %v2608_v56, 4 }
 0x604   : > { %v2612_v37 = vadd.f32 %v2611_v26, %v2607_v62  ;;  %v2618_v10 = vadd.f32 %v2617_v20, %v2608_v56 }
 0x605   : > { %v2566_v55 = vpop.f32.mrf.mxu0  ;;  %v2579_v21 = vpop.f32.mrf.mxu1 }
 0x606   : > { %v2613_v9 = vrot.slane %v2612_v37, 2  ;;  %v2619_v42 = vrot.slane %v2618_v10, 2 }
 0x608   : > { %v2614_v43 = vadd.f32 %v2613_v9, %v2612_v37  ;;  %v2620_v45 = vadd.f32 %v2619_v42, %v2618_v10 }
 0x609   : > { %v2590_v50 = vpop.f32.mrf.mxu2  ;;  %v2603_v18 = vpop.f32.mrf.mxu3 }
 0x60a   : > { %v2615_v51 = vrot.slane %v2614_v43, 1  ;;  %v5642_v36 = vadd.f32 %v2590_v50, %v2553_v30  ;;  %v2621_v6 = vrot.slane %v2620_v45, 1  ;;  %v5646_v31 = vadd.f32 %v2603_v18, %v2553_v30 }
 0x60c   : > { %v2616_v44 = vadd.f32 %v2615_v51, %v2614_v43  ;;  %v2609_v58 = vmul.f32 %v5642_v36, %v5642_v36  ;;  %v2622_v3 = vadd.f32 %v2621_v6, %v2620_v45  ;;  %v2610_v0 = vmul.f32 %v5646_v31, %v5646_v31 }
 0x60e   : > { %v2635_v1 = vmax.f32 %v2616_v44, 1e-24  ;;  %v2623_v15 = vrot.slane %v2609_v58, 4  ;;  %v2636_v12 = vmax.f32 %v2622_v3, 1e-24  ;;  %v2629_v17 = vrot.slane %v2610_v0, 4 }
 0x610   : > { %3410 = vrsqrt.f32 %v2635_v1  ;;  %v2624_v16 = vadd.f32 %v2623_v15, %v2609_v58  ;;  %v2630_v8 = vadd.f32 %v2629_v17, %v2610_v0  ;;  %vm2645_vm14 = vweird.f32 %v2635_v1 }
 0x611   : > { %v2592_v53 = vpop.f32.mrf.mxu2  ;;  %3412 = vrsqrt.f32 %v2636_v12  ;;  %v2605_v47 = vpop.f32.mrf.mxu3  ;;  %vm2655_vm1 = vweird.f32 %v2636_v12 }
 0x612   : > { %v2625_v57 = vrot.slane %v2624_v16, 2  ;;  %v2631_v32 = vrot.slane %v2630_v8, 2 }
 0x614   : > { %v2626_v41 = vadd.f32 %v2625_v57, %v2624_v16  ;;  %v2632_v24 = vadd.f32 %v2631_v32, %v2630_v8 }
 0x616   : > { %v3411_v19 = vpop.eup %3410  ;;  %v2627_v22 = vrot.slane %v2626_v41, 1  ;;  %v2633_v14 = vrot.slane %v2632_v24, 1 }
 0x617   : > { %v2640_v59 = vmul.f32 %v3411_v19, %v2635_v1  ;;  %v3413_v49 = vpop.eup %3412  ;;  %vm2646_vm15 = vweird.f32 %v3411_v19 }
 0x618   : > { %v2628_v48 = vadd.f32 %v2627_v22, %v2626_v41  ;;  %v2650_v29 = vmul.f32 %v3413_v49, %v2636_v12  ;;  %v2634_v27 = vadd.f32 %v2633_v14, %v2632_v24  ;;  %vm2647_vm0 = vmor %vm2645_vm14, %vm2646_vm15  ;;  %vm2656_vm2 = vweird.f32 %v3413_v49 }
 0x619   : > { %v2641_v13 = vmul.f32 %v3411_v19, %v2640_v59  ;;  %vm2657_vm3 = vmor %vm2655_vm1, %vm2656_vm2 }
 0x61a   : > { %v2637_v39 = vmax.f32 %v2628_v48, 1e-24  ;;  %v2651_v34 = vmul.f32 %v3413_v49, %v2650_v29  ;;  %v2638_v35 = vmax.f32 %v2634_v27, 1e-24 }
 0x61b   : > { %v2642_v54 = vmul.f32 0.5, %v2641_v13 }
 0x61c   : > { %3414 = vrsqrt.f32 %v2637_v39  ;;  %v2652_v38 = vmul.f32 0.5, %v2651_v34  ;;  %vm2665_vm5 = vweird.f32 %v2637_v39  ;;  %vm2675_vm8 = vweird.f32 %v2638_v35 }
 0x61d   : > { %v2643_v63 = vsub.f32 1.5, %v2642_v54  ;;  %3416 = vrsqrt.f32 %v2638_v35 }
 0x61e   : > { %v2653_v7 = vsub.f32 1.5, %v2652_v38 }
 0x61f   : > { %v2644_v40 = vmul.f32 %v3411_v19, %v2643_v63 }
 0x620   : > { %v2654_v4 = vmul.f32 %v3413_v49, %v2653_v7 }
 0x621   : > { %v2648_v5 = vsel %vm2647_vm0, %v3411_v19, %v2644_v40 }
 0x622   : > { %v3415_v61 = vpop.eup %3414  ;;  %v2679_v46 = vmul.f32 %v2648_v5, %v5634_v52  ;;  %v2658_v30 = vsel %vm2657_vm3, %v3413_v49, %v2654_v4 }
 0x623   : > { %v2660_v33 = vmul.f32 %v3415_v61, %v2637_v39  ;;  %v3417_v60 = vpop.eup %3416  ;;  %v2680_v62 = vmul.f32 %v2658_v30, %v5638_v25  ;;  %vm2666_vm4 = vweird.f32 %v3415_v61 }
 0x624   : > { %v2688_v2 = vmul.f32 %v2686_v23, %v2679_v46  ;;  %v2670_v26 = vmul.f32 %v3417_v60, %v2638_v35  ;;  %vm2667_vm6 = vmor %vm2665_vm5, %vm2666_vm4  ;;  %vm2676_vm7 = vweird.f32 %v3417_v60 }
 0x625   : > { %v2661_v28 = vmul.f32 %v3415_v61, %v2660_v33  ;;  %v2689_v37 = vmul.f32 %v2686_v23, %v2680_v62  ;;  %vm2677_vm9 = vmor %vm2675_vm8, %vm2676_vm7 }
 0x626   : > { %2692 = vst [vmem:[%s5653_s27] sm:$0xff] %v2688_v2  ;;  %v2671_v56 = vmul.f32 %v3417_v60, %v2670_v26 }
 0x627   : > { %v2662_v52 = vmul.f32 0.5, %v2661_v28  ;;  %2693 = vst [vmem:[%s5653_s27 + $0x8] sm:$0xff] %v2689_v37 }
 0x628   : > { %v2672_v9 = vmul.f32 0.5, %v2671_v56 }
 0x629   : > { %v2663_v11 = vsub.f32 1.5, %v2662_v52 }
 0x62a   : > { %v2673_v10 = vsub.f32 1.5, %v2672_v9 }
 0x62b   : > { %v2664_v55 = vmul.f32 %v3415_v61, %v2663_v11 }
 0x62c   : > { %v2674_v25 = vmul.f32 %v3417_v60, %v2673_v10 }
 0x62d   : > { %v2668_v20 = vsel %vm2667_vm6, %v3415_v61, %v2664_v55 }
 0x62e   : > { %v2681_v43 = vmul.f32 %v2668_v20, %v5642_v36  ;;  %v2678_v51 = vsel %vm2677_vm9, %v3417_v60, %v2674_v25 }
 0x62f   : > { %v2682_v21 = vmul.f32 %v2678_v51, %v5646_v31 }
 0x630   : > { %v2690_v50 = vmul.f32 %v2686_v23, %v2681_v43 }
 0x631   : > { %v2691_v36 = vmul.f32 %v2686_v23, %v2682_v21 }
 0x632   : > { %2694 = vst [vmem:[%s5653_s27 + $0x10] sm:$0xff] %v2690_v50 }
 0x633   : > { %2695 = vst [vmem:[%s5653_s27 + $0x18] sm:$0xff] %v2691_v36 }
 0x634   : > { %3505 = shalt.err (!%p3502_p9)
}
 0x635   : > { %3025 = dma.vmem_to_hbm [thread:$0]  (%p3653_p13), %s2711_s30, 512, %s2713_s28, %s2697_s15  }
 0x636 PF: > { %s2724_s17 = sand.u32 1, %s3536_s21   ;;  %p6343_p10 = scmp.ge.s32.totalorder %s3548_s24, 2 }
 0x637   : > { %s2725_s27 = scalar_lea.sflag [#allocation4], %s2724_s17 }
 0x638   : > { %p3036_p11 = pnand %p6343_p10, %p3658_p4 }
 0x63a   : > { %p3037_p0 = pneg %p3036_p11 }
 0x63c   : > { %3531 = dma.done.wait (%p3037_p0), %s2725_s27, 512  }
 0x63d   : > { %3533 = vsyncadd (%p3037_p0), %s2725_s27, 4294966784  ;;  %p20_p2 = scmp.ge.s32.totalorder %s3633_s11, 4   ;;  %s6344_s21 = smov %s3540_s22 }
 0x63e   : > { %s6345_s22 = smov %s3544_s23  ;;  %s6346_s23 = smov %s3645_s14 }
 0x63f   : > { %s6347_s24 = smov %s3633_s11  ;;  %22 = sbr.rel (!%p20_p2) target bundleno = 6 (0x6), region = 93 }
 0x644   :  { %2731 = vsyncpa [#allocation3], 1 }
 0x645   :  { %2733 = vsyncpa [#allocation3 + $0x1], 1 }
 0x646   :  { %2734 = vsyncpa [#allocation6], 1 }
 0x647   :  { %2735 = vsyncpa [#allocation4], 1 }
 0x648   :  { %2737 = vsyncpa [#allocation4 + $0x1], 1 }

</bundles_post_ra>
